<compile_context>
chip_gen: v5e
topology: v5e:2x2
jax: 0.10.0
libtpu: 0.0.40
codegen_flags: <defaults>
</compile_context>

<pallas_src>
import functools

import jax
import jax.numpy as jnp
from jax.experimental import pallas as pl
from jax.experimental.pallas import tpu as pltpu

BN_EPS = 1e-5
LANE = 128
VMEM_LIMIT = 32 * 1024 * 1024  # fine at these shapes; raise per-generation later


# ---------------------------------------------------------------------------
# small helpers (glue)
# ---------------------------------------------------------------------------
def _round_up(v, m):
    return ((v + m - 1) // m) * m


def _pad_axis(x, new_size, axis):
    pad = new_size - x.shape[axis]
    if pad == 0:
        return x
    widths = [(0, 0)] * x.ndim
    widths[axis] = (0, pad)
    return jnp.pad(x, widths)


def _pick_tile(m, cap):
    """Largest divisor of m that is <= cap and a multiple of 8 (else m)."""
    cap = min(m, cap)
    for t in range(cap - cap % 8, 7, -8):
        if m % t == 0:
            return t
    return m


def _im2col(x, kh, kw, stride, padding):
    """x: (N, H, W, C) -> cols (N, Ho, Wo, KH*KW*C), column order (kh, kw, c)."""
    n, h, w, c = x.shape
    ho = (h + 2 * padding - kh) // stride + 1
    wo = (w + 2 * padding - kw) // stride + 1
    xp = jnp.pad(x, ((0, 0), (padding, padding), (padding, padding), (0, 0)))
    cols = []
    for i in range(kh):
        for j in range(kw):
            cols.append(xp[:, i:i + stride * ho:stride,
                           j:j + stride * wo:stride, :])
    return jnp.concatenate(cols, axis=-1), ho, wo


def _phase_decompose(xp, stride):
    """(N, Hp, Wp, C) -> (stride**2 * N, Hph, Wph, C) for strided pooling."""
    n, hp, wp, c = xp.shape
    s = stride
    hph = -(-hp // s)
    wph = -(-wp // s)
    phases = []
    for ph in range(s):
        for pw in range(s):
            xph = xp[:, ph::s, pw::s, :]
            xph = _pad_axis(_pad_axis(xph, hph, 1), wph, 2)
            phases.append(xph)
    return jnp.stack(phases, axis=0).reshape(s * s * n, hph, wph, c)


# ---------------------------------------------------------------------------
# Pallas kernels
# ---------------------------------------------------------------------------
def _gemm_bias_act_kernel(a_ref, w_ref, b_ref, o_ref, *, apply_relu):
    """One (tm, K) @ (K, N) MXU GEMM, f32 accumulate, + bias (+ ReLU)."""
    acc = jnp.dot(a_ref[...], w_ref[...], preferred_element_type=jnp.float32)
    acc = acc + b_ref[...]
    if apply_relu:
        acc = jnp.maximum(acc, 0.0)
    o_ref[...] = acc.astype(o_ref.dtype)


def _block_kernel(xc1_ref, xds_ref, w1_ref, b1_ref, wd_ref, bd_ref,
                  w2_ref, b2_ref, o_ref, ypad_ref, *, ho, wo, cout_p):
    """Fused BasicBlock (per image):
       shortcut = xds @ wd + bd          (identity wd when no downsample)
       y1       = relu(xc1 @ w1 + b1)    (conv1 with taps folded into K)
       out      = relu(conv2(y1) + b2 + shortcut)
    y1 is staged in a zero-bordered VMEM scratch; conv2 is a 9-tap MXU
    accumulation over shifted views of that scratch (stride 1, pad 1)."""
    m = ho * wo

    sc = jnp.dot(xds_ref[0], wd_ref[...],
                 preferred_element_type=jnp.float32) + bd_ref[...]

    y1 = jnp.dot(xc1_ref[0], w1_ref[...],
                 preferred_element_type=jnp.float32) + b1_ref[...]
    y1 = jnp.maximum(y1, 0.0)

    ypad_ref[...] = jnp.zeros_like(ypad_ref)
    ypad_ref[pl.ds(1, ho), pl.ds(1, wo), :] = (
        y1.astype(ypad_ref.dtype).reshape(ho, wo, cout_p))

    acc = sc + b2_ref[...]
    for kh in range(3):
        for kw in range(3):
            patch = ypad_ref[pl.ds(kh, ho), pl.ds(kw, wo), :]
            acc = acc + jnp.dot(patch.reshape(m, cout_p), w2_ref[kh * 3 + kw],
                                preferred_element_type=jnp.float32)

    o_ref[0] = jnp.maximum(acc, 0.0).astype(o_ref.dtype)


def _maxpool_kernel(x_ref, o_ref, *, taps, stride, th, wo, n_imgs):
    n = pl.program_id(0)
    t = pl.program_id(1)
    base = t * th
    if th % 8 == 0:
        base = pl.multiple_of(base, 8)
    res = None
    for kh, kw in taps:
        phase = (kh % stride) * stride + (kw % stride)
        r0 = base + kh // stride
        c0 = kw // stride
        patch = x_ref[phase * n_imgs + n, pl.ds(r0, th), pl.ds(c0, wo), :]
        res = patch if res is None else jnp.maximum(res, patch)
    o_ref[...] = res[None].astype(o_ref.dtype)


# ---------------------------------------------------------------------------
# Op wrappers
# ---------------------------------------------------------------------------
def _gemm(a, w, b, *, apply_relu, out_dtype, tm_cap=256):
    m, k = a.shape
    _, nc = w.shape
    tm = _pick_tile(m, tm_cap)
    kernel = functools.partial(_gemm_bias_act_kernel, apply_relu=apply_relu)
    return pl.pallas_call(
        kernel,
        out_shape=jax.ShapeDtypeStruct((m, nc), out_dtype),
        grid=(m // tm,),
        in_specs=[pl.BlockSpec((tm, k), lambda i: (i, 0)),
                  pl.BlockSpec((k, nc), lambda i: (0, 0)),
                  pl.BlockSpec((1, nc), lambda i: (0, 0))],
        out_specs=pl.BlockSpec((tm, nc), lambda i: (i, 0)),
        compiler_params=pltpu.CompilerParams(
            dimension_semantics=("parallel",),
            vmem_limit_bytes=VMEM_LIMIT),
    )(a, w, b)


def conv2d_gemm(x, w, bias, *, stride, padding, apply_relu):
    """Convolution as a single GEMM with KH*KW*Cin folded into K.
    x: (N,H,W,Cin_real) NHWC; w: (Cout,Cin,KH,KW) torch layout (BN folded).
    Returns (N, Ho, Wo, Cout_p) bf16 with Cout zero-padded to 128 lanes."""
    n = x.shape[0]
    cout, cin, kh, kw = w.shape
    assert x.shape[-1] == cin
    cols, ho, wo = _im2col(x, kh, kw, stride, padding)
    k = kh * kw * cin
    kp = _round_up(k, LANE)
    cout_p = _round_up(cout, LANE)

    a = _pad_axis(cols.reshape(n * ho * wo, k), kp, 1).astype(jnp.bfloat16)
    wr = jnp.transpose(w, (2, 3, 1, 0)).reshape(k, cout)
    wr = _pad_axis(_pad_axis(wr, kp, 0), cout_p, 1).astype(jnp.bfloat16)
    br = _pad_axis(bias.reshape(1, cout), cout_p, 1).astype(jnp.float32)

    out = _gemm(a, wr, br, apply_relu=apply_relu, out_dtype=jnp.bfloat16,
                tm_cap=256)
    return out.reshape(n, ho, wo, cout_p)


def basic_block(x, cin_real, blk):
    """Fused BasicBlock.  x: (N,H,W,Cin_p) bf16, padded channels are zero."""
    n, h, w, cin_p = x.shape
    assert cin_p == _round_up(cin_real, LANE)
    stride = blk["stride"]
    w1, b1 = blk["conv1"]["w"], blk["conv1"]["bias"]
    w2, b2 = blk["conv2"]["w"], blk["conv2"]["bias"]
    cout = w1.shape[0]
    assert w1.shape[1] == cin_real
    cout_p = _round_up(cout, LANE)

    # conv1 im2col on the REAL channels only (K1 = 9*Cin, not 9*Cin_p).
    cols, ho, wo = _im2col(x[..., :cin_real], 3, 3, stride, 1)
    k1 = 9 * cin_real
    k1p = _round_up(k1, LANE)
    m = ho * wo
    xc1 = _pad_axis(cols.reshape(n, m, k1), k1p, 2).astype(jnp.bfloat16)

    # shortcut path input: strided subsample of x (identity when stride==1).
    xds = x[:, ::stride, ::stride, :].reshape(n, m, cin_p).astype(jnp.bfloat16)
    if "down" in blk:
        wd = blk["down"]["w"].reshape(cout, cin_real).T
        wd_r = _pad_axis(_pad_axis(wd, cin_p, 0), cout_p, 1).astype(jnp.bfloat16)
        bd_r = _pad_axis(blk["down"]["bias"].reshape(1, cout), cout_p,
                         1).astype(jnp.float32)
    else:
        assert cin_real == cout and stride == 1 and cin_p == cout_p
        wd_r = jnp.eye(cin_p, dtype=jnp.bfloat16)      # exact bf16 copy
        bd_r = jnp.zeros((1, cout_p), jnp.float32)

    w1_r = jnp.transpose(w1, (2, 3, 1, 0)).reshape(k1, cout)
    w1_r = _pad_axis(_pad_axis(w1_r, k1p, 0), cout_p, 1).astype(jnp.bfloat16)
    b1_r = _pad_axis(b1.reshape(1, cout), cout_p, 1).astype(jnp.float32)
    w2_r = jnp.transpose(w2, (2, 3, 1, 0)).reshape(9, cout, cout)
    w2_r = _pad_axis(_pad_axis(w2_r, cout_p, 1), cout_p, 2).astype(jnp.bfloat16)
    b2_r = _pad_axis(b2.reshape(1, cout), cout_p, 1).astype(jnp.float32)

    kernel = functools.partial(_block_kernel, ho=ho, wo=wo, cout_p=cout_p)

    out = pl.pallas_call(
        kernel,
        out_shape=jax.ShapeDtypeStruct((n, m, cout_p), jnp.bfloat16),
        grid=(n,),
        in_specs=[
            pl.BlockSpec((1, m, k1p), lambda i: (i, 0, 0)),        # conv1 im2col
            pl.BlockSpec((1, m, cin_p), lambda i: (i, 0, 0)),      # shortcut in
            pl.BlockSpec((k1p, cout_p), lambda i: (0, 0)),         # w1 (resident)
            pl.BlockSpec((1, cout_p), lambda i: (0, 0)),           # b1
            pl.BlockSpec((cin_p, cout_p), lambda i: (0, 0)),       # wd
            pl.BlockSpec((1, cout_p), lambda i: (0, 0)),           # bd
            pl.BlockSpec((9, cout_p, cout_p), lambda i: (0, 0, 0)),  # w2
            pl.BlockSpec((1, cout_p), lambda i: (0, 0)),           # b2
        ],
        out_specs=pl.BlockSpec((1, m, cout_p), lambda i: (i, 0, 0)),
        scratch_shapes=[pltpu.VMEM((ho + 2, wo + 2, cout_p), jnp.bfloat16)],
        compiler_params=pltpu.CompilerParams(
            dimension_semantics=("parallel",),
            vmem_limit_bytes=VMEM_LIMIT),
    )(xc1, xds, w1_r, b1_r, wd_r, bd_r, w2_r, b2_r)
    return out.reshape(n, ho, wo, cout_p), cout


def maxpool2d(x, *, ksize=3, stride=2, padding=1):
    n, h, w, c = x.shape
    ho = (h + 2 * padding - ksize) // stride + 1
    wo = (w + 2 * padding - ksize) // stride + 1
    # Zero padding is exact: the input is post-ReLU (>= 0) and every window
    # contains at least one real pixel.
    xp = jnp.pad(x, ((0, 0), (padding, padding), (padding, padding), (0, 0)))
    x_ph = _phase_decompose(xp, stride)
    hph, wph = x_ph.shape[1], x_ph.shape[2]
    # static bounds check for the in-kernel tap slices (Pallas does not
    # bounds-check VMEM reads).
    assert ho + (ksize - 1) // stride <= hph
    assert wo + (ksize - 1) // stride <= wph

    th = 8 if ho % 8 == 0 else ho
    taps = [(kh, kw) for kh in range(ksize) for kw in range(ksize)]
    kernel = functools.partial(_maxpool_kernel, taps=taps, stride=stride,
                               th=th, wo=wo, n_imgs=n)
    return pl.pallas_call(
        kernel,
        out_shape=jax.ShapeDtypeStruct((n, ho, wo, c), x.dtype),
        grid=(n, ho // th),
        in_specs=[pl.BlockSpec(x_ph.shape, lambda i, t: (0, 0, 0, 0))],
        out_specs=pl.BlockSpec((1, th, wo, c), lambda i, t: (i, t, 0, 0)),
        compiler_params=pltpu.CompilerParams(
            dimension_semantics=("parallel", "parallel"),
            vmem_limit_bytes=VMEM_LIMIT),
    )(x_ph)


def linear(a, fc_w, fc_b):
    """(M, K) @ (K, ncls) + bias; K and ncls are lane-padded so the MXU feed
    and the output store are unmasked; padding is sliced off afterwards."""
    m, k = a.shape
    ncls = fc_w.shape[0]
    kp = _round_up(k, LANE)
    ncls_p = _round_up(ncls, LANE)
    a_p = _pad_axis(a, kp, 1).astype(jnp.bfloat16)
    w_p = _pad_axis(_pad_axis(fc_w.T, kp, 0), ncls_p, 1).astype(jnp.bfloat16)
    b_p = _pad_axis(fc_b.reshape(1, ncls), ncls_p, 1).astype(jnp.float32)
    out = _gemm(a_p, w_p, b_p, apply_relu=False, out_dtype=jnp.float32,
                tm_cap=64)
    return out[:, :ncls]


# ---------------------------------------------------------------------------
# Parameter construction (deterministic, mirrors the reference _build_modules)
# ---------------------------------------------------------------------------
def _conv_bn_params(key, cin, cout, k):
    fan_in = cin * k * k
    std = (2.0 / fan_in) ** 0.5  # kaiming_normal_, fan_in, relu
    w = jax.random.normal(key, (cout, cin, k, k), jnp.float32) * std
    # Eval-mode BN (gamma=1, beta=0, running_mean=0, running_var=1):
    # scale = 1/sqrt(1+eps) folded into the conv weight; remaining bias is 0.
    w = w * (1.0 / jnp.sqrt(jnp.float32(1.0 + BN_EPS)))
    bias = jnp.zeros((cout,), jnp.float32)
    return {"w": w, "bias": bias}


def build_params(key, *, num_filters, num_blocks, num_classes):
    keys = iter(jax.random.split(key, 128))
    params = {"stem": _conv_bn_params(next(keys), 3, 64, 7)}
    in_planes = 64
    filters = list(num_filters)
    stages = []
    for i, nb in enumerate(num_blocks):
        stage_stride = 1 if i == 0 else 2
        planes = [in_planes] + filters
        blocks = []
        for j in range(nb):
            s = stage_stride if j == 0 else 1
            cin, cout = planes[0], planes[-1]
            blk = {
                "conv1": _conv_bn_params(next(keys), cin, cout, 3),
                "conv2": _conv_bn_params(next(keys), cout, cout, 3),
                "stride": s,
            }
            if s != 1 or cin != cout:
                blk["down"] = _conv_bn_params(next(keys), cin, cout, 1)
            blocks.append(blk)
            planes[0] = planes[-1]
        stages.append(blocks)
        in_planes = filters[-1]
        filters = [2 * f for f in filters]
    params["stages"] = stages
    out_planes = in_planes
    bound = 1.0 / (out_planes ** 0.5)  # PyTorch Linear default init range
    k1, k2 = jax.random.split(next(keys))
    params["fc_w"] = jax.random.uniform(k1, (num_classes, out_planes),
                                        jnp.float32, -bound, bound)
    params["fc_b"] = jax.random.uniform(k2, (num_classes,), jnp.float32,
                                        -bound, bound)
    return params, out_planes


# ---------------------------------------------------------------------------
# Forward pass
# ---------------------------------------------------------------------------
def resnet_forward(params, x_nchw):
    x = jnp.transpose(x_nchw, (0, 2, 3, 1)).astype(jnp.float32)   # NCHW->NHWC

    # stem: Conv2dBn(3,64,7,2,p=3) as one folded-K GEMM + ReLU, then MaxPool.
    s = params["stem"]
    x = conv2d_gemm(x, s["w"], s["bias"], stride=2, padding=3, apply_relu=True)
    x = maxpool2d(x, ksize=3, stride=2, padding=1)
    cin_real = s["w"].shape[0]                                     # 64

    # conv_modules: each BasicBlock is a single fused pallas_call.
    for blocks in params["stages"]:
        for blk in blocks:
            x, cin_real = basic_block(x, cin_real, blk)

    # classifier: Linear applied to the NCHW tensor's last (W) axis — exactly
    # as the reference forward does (self.pool is never used).
    fc_w = params["fc_w"]
    out_planes = fc_w.shape[1]
    assert cin_real == out_planes
    xr = x[..., :out_planes]                     # drop lane padding (all-zero)
    feat = jnp.transpose(xr, (0, 3, 1, 2))       # (N, C, H, W)
    n, c, h, w = feat.shape
    assert w == out_planes, "reference forward requires final W == out_planes"
    out = linear(feat.reshape(n * c * h, w), fc_w, params["fc_b"])
    return out.reshape(n, c, h, fc_w.shape[0])


# ---------------------------------------------------------------------------
if __name__ == "__main__":
    key = jax.random.PRNGKey(0)
    pkey, xkey = jax.random.split(key)

    num_classes = 10
    # Small config: one stage, one BasicBlock(64 -> 8, stride 1).
    params, out_planes = build_params(pkey, num_filters=[8], num_blocks=[1],
                                      num_classes=num_classes)

    x = jax.random.normal(xkey, (2, 3, 32, 32), jnp.float32)  # NCHW like torch

    fwd = jax.jit(lambda inp: resnet_forward(params, inp))
    out = fwd(x)
    jax.block_until_ready(out)

    # stem: 32 -> 16 -> 8; block keeps 8x8 with 8 channels; Linear over W axis.
    assert out.shape == (2, 8, 8, num_classes), out.shape
    assert jnp.all(jnp.isfinite(out))
    print("KERNEL_OK")
</pallas_src>

<mosaic_0001>
module attributes {stable_mosaic.version = 11 : i64} {
  func.func @_gemm_bias_act_kernel(%arg0: i32, %arg1: memref<256x256xbf16, #tpu.memory_space<vmem>>, %arg2: memref<256x128xbf16, #tpu.memory_space<vmem>>, %arg3: memref<1x128xf32, #tpu.memory_space<vmem>>, %arg4: memref<256x128xbf16, #tpu.memory_space<vmem>>) attributes {dimension_semantics = [#tpu.dimension_semantics<parallel>], iteration_bounds = array<i64: 2>, scalar_prefetch = 0 : i64, scratch_operands = 0 : i64, tpu.core_type = #tpu.core_type<tc>, window_params = [{transform_indices = @transform_0, window_bounds = array<i64: 256, 256>}, {pipeline_mode = #tpu.pipeline_mode<synchronous>, transform_indices = @transform_1, window_bounds = array<i64: 256, 128>}, {pipeline_mode = #tpu.pipeline_mode<synchronous>, transform_indices = @transform_2, window_bounds = array<i64: 1, 128>}, {transform_indices = @transform_3, window_bounds = array<i64: 256, 128>}]} {
    %c0 = arith.constant 0 : index
    %c0_0 = arith.constant 0 : index
    %0 = vector.load %arg1[%c0, %c0_0] : memref<256x256xbf16, #tpu.memory_space<vmem>>, vector<256x256xbf16>
    %c0_1 = arith.constant 0 : index
    %c0_2 = arith.constant 0 : index
    %1 = vector.load %arg2[%c0_1, %c0_2] : memref<256x128xbf16, #tpu.memory_space<vmem>>, vector<256x128xbf16>
    %cst = arith.constant dense<0.000000e+00> : vector<256x128xf32>
    %2 = tpu.matmul %0, %1, %cst {dimension_numbers = #tpu.dot_dimension_numbers<[1], [0], [0], [1], [0, 0, 1, 1], [], []>} : vector<256x256xbf16>, vector<256x128xbf16>, vector<256x128xf32> -> vector<256x128xf32>
    %c0_3 = arith.constant 0 : index
    %c0_4 = arith.constant 0 : index
    %3 = vector.load %arg3[%c0_3, %c0_4] : memref<1x128xf32, #tpu.memory_space<vmem>>, vector<1x128xf32>
    %4 = vector.broadcast %3 : vector<1x128xf32> to vector<256x128xf32>
    %5 = arith.addf %2, %4 : vector<256x128xf32>
    %cst_5 = arith.constant 0.000000e+00 : f32
    %6 = vector.broadcast %cst_5 : f32 to vector<256x128xf32>
    %7 = arith.maximumf %5, %6 : vector<256x128xf32>
    %8 = arith.truncf %7 : vector<256x128xf32> to vector<256x128xbf16>
    %c0_6 = arith.constant 0 : index
    %c0_7 = arith.constant 0 : index
    %9 = vector.load %arg4[%c0_6, %c0_7] : memref<256x128xbf16, #tpu.memory_space<vmem>>, vector<256x128xbf16>
    tpu.vector_store %arg4[%c0_6, %c0_7], %8 {strides = array<i32>} : memref<256x128xbf16, #tpu.memory_space<vmem>>, vector<256x128xbf16>,
    return
  }
  func.func @transform_0(%arg0: i32) -> (i32, i32) {
    %c0_i32 = arith.constant 0 : i32
    %c0_i32_0 = arith.constant 0 : i32
    return %arg0, %c0_i32 : i32, i32
  }
  func.func @transform_1(%arg0: i32) -> (i32, i32) {
    %c0_i32 = arith.constant 0 : i32
    %c0_i32_0 = arith.constant 0 : i32
    %c0_i32_1 = arith.constant 0 : i32
    return %c0_i32, %c0_i32_0 : i32, i32
  }
  func.func @transform_2(%arg0: i32) -> (i32, i32) {
    %c0_i32 = arith.constant 0 : i32
    %c0_i32_0 = arith.constant 0 : i32
    %c0_i32_1 = arith.constant 0 : i32
    return %c0_i32, %c0_i32_0 : i32, i32
  }
  func.func @transform_3(%arg0: i32) -> (i32, i32) {
    %c0_i32 = arith.constant 0 : i32
    %c0_i32_0 = arith.constant 0 : i32
    return %arg0, %c0_i32 : i32, i32
  }
}

module attributes {stable_mosaic.version = 11 : i64} {
  func.func @_maxpool_kernel(%arg0: i32, %arg1: i32, %arg2: memref<8x9x9x128xbf16, #tpu.memory_space<vmem>>, %arg3: memref<1x8x8x128xbf16, #tpu.memory_space<vmem>>) attributes {dimension_semantics = [#tpu.dimension_semantics<parallel>, #tpu.dimension_semantics<parallel>], iteration_bounds = array<i64: 2, 1>, scalar_prefetch = 0 : i64, scratch_operands = 0 : i64, tpu.core_type = #tpu.core_type<tc>, window_params = [{pipeline_mode = #tpu.pipeline_mode<synchronous>, transform_indices = @transform_0, window_bounds = array<i64: 8, 9, 9, 128>}, {transform_indices = @transform_1, window_bounds = array<i64: 1, 8, 8, 128>}]} {
    %c8_i32 = arith.constant 8 : i32
    %0 = arith.muli %arg1, %c8_i32 : i32
    %1 = tpu.assume_multiple %0, 8 : i32
    %c0_i32 = arith.constant 0 : i32
    %2 = arith.addi %1, %c0_i32 : i32
    %c0_i32_0 = arith.constant 0 : i32
    %3 = arith.addi %c0_i32_0, %arg0 : i32
    %4 = arith.index_cast %3 : i32 to index
    %5 = arith.index_cast %2 : i32 to index
    %c0 = arith.constant 0 : index
    %c0_1 = arith.constant 0 : index
    %6 = vector.load %arg2[%4, %5, %c0, %c0_1] : memref<8x9x9x128xbf16, #tpu.memory_space<vmem>>, vector<1x8x8x128xbf16>
    %7 = vector.shape_cast %6 : vector<1x8x8x128xbf16> to vector<8x8x128xbf16>
    %c0_i32_2 = arith.constant 0 : i32
    %8 = arith.addi %1, %c0_i32_2 : i32
    %c2_i32 = arith.constant 2 : i32
    %9 = arith.addi %c2_i32, %arg0 : i32
    %10 = arith.index_cast %9 : i32 to index
    %11 = arith.index_cast %8 : i32 to index
    %c0_3 = arith.constant 0 : index
    %c0_4 = arith.constant 0 : index
    %12 = vector.load %arg2[%10, %11, %c0_3, %c0_4] : memref<8x9x9x128xbf16, #tpu.memory_space<vmem>>, vector<1x8x8x128xbf16>
    %13 = vector.shape_cast %12 : vector<1x8x8x128xbf16> to vector<8x8x128xbf16>
    %14 = arith.maximumf %7, %13 : vector<8x8x128xbf16>
    %c0_i32_5 = arith.constant 0 : i32
    %15 = arith.addi %1, %c0_i32_5 : i32
    %c0_i32_6 = arith.constant 0 : i32
    %16 = arith.addi %c0_i32_6, %arg0 : i32
    %17 = arith.index_cast %16 : i32 to index
    %18 = arith.index_cast %15 : i32 to index
    %c1 = arith.constant 1 : index
    %c0_7 = arith.constant 0 : index
    %19 = vector.load %arg2[%17, %18, %c1, %c0_7] : memref<8x9x9x128xbf16, #tpu.memory_space<vmem>>, vector<1x8x8x128xbf16>
    %20 = vector.shape_cast %19 : vector<1x8x8x128xbf16> to vector<8x8x128xbf16>
    %21 = arith.maximumf %14, %20 : vector<8x8x128xbf16>
    %c0_i32_8 = arith.constant 0 : i32
    %22 = arith.addi %1, %c0_i32_8 : i32
    %c4_i32 = arith.constant 4 : i32
    %23 = arith.addi %c4_i32, %arg0 : i32
    %24 = arith.index_cast %23 : i32 to index
    %25 = arith.index_cast %22 : i32 to index
    %c0_9 = arith.constant 0 : index
    %c0_10 = arith.constant 0 : index
    %26 = vector.load %arg2[%24, %25, %c0_9, %c0_10] : memref<8x9x9x128xbf16, #tpu.memory_space<vmem>>, vector<1x8x8x128xbf16>
    %27 = vector.shape_cast %26 : vector<1x8x8x128xbf16> to vector<8x8x128xbf16>
    %28 = arith.maximumf %21, %27 : vector<8x8x128xbf16>
    %c0_i32_11 = arith.constant 0 : i32
    %29 = arith.addi %1, %c0_i32_11 : i32
    %c6_i32 = arith.constant 6 : i32
    %30 = arith.addi %c6_i32, %arg0 : i32
    %31 = arith.index_cast %30 : i32 to index
    %32 = arith.index_cast %29 : i32 to index
    %c0_12 = arith.constant 0 : index
    %c0_13 = arith.constant 0 : index
    %33 = vector.load %arg2[%31, %32, %c0_12, %c0_13] : memref<8x9x9x128xbf16, #tpu.memory_space<vmem>>, vector<1x8x8x128xbf16>
    %34 = vector.shape_cast %33 : vector<1x8x8x128xbf16> to vector<8x8x128xbf16>
    %35 = arith.maximumf %28, %34 : vector<8x8x128xbf16>
    %c0_i32_14 = arith.constant 0 : i32
    %36 = arith.addi %1, %c0_i32_14 : i32
    %c4_i32_15 = arith.constant 4 : i32
    %37 = arith.addi %c4_i32_15, %arg0 : i32
    %38 = arith.index_cast %37 : i32 to index
    %39 = arith.index_cast %36 : i32 to index
    %c1_16 = arith.constant 1 : index
    %c0_17 = arith.constant 0 : index
    %40 = vector.load %arg2[%38, %39, %c1_16, %c0_17] : memref<8x9x9x128xbf16, #tpu.memory_space<vmem>>, vector<1x8x8x128xbf16>
    %41 = vector.shape_cast %40 : vector<1x8x8x128xbf16> to vector<8x8x128xbf16>
    %42 = arith.maximumf %35, %41 : vector<8x8x128xbf16>
    %c1_i32 = arith.constant 1 : i32
    %43 = arith.addi %1, %c1_i32 : i32
    %c0_i32_18 = arith.constant 0 : i32
    %44 = arith.addi %c0_i32_18, %arg0 : i32
    %45 = arith.index_cast %44 : i32 to index
    %46 = arith.index_cast %43 : i32 to index
    %c0_19 = arith.constant 0 : index
    %c0_20 = arith.constant 0 : index
    %47 = vector.load %arg2[%45, %46, %c0_19, %c0_20] : memref<8x9x9x128xbf16, #tpu.memory_space<vmem>>, vector<1x8x8x128xbf16>
    %48 = vector.shape_cast %47 : vector<1x8x8x128xbf16> to vector<8x8x128xbf16>
    %49 = arith.maximumf %42, %48 : vector<8x8x128xbf16>
    %c1_i32_21 = arith.constant 1 : i32
    %50 = arith.addi %1, %c1_i32_21 : i32
    %c2_i32_22 = arith.constant 2 : i32
    %51 = arith.addi %c2_i32_22, %arg0 : i32
    %52 = arith.index_cast %51 : i32 to index
    %53 = arith.index_cast %50 : i32 to index
    %c0_23 = arith.constant 0 : index
    %c0_24 = arith.constant 0 : index
    %54 = vector.load %arg2[%52, %53, %c0_23, %c0_24] : memref<8x9x9x128xbf16, #tpu.memory_space<vmem>>, vector<1x8x8x128xbf16>
    %55 = vector.shape_cast %54 : vector<1x8x8x128xbf16> to vector<8x8x128xbf16>
    %56 = arith.maximumf %49, %55 : vector<8x8x128xbf16>
    %c1_i32_25 = arith.constant 1 : i32
    %57 = arith.addi %1, %c1_i32_25 : i32
    %c0_i32_26 = arith.constant 0 : i32
    %58 = arith.addi %c0_i32_26, %arg0 : i32
    %59 = arith.index_cast %58 : i32 to index
    %60 = arith.index_cast %57 : i32 to index
    %c1_27 = arith.constant 1 : index
    %c0_28 = arith.constant 0 : index
    %61 = vector.load %arg2[%59, %60, %c1_27, %c0_28] : memref<8x9x9x128xbf16, #tpu.memory_space<vmem>>, vector<1x8x8x128xbf16>
    %62 = vector.shape_cast %61 : vector<1x8x8x128xbf16> to vector<8x8x128xbf16>
    %63 = arith.maximumf %56, %62 : vector<8x8x128xbf16>
    %64 = vector.shape_cast %63 : vector<8x8x128xbf16> to vector<1x8x8x128xbf16>
    %c0_29 = arith.constant 0 : index
    %c0_30 = arith.constant 0 : index
    %c0_31 = arith.constant 0 : index
    %c0_32 = arith.constant 0 : index
    %65 = vector.load %arg3[%c0_29, %c0_30, %c0_31, %c0_32] : memref<1x8x8x128xbf16, #tpu.memory_space<vmem>>, vector<1x8x8x128xbf16>
    tpu.vector_store %arg3[%c0_29, %c0_30, %c0_31, %c0_32], %64 {strides = array<i32>} : memref<1x8x8x128xbf16, #tpu.memory_space<vmem>>, vector<1x8x8x128xbf16>,
    return
  }
  func.func @transform_0(%arg0: i32, %arg1: i32) -> (i32, i32, i32, i32) {
    %c0_i32 = arith.constant 0 : i32
    %c0_i32_0 = arith.constant 0 : i32
    %c0_i32_1 = arith.constant 0 : i32
    %c0_i32_2 = arith.constant 0 : i32
    %c0_i32_3 = arith.constant 0 : i32
    return %c0_i32, %c0_i32_0, %c0_i32_1, %c0_i32_2 : i32, i32, i32, i32
  }
  func.func @transform_1(%arg0: i32, %arg1: i32) -> (i32, i32, i32, i32) {
    %c0_i32 = arith.constant 0 : i32
    %c0_i32_0 = arith.constant 0 : i32
    %c0_i32_1 = arith.constant 0 : i32
    return %arg0, %arg1, %c0_i32, %c0_i32_0 : i32, i32, i32, i32
  }
}

module attributes {stable_mosaic.version = 11 : i64} {
  func.func @_block_kernel(%arg0: i32, %arg1: memref<1x64x640xbf16, #tpu.memory_space<vmem>>, %arg2: memref<1x64x128xbf16, #tpu.memory_space<vmem>>, %arg3: memref<640x128xbf16, #tpu.memory_space<vmem>>, %arg4: memref<1x128xf32, #tpu.memory_space<vmem>>, %arg5: memref<128x128xbf16, #tpu.memory_space<vmem>>, %arg6: memref<1x128xf32, #tpu.memory_space<vmem>>, %arg7: memref<9x128x128xbf16, #tpu.memory_space<vmem>>, %arg8: memref<1x128xf32, #tpu.memory_space<vmem>>, %arg9: memref<1x64x128xbf16, #tpu.memory_space<vmem>>, %arg10: memref<10x10x128xbf16, #tpu.memory_space<vmem>>) attributes {dimension_semantics = [#tpu.dimension_semantics<parallel>], iteration_bounds = array<i64: 2>, scalar_prefetch = 0 : i64, scratch_operands = 1 : i64, tpu.core_type = #tpu.core_type<tc>, window_params = [{transform_indices = @transform_0, window_bounds = array<i64: 1, 64, 640>}, {transform_indices = @transform_1, window_bounds = array<i64: 1, 64, 128>}, {pipeline_mode = #tpu.pipeline_mode<synchronous>, transform_indices = @transform_2, window_bounds = array<i64: 640, 128>}, {pipeline_mode = #tpu.pipeline_mode<synchronous>, transform_indices = @transform_3, window_bounds = array<i64: 1, 128>}, {pipeline_mode = #tpu.pipeline_mode<synchronous>, transform_indices = @transform_4, window_bounds = array<i64: 128, 128>}, {pipeline_mode = #tpu.pipeline_mode<synchronous>, transform_indices = @transform_5, window_bounds = array<i64: 1, 128>}, {pipeline_mode = #tpu.pipeline_mode<synchronous>, transform_indices = @transform_6, window_bounds = array<i64: 9, 128, 128>}, {pipeline_mode = #tpu.pipeline_mode<synchronous>, transform_indices = @transform_7, window_bounds = array<i64: 1, 128>}, {transform_indices = @transform_8, window_bounds = array<i64: 1, 64, 128>}]} {
    %c0 = arith.constant 0 : index
    %c0_0 = arith.constant 0 : index
    %c0_1 = arith.constant 0 : index
    %0 = vector.load %arg2[%c0, %c0_0, %c0_1] : memref<1x64x128xbf16, #tpu.memory_space<vmem>>, vector<1x64x128xbf16>
    %1 = vector.shape_cast %0 : vector<1x64x128xbf16> to vector<64x128xbf16>
    %c0_2 = arith.constant 0 : index
    %c0_3 = arith.constant 0 : index
    %2 = vector.load %arg5[%c0_2, %c0_3] : memref<128x128xbf16, #tpu.memory_space<vmem>>, vector<128x128xbf16>
    %cst = arith.constant dense<0.000000e+00> : vector<64x128xf32>
    %3 = tpu.matmul %1, %2, %cst {dimension_numbers = #tpu.dot_dimension_numbers<[1], [0], [0], [1], [0, 0, 1, 1], [], []>} : vector<64x128xbf16>, vector<128x128xbf16>, vector<64x128xf32> -> vector<64x128xf32>
    %c0_4 = arith.constant 0 : index
    %c0_5 = arith.constant 0 : index
    %4 = vector.load %arg6[%c0_4, %c0_5] : memref<1x128xf32, #tpu.memory_space<vmem>>, vector<1x128xf32>
    %5 = vector.broadcast %4 : vector<1x128xf32> to vector<64x128xf32>
    %6 = arith.addf %3, %5 : vector<64x128xf32>
    %c0_6 = arith.constant 0 : index
    %c0_7 = arith.constant 0 : index
    %c0_8 = arith.constant 0 : index
    %7 = vector.load %arg1[%c0_6, %c0_7, %c0_8] : memref<1x64x640xbf16, #tpu.memory_space<vmem>>, vector<1x64x640xbf16>
    %8 = vector.shape_cast %7 : vector<1x64x640xbf16> to vector<64x640xbf16>
    %c0_9 = arith.constant 0 : index
    %c0_10 = arith.constant 0 : index
    %9 = vector.load %arg3[%c0_9, %c0_10] : memref<640x128xbf16, #tpu.memory_space<vmem>>, vector<640x128xbf16>
    %cst_11 = arith.constant dense<0.000000e+00> : vector<64x128xf32>
    %10 = tpu.matmul %8, %9, %cst_11 {dimension_numbers = #tpu.dot_dimension_numbers<[1], [0], [0], [1], [0, 0, 1, 1], [], []>} : vector<64x640xbf16>, vector<640x128xbf16>, vector<64x128xf32> -> vector<64x128xf32>
    %c0_12 = arith.constant 0 : index
    %c0_13 = arith.constant 0 : index
    %11 = vector.load %arg4[%c0_12, %c0_13] : memref<1x128xf32, #tpu.memory_space<vmem>>, vector<1x128xf32>
    %12 = vector.broadcast %11 : vector<1x128xf32> to vector<64x128xf32>
    %13 = arith.addf %10, %12 : vector<64x128xf32>
    %cst_14 = arith.constant 0.000000e+00 : f32
    %14 = vector.broadcast %cst_14 : f32 to vector<64x128xf32>
    %15 = arith.maximumf %13, %14 : vector<64x128xf32>
    %cst_15 = arith.constant 0.000000e+00 : bf16
    %16 = vector.broadcast %cst_15 : bf16 to vector<10x10x128xbf16>
    %c0_16 = arith.constant 0 : index
    %c0_17 = arith.constant 0 : index
    %c0_18 = arith.constant 0 : index
    %17 = vector.load %arg10[%c0_16, %c0_17, %c0_18] : memref<10x10x128xbf16, #tpu.memory_space<vmem>>, vector<10x10x128xbf16>
    tpu.vector_store %arg10[%c0_16, %c0_17, %c0_18], %16 {strides = array<i32>} : memref<10x10x128xbf16, #tpu.memory_space<vmem>>, vector<10x10x128xbf16>,
    %18 = arith.truncf %15 : vector<64x128xf32> to vector<64x128xbf16>
    %19 = vector.shape_cast %18 : vector<64x128xbf16> to vector<8x8x128xbf16>
    %c1 = arith.constant 1 : index
    %c1_19 = arith.constant 1 : index
    %c0_20 = arith.constant 0 : index
    %20 = vector.load %arg10[%c1, %c1_19, %c0_20] : memref<10x10x128xbf16, #tpu.memory_space<vmem>>, vector<8x8x128xbf16>
    tpu.vector_store %arg10[%c1, %c1_19, %c0_20], %19 {strides = array<i32>} : memref<10x10x128xbf16, #tpu.memory_space<vmem>>, vector<8x8x128xbf16>,
    %c0_21 = arith.constant 0 : index
    %c0_22 = arith.constant 0 : index
    %21 = vector.load %arg8[%c0_21, %c0_22] : memref<1x128xf32, #tpu.memory_space<vmem>>, vector<1x128xf32>
    %22 = vector.broadcast %21 : vector<1x128xf32> to vector<64x128xf32>
    %23 = arith.addf %6, %22 : vector<64x128xf32>
    %c0_23 = arith.constant 0 : index
    %c0_24 = arith.constant 0 : index
    %c0_25 = arith.constant 0 : index
    %24 = vector.load %arg10[%c0_23, %c0_24, %c0_25] : memref<10x10x128xbf16, #tpu.memory_space<vmem>>, vector<8x8x128xbf16>
    %25 = vector.shape_cast %24 : vector<8x8x128xbf16> to vector<64x128xbf16>
    %c0_26 = arith.constant 0 : index
    %c0_27 = arith.constant 0 : index
    %c0_28 = arith.constant 0 : index
    %26 = vector.load %arg7[%c0_26, %c0_27, %c0_28] : memref<9x128x128xbf16, #tpu.memory_space<vmem>>, vector<1x128x128xbf16>
    %27 = vector.shape_cast %26 : vector<1x128x128xbf16> to vector<128x128xbf16>
    %cst_29 = arith.constant dense<0.000000e+00> : vector<64x128xf32>
    %28 = tpu.matmul %25, %27, %cst_29 {dimension_numbers = #tpu.dot_dimension_numbers<[1], [0], [0], [1], [0, 0, 1, 1], [], []>} : vector<64x128xbf16>, vector<128x128xbf16>, vector<64x128xf32> -> vector<64x128xf32>
    %29 = arith.addf %23, %28 : vector<64x128xf32>
    %c0_30 = arith.constant 0 : index
    %c1_31 = arith.constant 1 : index
    %c0_32 = arith.constant 0 : index
    %30 = vector.load %arg10[%c0_30, %c1_31, %c0_32] : memref<10x10x128xbf16, #tpu.memory_space<vmem>>, vector<8x8x128xbf16>
    %31 = vector.shape_cast %30 : vector<8x8x128xbf16> to vector<64x128xbf16>
    %c1_33 = arith.constant 1 : index
    %c0_34 = arith.constant 0 : index
    %c0_35 = arith.constant 0 : index
    %32 = vector.load %arg7[%c1_33, %c0_34, %c0_35] : memref<9x128x128xbf16, #tpu.memory_space<vmem>>, vector<1x128x128xbf16>
    %33 = vector.shape_cast %32 : vector<1x128x128xbf16> to vector<128x128xbf16>
    %cst_36 = arith.constant dense<0.000000e+00> : vector<64x128xf32>
    %34 = tpu.matmul %31, %33, %cst_36 {dimension_numbers = #tpu.dot_dimension_numbers<[1], [0], [0], [1], [0, 0, 1, 1], [], []>} : vector<64x128xbf16>, vector<128x128xbf16>, vector<64x128xf32> -> vector<64x128xf32>
    %35 = arith.addf %29, %34 : vector<64x128xf32>
    %c0_37 = arith.constant 0 : index
    %c2 = arith.constant 2 : index
    %c0_38 = arith.constant 0 : index
    %36 = vector.load %arg10[%c0_37, %c2, %c0_38] : memref<10x10x128xbf16, #tpu.memory_space<vmem>>, vector<8x8x128xbf16>
    %37 = vector.shape_cast %36 : vector<8x8x128xbf16> to vector<64x128xbf16>
    %c2_39 = arith.constant 2 : index
    %c0_40 = arith.constant 0 : index
    %c0_41 = arith.constant 0 : index
    %38 = vector.load %arg7[%c2_39, %c0_40, %c0_41] : memref<9x128x128xbf16, #tpu.memory_space<vmem>>, vector<1x128x128xbf16>
    %39 = vector.shape_cast %38 : vector<1x128x128xbf16> to vector<128x128xbf16>
    %cst_42 = arith.constant dense<0.000000e+00> : vector<64x128xf32>
    %40 = tpu.matmul %37, %39, %cst_42 {dimension_numbers = #tpu.dot_dimension_numbers<[1], [0], [0], [1], [0, 0, 1, 1], [], []>} : vector<64x128xbf16>, vector<128x128xbf16>, vector<64x128xf32> -> vector<64x128xf32>
    %41 = arith.addf %35, %40 : vector<64x128xf32>
    %c1_43 = arith.constant 1 : index
    %c0_44 = arith.constant 0 : index
    %c0_45 = arith.constant 0 : index
    %42 = vector.load %arg10[%c1_43, %c0_44, %c0_45] : memref<10x10x128xbf16, #tpu.memory_space<vmem>>, vector<8x8x128xbf16>
    %43 = vector.shape_cast %42 : vector<8x8x128xbf16> to vector<64x128xbf16>
    %c3 = arith.constant 3 : index
    %c0_46 = arith.constant 0 : index
    %c0_47 = arith.constant 0 : index
    %44 = vector.load %arg7[%c3, %c0_46, %c0_47] : memref<9x128x128xbf16, #tpu.memory_space<vmem>>, vector<1x128x128xbf16>
    %45 = vector.shape_cast %44 : vector<1x128x128xbf16> to vector<128x128xbf16>
    %cst_48 = arith.constant dense<0.000000e+00> : vector<64x128xf32>
    %46 = tpu.matmul %43, %45, %cst_48 {dimension_numbers = #tpu.dot_dimension_numbers<[1], [0], [0], [1], [0, 0, 1, 1], [], []>} : vector<64x128xbf16>, vector<128x128xbf16>, vector<64x128xf32> -> vector<64x128xf32>
    %47 = arith.addf %41, %46 : vector<64x128xf32>
    %c1_49 = arith.constant 1 : index
    %c1_50 = arith.constant 1 : index
    %c0_51 = arith.constant 0 : index
    %48 = vector.load %arg10[%c1_49, %c1_50, %c0_51] : memref<10x10x128xbf16, #tpu.memory_space<vmem>>, vector<8x8x128xbf16>
    %49 = vector.shape_cast %48 : vector<8x8x128xbf16> to vector<64x128xbf16>
    %c4 = arith.constant 4 : index
    %c0_52 = arith.constant 0 : index
    %c0_53 = arith.constant 0 : index
    %50 = vector.load %arg7[%c4, %c0_52, %c0_53] : memref<9x128x128xbf16, #tpu.memory_space<vmem>>, vector<1x128x128xbf16>
    %51 = vector.shape_cast %50 : vector<1x128x128xbf16> to vector<128x128xbf16>
    %cst_54 = arith.constant dense<0.000000e+00> : vector<64x128xf32>
    %52 = tpu.matmul %49, %51, %cst_54 {dimension_numbers = #tpu.dot_dimension_numbers<[1], [0], [0], [1], [0, 0, 1, 1], [], []>} : vector<64x128xbf16>, vector<128x128xbf16>, vector<64x128xf32> -> vector<64x128xf32>
    %53 = arith.addf %47, %52 : vector<64x128xf32>
    %c1_55 = arith.constant 1 : index
    %c2_56 = arith.constant 2 : index
    %c0_57 = arith.constant 0 : index
    %54 = vector.load %arg10[%c1_55, %c2_56, %c0_57] : memref<10x10x128xbf16, #tpu.memory_space<vmem>>, vector<8x8x128xbf16>
    %55 = vector.shape_cast %54 : vector<8x8x128xbf16> to vector<64x128xbf16>
    %c5 = arith.constant 5 : index
    %c0_58 = arith.constant 0 : index
    %c0_59 = arith.constant 0 : index
    %56 = vector.load %arg7[%c5, %c0_58, %c0_59] : memref<9x128x128xbf16, #tpu.memory_space<vmem>>, vector<1x128x128xbf16>
    %57 = vector.shape_cast %56 : vector<1x128x128xbf16> to vector<128x128xbf16>
    %cst_60 = arith.constant dense<0.000000e+00> : vector<64x128xf32>
    %58 = tpu.matmul %55, %57, %cst_60 {dimension_numbers = #tpu.dot_dimension_numbers<[1], [0], [0], [1], [0, 0, 1, 1], [], []>} : vector<64x128xbf16>, vector<128x128xbf16>, vector<64x128xf32> -> vector<64x128xf32>
    %59 = arith.addf %53, %58 : vector<64x128xf32>
    %c2_61 = arith.constant 2 : index
    %c0_62 = arith.constant 0 : index
    %c0_63 = arith.constant 0 : index
    %60 = vector.load %arg10[%c2_61, %c0_62, %c0_63] : memref<10x10x128xbf16, #tpu.memory_space<vmem>>, vector<8x8x128xbf16>
    %61 = vector.shape_cast %60 : vector<8x8x128xbf16> to vector<64x128xbf16>
    %c6 = arith.constant 6 : index
    %c0_64 = arith.constant 0 : index
    %c0_65 = arith.constant 0 : index
    %62 = vector.load %arg7[%c6, %c0_64, %c0_65] : memref<9x128x128xbf16, #tpu.memory_space<vmem>>, vector<1x128x128xbf16>
    %63 = vector.shape_cast %62 : vector<1x128x128xbf16> to vector<128x128xbf16>
    %cst_66 = arith.constant dense<0.000000e+00> : vector<64x128xf32>
    %64 = tpu.matmul %61, %63, %cst_66 {dimension_numbers = #tpu.dot_dimension_numbers<[1], [0], [0], [1], [0, 0, 1, 1], [], []>} : vector<64x128xbf16>, vector<128x128xbf16>, vector<64x128xf32> -> vector<64x128xf32>
    %65 = arith.addf %59, %64 : vector<64x128xf32>
    %c2_67 = arith.constant 2 : index
    %c1_68 = arith.constant 1 : index
    %c0_69 = arith.constant 0 : index
    %66 = vector.load %arg10[%c2_67, %c1_68, %c0_69] : memref<10x10x128xbf16, #tpu.memory_space<vmem>>, vector<8x8x128xbf16>
    %67 = vector.shape_cast %66 : vector<8x8x128xbf16> to vector<64x128xbf16>
    %c7 = arith.constant 7 : index
    %c0_70 = arith.constant 0 : index
    %c0_71 = arith.constant 0 : index
    %68 = vector.load %arg7[%c7, %c0_70, %c0_71] : memref<9x128x128xbf16, #tpu.memory_space<vmem>>, vector<1x128x128xbf16>
    %69 = vector.shape_cast %68 : vector<1x128x128xbf16> to vector<128x128xbf16>
    %cst_72 = arith.constant dense<0.000000e+00> : vector<64x128xf32>
    %70 = tpu.matmul %67, %69, %cst_72 {dimension_numbers = #tpu.dot_dimension_numbers<[1], [0], [0], [1], [0, 0, 1, 1], [], []>} : vector<64x128xbf16>, vector<128x128xbf16>, vector<64x128xf32> -> vector<64x128xf32>
    %71 = arith.addf %65, %70 : vector<64x128xf32>
    %c2_73 = arith.constant 2 : index
    %c2_74 = arith.constant 2 : index
    %c0_75 = arith.constant 0 : index
    %72 = vector.load %arg10[%c2_73, %c2_74, %c0_75] : memref<10x10x128xbf16, #tpu.memory_space<vmem>>, vector<8x8x128xbf16>
    %73 = vector.shape_cast %72 : vector<8x8x128xbf16> to vector<64x128xbf16>
    %c8 = arith.constant 8 : index
    %c0_76 = arith.constant 0 : index
    %c0_77 = arith.constant 0 : index
    %74 = vector.load %arg7[%c8, %c0_76, %c0_77] : memref<9x128x128xbf16, #tpu.memory_space<vmem>>, vector<1x128x128xbf16>
    %75 = vector.shape_cast %74 : vector<1x128x128xbf16> to vector<128x128xbf16>
    %cst_78 = arith.constant dense<0.000000e+00> : vector<64x128xf32>
    %76 = tpu.matmul %73, %75, %cst_78 {dimension_numbers = #tpu.dot_dimension_numbers<[1], [0], [0], [1], [0, 0, 1, 1], [], []>} : vector<64x128xbf16>, vector<128x128xbf16>, vector<64x128xf32> -> vector<64x128xf32>
    %77 = arith.addf %71, %76 : vector<64x128xf32>
    %cst_79 = arith.constant 0.000000e+00 : f32
    %78 = vector.broadcast %cst_79 : f32 to vector<64x128xf32>
    %79 = arith.maximumf %77, %78 : vector<64x128xf32>
    %80 = arith.truncf %79 : vector<64x128xf32> to vector<64x128xbf16>
    %c0_80 = arith.constant 0 : index
    %c0_81 = arith.constant 0 : index
    %c0_82 = arith.constant 0 : index
    %81 = vector.load %arg9[%c0_80, %c0_81, %c0_82] : memref<1x64x128xbf16, #tpu.memory_space<vmem>>, vector<1x64x128xbf16>
    %82 = vector.shape_cast %81 : vector<1x64x128xbf16> to vector<64x128xbf16>
    %83 = vector.shape_cast %80 : vector<64x128xbf16> to vector<1x64x128xbf16>
    tpu.vector_store %arg9[%c0_80, %c0_81, %c0_82], %83 {strides = array<i32>} : memref<1x64x128xbf16, #tpu.memory_space<vmem>>, vector<1x64x128xbf16>,
    return
  }
  func.func @transform_0(%arg0: i32) -> (i32, i32, i32) {
    %c0_i32 = arith.constant 0 : i32
    %c0_i32_0 = arith.constant 0 : i32
    %c0_i32_1 = arith.constant 0 : i32
    return %arg0, %c0_i32, %c0_i32_0 : i32, i32, i32
  }
  func.func @transform_1(%arg0: i32) -> (i32, i32, i32) {
    %c0_i32 = arith.constant 0 : i32
    %c0_i32_0 = arith.constant 0 : i32
    %c0_i32_1 = arith.constant 0 : i32
    return %arg0, %c0_i32, %c0_i32_0 : i32, i32, i32
  }
  func.func @transform_2(%arg0: i32) -> (i32, i32) {
    %c0_i32 = arith.constant 0 : i32
    %c0_i32_0 = arith.constant 0 : i32
    %c0_i32_1 = arith.constant 0 : i32
    return %c0_i32, %c0_i32_0 : i32, i32
  }
  func.func @transform_3(%arg0: i32) -> (i32, i32) {
    %c0_i32 = arith.constant 0 : i32
    %c0_i32_0 = arith.constant 0 : i32
    %c0_i32_1 = arith.constant 0 : i32
    return %c0_i32, %c0_i32_0 : i32, i32
  }
  func.func @transform_4(%arg0: i32) -> (i32, i32) {
    %c0_i32 = arith.constant 0 : i32
    %c0_i32_0 = arith.constant 0 : i32
    %c0_i32_1 = arith.constant 0 : i32
    return %c0_i32, %c0_i32_0 : i32, i32
  }
  func.func @transform_5(%arg0: i32) -> (i32, i32) {
    %c0_i32 = arith.constant 0 : i32
    %c0_i32_0 = arith.constant 0 : i32
    %c0_i32_1 = arith.constant 0 : i32
    return %c0_i32, %c0_i32_0 : i32, i32
  }
  func.func @transform_6(%arg0: i32) -> (i32, i32, i32) {
    %c0_i32 = arith.constant 0 : i32
    %c0_i32_0 = arith.constant 0 : i32
    %c0_i32_1 = arith.constant 0 : i32
    %c0_i32_2 = arith.constant 0 : i32
    return %c0_i32, %c0_i32_0, %c0_i32_1 : i32, i32, i32
  }
  func.func @transform_7(%arg0: i32) -> (i32, i32) {
    %c0_i32 = arith.constant 0 : i32
    %c0_i32_0 = arith.constant 0 : i32
    %c0_i32_1 = arith.constant 0 : i32
    return %c0_i32, %c0_i32_0 : i32, i32
  }
  func.func @transform_8(%arg0: i32) -> (i32, i32, i32) {
    %c0_i32 = arith.constant 0 : i32
    %c0_i32_0 = arith.constant 0 : i32
    %c0_i32_1 = arith.constant 0 : i32
    return %arg0, %c0_i32, %c0_i32_0 : i32, i32, i32
  }
}

module attributes {stable_mosaic.version = 11 : i64} {
  func.func @_gemm_bias_act_kernel(%arg0: i32, %arg1: memref<64x128xbf16, #tpu.memory_space<vmem>>, %arg2: memref<128x128xbf16, #tpu.memory_space<vmem>>, %arg3: memref<1x128xf32, #tpu.memory_space<vmem>>, %arg4: memref<64x128xf32, #tpu.memory_space<vmem>>) attributes {dimension_semantics = [#tpu.dimension_semantics<parallel>], iteration_bounds = array<i64: 2>, scalar_prefetch = 0 : i64, scratch_operands = 0 : i64, tpu.core_type = #tpu.core_type<tc>, window_params = [{transform_indices = @transform_0, window_bounds = array<i64: 64, 128>}, {pipeline_mode = #tpu.pipeline_mode<synchronous>, transform_indices = @transform_1, window_bounds = array<i64: 128, 128>}, {pipeline_mode = #tpu.pipeline_mode<synchronous>, transform_indices = @transform_2, window_bounds = array<i64: 1, 128>}, {transform_indices = @transform_3, window_bounds = array<i64: 64, 128>}]} {
    %c0 = arith.constant 0 : index
    %c0_0 = arith.constant 0 : index
    %0 = vector.load %arg1[%c0, %c0_0] : memref<64x128xbf16, #tpu.memory_space<vmem>>, vector<64x128xbf16>
    %c0_1 = arith.constant 0 : index
    %c0_2 = arith.constant 0 : index
    %1 = vector.load %arg2[%c0_1, %c0_2] : memref<128x128xbf16, #tpu.memory_space<vmem>>, vector<128x128xbf16>
    %cst = arith.constant dense<0.000000e+00> : vector<64x128xf32>
    %2 = tpu.matmul %0, %1, %cst {dimension_numbers = #tpu.dot_dimension_numbers<[1], [0], [0], [1], [0, 0, 1, 1], [], []>} : vector<64x128xbf16>, vector<128x128xbf16>, vector<64x128xf32> -> vector<64x128xf32>
    %c0_3 = arith.constant 0 : index
    %c0_4 = arith.constant 0 : index
    %3 = vector.load %arg3[%c0_3, %c0_4] : memref<1x128xf32, #tpu.memory_space<vmem>>, vector<1x128xf32>
    %4 = vector.broadcast %3 : vector<1x128xf32> to vector<64x128xf32>
    %5 = arith.addf %2, %4 : vector<64x128xf32>
    %c0_5 = arith.constant 0 : index
    %c0_6 = arith.constant 0 : index
    %6 = vector.load %arg4[%c0_5, %c0_6] : memref<64x128xf32, #tpu.memory_space<vmem>>, vector<64x128xf32>
    tpu.vector_store %arg4[%c0_5, %c0_6], %5 {strides = array<i32>} : memref<64x128xf32, #tpu.memory_space<vmem>>, vector<64x128xf32>,
    return
  }
  func.func @transform_0(%arg0: i32) -> (i32, i32) {
    %c0_i32 = arith.constant 0 : i32
    %c0_i32_0 = arith.constant 0 : i32
    return %arg0, %c0_i32 : i32, i32
  }
  func.func @transform_1(%arg0: i32) -> (i32, i32) {
    %c0_i32 = arith.constant 0 : i32
    %c0_i32_0 = arith.constant 0 : i32
    %c0_i32_1 = arith.constant 0 : i32
    return %c0_i32, %c0_i32_0 : i32, i32
  }
  func.func @transform_2(%arg0: i32) -> (i32, i32) {
    %c0_i32 = arith.constant 0 : i32
    %c0_i32_0 = arith.constant 0 : i32
    %c0_i32_1 = arith.constant 0 : i32
    return %c0_i32, %c0_i32_0 : i32, i32
  }
  func.func @transform_3(%arg0: i32) -> (i32, i32) {
    %c0_i32 = arith.constant 0 : i32
    %c0_i32_0 = arith.constant 0 : i32
    return %arg0, %c0_i32 : i32, i32
  }
}

</mosaic_0001>

<bundles_post_ra>
// kernel: _lambda_.4
= control target key start
LH: loop header
LB: loop body
LE: loop exit
PB: predicated region body
PF: predicated region fallthrough
CT: control target
= control target key end

     0   :  { %s1232_s12 = smov 0   ;;  %s1422_s0 = inlined_call_operand.vmem [shape: bf16[512,256], index: 0, kind: input, shape index: {}]   ;;  %s1423_s1 = inlined_call_operand.vmem [shape: bf16[256,128], index: 1, kind: input, shape index: {}]   ;;  %s1424_s2 = inlined_call_operand.vmem [shape: f32[1,128], index: 2, kind: input, shape index: {}]   ;;  %s1425_s3 = inlined_call_operand.vmem [shape: bf16[512,128], index: 3, kind: output, shape index: {}]  }
   0x1 LB: > { %s831_s13 = sadd.s32 4294967295, %s1210_s12   ;;  %p835_p0 = scmp.ge.s32.totalorder %s1210_s12, 1  ;;  %s1210_s12 = sphi %s1232_s12, %s13_s12  }
   0x2   : > { %p139_p1 = scmp.lt.s32.totalorder %s1210_s12, 3 }
   0x4   : > { %p140_p2 = pnand %p835_p0, %p139_p1 }
   0x5   : > { %s836_s26 = sshll.u32 (!%p140_p2), %s831_s13, 5 }
   0x6   : > { %143 = sbr.rel (%p140_p2) target bundleno = 304 (0x130), region = 32  ;;  %p165_p3 = scmp.lt.s32.totalorder (!%p140_p2), %s836_s26, 63 }
   0xb   : > { %v1075_v0 = vld [vmem:[%s1423_s1 + $0x38] sm:$0xff]  ;;  %v1074_v2 = vld [vmem:[%s1423_s1 + $0x30] sm:$0xff]  ;;  %v1073_v4 = vld [vmem:[%s1423_s1 + $0x28] sm:$0xff]  ;;  %s1427_s26 = smov (!%p165_p3, %s836_s26), 63 }
   0xc   : > { %v1083_v1 = vld [vmem:[%s1423_s1 + $0x78] sm:$0xff]  ;;  %501 = vmatpush.bf16.msra.mxu0 %v1075_v0  ;;  %1179 = vmatpush.bf16.msra.mxu2 %v1075_v0  ;;  %v1082_v3 = vld [vmem:[%s1423_s1 + $0x70] sm:$0xff]  ;;  %v1081_v5 = vld [vmem:[%s1423_s1 + $0x68] sm:$0xff]  ;;  %s1035_s13 = sshll.u32 %s1427_s26, 3  ;;  %s840_s28 = sshll.u32 %s1427_s26, 2 }
   0xd   : > { %590 = vmatpush.bf16.msra.mxu1 %v1083_v1  ;;  %1187 = vmatpush.bf16.msra.mxu3 %v1083_v1  ;;  %v1072_v6 = vld [vmem:[%s1423_s1 + $0x20] sm:$0xff]  ;;  %v1071_v8 = vld [vmem:[%s1423_s1 + $0x18] sm:$0xff]  ;;  %v1070_v10 = vld [vmem:[%s1423_s1 + $0x10] sm:$0xff]  ;;  %s1285_s18 = scalar_lea.vmem %s1422_s0, %s1035_s13  ;;  %s1372_s4 = scalar_lea.vmem %s1425_s3, %s840_s28 }
   0xe   : > { %v1080_v7 = vld [vmem:[%s1423_s1 + $0x60] sm:$0xff]  ;;  %v1079_v9 = vld [vmem:[%s1423_s1 + $0x58] sm:$0xff]  ;;  %v1078_v11 = vld [vmem:[%s1423_s1 + $0x50] sm:$0xff] }
   0xf   : > { %v1069_v12 = vld [vmem:[%s1423_s1 + $0x8] sm:$0xff]  ;;  %v1068_v14 = vld [vmem:[%s1423_s1] sm:$0xff]  ;;  %v851_v28 = vld [vmem:[%s1285_s18 + $0x10] sm:$0xf] }
  0x10   : > { %502 = vmatpush.bf16.msra.mxu0 %v1074_v2  ;;  %1180 = vmatpush.bf16.msra.mxu2 %v1074_v2  ;;  %v1077_v13 = vld [vmem:[%s1423_s1 + $0x48] sm:$0xff]  ;;  %v1076_v15 = vld [vmem:[%s1423_s1 + $0x40] sm:$0xff]  ;;  %v1039_v29 = vld [vmem:[%s1285_s18 + $0x14] sm:$0xf0] }
  0x11   : > { %591 = vmatpush.bf16.msra.mxu1 %v1082_v3  ;;  %1188 = vmatpush.bf16.msra.mxu3 %v1082_v3  ;;  %v843_v16 = vld [vmem:[%s1285_s18] sm:$0xf]  ;;  %v1037_v17 = vld [vmem:[%s1285_s18 + $0x4] sm:$0xf0]  ;;  %v1036_v20 = vld [vmem:[%s1285_s18 + $0x4] sm:$0xf]  ;;  %v852_v36 = vor.u32 %v1039_v29, %v851_v28 }
  0x12   : > { %v907_v18 = vld [vmem:[%s1285_s18 + $0x80] sm:$0xf]  ;;  %v1053_v19 = vld [vmem:[%s1285_s18 + $0x84] sm:$0xf0]  ;;  %v845_v21 = vld [vmem:[%s1285_s18 + $0x8] sm:$0xf0]  ;;  %v844_v24 = vor.u32 %v1037_v17, %v843_v16 }
  0x13   : > { %v1052_v22 = vld [vmem:[%s1285_s18 + $0x84] sm:$0xf]  ;;  %v909_v23 = vld [vmem:[%s1285_s18 + $0x88] sm:$0xf0]  ;;  %v908_v25 = vor.u32 %v1053_v19, %v907_v18  ;;  %v848_v26 = vor.u32 %v1036_v20, %v845_v21  ;;  %v915_v30 = vld [vmem:[%s1285_s18 + $0x90] sm:$0xf] }
  0x14   : > { %503 = vmatpush.bf16.msra.mxu0 %v1073_v4  ;;  %1181 = vmatpush.bf16.msra.mxu2 %v1073_v4  ;;  %v912_v27 = vor.u32 %v1052_v22, %v909_v23  ;;  %v1055_v31 = vld [vmem:[%s1285_s18 + $0x94] sm:$0xf0]  ;;  %v1038_v32 = vld [vmem:[%s1285_s18 + $0x14] sm:$0xf]  ;;  %v853_v33 = vld [vmem:[%s1285_s18 + $0x18] sm:$0xf0] }
  0x15   : > { %592 = vmatpush.bf16.msra.mxu1 %v1081_v5  ;;  %1189 = vmatpush.bf16.msra.mxu3 %v1081_v5  ;;  %v1054_v34 = vld [vmem:[%s1285_s18 + $0x94] sm:$0xf]  ;;  %v917_v35 = vld [vmem:[%s1285_s18 + $0x98] sm:$0xf0]  ;;  %v916_v37 = vor.u32 %v1055_v31, %v915_v30  ;;  %v856_v38 = vor.u32 %v1038_v32, %v853_v33  ;;  %v859_v40 = vld [vmem:[%s1285_s18 + $0x20] sm:$0xf] }
  0x16   : > { %v920_v39 = vor.u32 %v1054_v34, %v917_v35  ;;  %v1041_v41 = vld [vmem:[%s1285_s18 + $0x24] sm:$0xf0]  ;;  %v923_v42 = vld [vmem:[%s1285_s18 + $0xa0] sm:$0xf]  ;;  %v1040_v44 = vld [vmem:[%s1285_s18 + $0x24] sm:$0xf] }
  0x17   : > { %v1057_v43 = vld [vmem:[%s1285_s18 + $0xa4] sm:$0xf0]  ;;  %v861_v45 = vld [vmem:[%s1285_s18 + $0x28] sm:$0xf0]  ;;  %v1056_v46 = vld [vmem:[%s1285_s18 + $0xa4] sm:$0xf]  ;;  %v860_v48 = vor.u32 %v1041_v41, %v859_v40 }
  0x18   : > { %504 = vmatpush.bf16.msra.mxu0 %v1072_v6  ;;  %1182 = vmatpush.bf16.msra.mxu2 %v1072_v6  ;;  %v925_v47 = vld [vmem:[%s1285_s18 + $0xa8] sm:$0xf0]  ;;  %v924_v49 = vor.u32 %v1057_v43, %v923_v42  ;;  %v864_v50 = vor.u32 %v1040_v44, %v861_v45  ;;  %v867_v52 = vld [vmem:[%s1285_s18 + $0x30] sm:$0xf]  ;;  %v1043_v53 = vld [vmem:[%s1285_s18 + $0x34] sm:$0xf0] }
  0x19   : > { %593 = vmatpush.bf16.msra.mxu1 %v1080_v7  ;;  %1190 = vmatpush.bf16.msra.mxu3 %v1080_v7  ;;  %v928_v51 = vor.u32 %v1056_v46, %v925_v47  ;;  %v931_v54 = vld [vmem:[%s1285_s18 + $0xb0] sm:$0xf]  ;;  %v1059_v55 = vld [vmem:[%s1285_s18 + $0xb4] sm:$0xf0]  ;;  %v1042_v56 = vld [vmem:[%s1285_s18 + $0x34] sm:$0xf]  ;;  %v868_v60 = vor.u32 %v1043_v53, %v867_v52 }
  0x1a   : > { %v869_v57 = vld [vmem:[%s1285_s18 + $0x38] sm:$0xf0]  ;;  %v1058_v58 = vld [vmem:[%s1285_s18 + $0xb4] sm:$0xf]  ;;  %v932_v61 = vor.u32 %v1059_v55, %v931_v54  ;;  %v875_v0 = vld [vmem:[%s1285_s18 + $0x40] sm:$0xf] }
  0x1b   : > { %v933_v59 = vld [vmem:[%s1285_s18 + $0xb8] sm:$0xf0]  ;;  %v872_v62 = vor.u32 %v1042_v56, %v869_v57  ;;  %v1045_v1 = vld [vmem:[%s1285_s18 + $0x44] sm:$0xf0]  ;;  %v939_v2 = vld [vmem:[%s1285_s18 + $0xc0] sm:$0xf] }
  0x1c   : > { %505 = vmatpush.bf16.msra.mxu0 %v1071_v8  ;;  %1183 = vmatpush.bf16.msra.mxu2 %v1071_v8  ;;  %v936_v63 = vor.u32 %v1058_v58, %v933_v59  ;;  %v1061_v3 = vld [vmem:[%s1285_s18 + $0xc4] sm:$0xf0]  ;;  %v1044_v4 = vld [vmem:[%s1285_s18 + $0x44] sm:$0xf]  ;;  %v877_v5 = vld [vmem:[%s1285_s18 + $0x48] sm:$0xf0]  ;;  %v876_v8 = vor.u32 %v1045_v1, %v875_v0 }
  0x1d   : > { %594 = vmatpush.bf16.msra.mxu1 %v1079_v9  ;;  %1191 = vmatpush.bf16.msra.mxu3 %v1079_v9  ;;  %v1060_v6 = vld [vmem:[%s1285_s18 + $0xc4] sm:$0xf]  ;;  %v941_v7 = vld [vmem:[%s1285_s18 + $0xc8] sm:$0xf0]  ;;  %v940_v9 = vor.u32 %v1061_v3, %v939_v2  ;;  %v1046_v16 = vld [vmem:[%s1285_s18 + $0x54] sm:$0xf] }
  0x1e   : > { %v885_v17 = vld [vmem:[%s1285_s18 + $0x58] sm:$0xf0]  ;;  %v1062_v18 = vld [vmem:[%s1285_s18 + $0xd4] sm:$0xf]  ;;  %v1048_v28 = vld [vmem:[%s1285_s18 + $0x64] sm:$0xf] }
  0x1f   : > { %v949_v19 = vld [vmem:[%s1285_s18 + $0xd8] sm:$0xf0]  ;;  %v888_v22 = vor.u32 %v1046_v16, %v885_v17  ;;  %v893_v29 = vld [vmem:[%s1285_s18 + $0x68] sm:$0xf0]  ;;  %v1064_v30 = vld [vmem:[%s1285_s18 + $0xe4] sm:$0xf] }
  0x20   : > { %506 = vmatpush.bf16.msra.mxu0 %v1070_v10  ;;  %1184 = vmatpush.bf16.msra.mxu2 %v1070_v10  ;;  %v880_v10 = vor.u32 %v1044_v4, %v877_v5  ;;  %v952_v23 = vor.u32 %v1062_v18, %v949_v19  ;;  %v957_v31 = vld [vmem:[%s1285_s18 + $0xe8] sm:$0xf0]  ;;  %v896_v34 = vor.u32 %v1048_v28, %v893_v29  ;;  %v1050_v40 = vld [vmem:[%s1285_s18 + $0x74] sm:$0xf]  ;;  %v901_v41 = vld [vmem:[%s1285_s18 + $0x78] sm:$0xf0] }
  0x21   : > { %595 = vmatpush.bf16.msra.mxu1 %v1078_v11  ;;  %1192 = vmatpush.bf16.msra.mxu3 %v1078_v11  ;;  %v944_v11 = vor.u32 %v1060_v6, %v941_v7  ;;  %v960_v35 = vor.u32 %v1064_v30, %v957_v31  ;;  %v1066_v42 = vld [vmem:[%s1285_s18 + $0xf4] sm:$0xf]  ;;  %v965_v43 = vld [vmem:[%s1285_s18 + $0xf8] sm:$0xf0]  ;;  %v904_v46 = vor.u32 %v1050_v40, %v901_v41 }
  0x22   : > { %v968_v47 = vor.u32 %v1066_v42, %v965_v43 }
  0x24   : > { %507 = vmatpush.bf16.msra.mxu0 %v1069_v12  ;;  %1185 = vmatpush.bf16.msra.mxu2 %v1069_v12  ;;  %v883_v12 = vld [vmem:[%s1285_s18 + $0x50] sm:$0xf] }
  0x25   : > { %596 = vmatpush.bf16.msra.mxu1 %v1077_v13  ;;  %1193 = vmatpush.bf16.msra.mxu3 %v1077_v13  ;;  %v1047_v13 = vld [vmem:[%s1285_s18 + $0x54] sm:$0xf0] }
  0x26   : > { %v884_v20 = vor.u32 %v1047_v13, %v883_v12 }
  0x28   : > { %508 = vmatpush.bf16.msra.mxu0 %v1068_v14  ;;  %1186 = vmatpush.bf16.msra.mxu2 %v1068_v14  ;;  %v947_v14 = vld [vmem:[%s1285_s18 + $0xd0] sm:$0xf] }
  0x29   : > { %597 = vmatpush.bf16.msra.mxu1 %v1076_v15  ;;  %1194 = vmatpush.bf16.msra.mxu3 %v1076_v15  ;;  %v1063_v15 = vld [vmem:[%s1285_s18 + $0xd4] sm:$0xf0] }
  0x2a   : > { %v948_v21 = vor.u32 %v1063_v15, %v947_v14 }
  0x2b   : > { %509 = vmatmul.bf16.vlgmr.msra.gmra.mxu0 %v844_v24  ;;  %549 = vmatmul.bf16.vlgmr.msra.gmra.mxu2 %v908_v25  ;;  %v891_v24 = vld [vmem:[%s1285_s18 + $0x60] sm:$0xf]  ;;  %v1049_v25 = vld [vmem:[%s1285_s18 + $0x64] sm:$0xf0] }
  0x2c   : > { %598 = vmatmul.bf16.vlgmr.msra.gmra.mxu1 %v848_v26  ;;  %638 = vmatmul.bf16.vlgmr.msra.gmra.mxu3 %v912_v27  ;;  %v955_v26 = vld [vmem:[%s1285_s18 + $0xe0] sm:$0xf]  ;;  %v1065_v27 = vld [vmem:[%s1285_s18 + $0xe4] sm:$0xf0]  ;;  %v892_v32 = vor.u32 %v1049_v25, %v891_v24 }
  0x2d   : > { %v956_v33 = vor.u32 %v1065_v27, %v955_v26 }
  0x3b   : > { %514 = vmatmul.bf16.gmra.mxu0 %v852_v36  ;;  %554 = vmatmul.bf16.gmra.mxu2 %v916_v37  ;;  %v899_v36 = vld [vmem:[%s1285_s18 + $0x70] sm:$0xf]  ;;  %v1051_v37 = vld [vmem:[%s1285_s18 + $0x74] sm:$0xf0] }
  0x3c   : > { %603 = vmatmul.bf16.gmra.mxu1 %v856_v38  ;;  %643 = vmatmul.bf16.gmra.mxu3 %v920_v39  ;;  %v963_v38 = vld [vmem:[%s1285_s18 + $0xf0] sm:$0xf]  ;;  %v1067_v39 = vld [vmem:[%s1285_s18 + $0xf4] sm:$0xf0]  ;;  %v900_v44 = vor.u32 %v1051_v37, %v899_v36 }
  0x3d   : > { %v964_v45 = vor.u32 %v1067_v39, %v963_v38 }
  0x4b   : > { %519 = vmatmul.bf16.gmra.mxu0 %v860_v48  ;;  %559 = vmatmul.bf16.gmra.mxu2 %v924_v49  ;;  %v1363_v49 = vld [vmem:[%s1424_s2] ss:$0 sm:$0xff] }
  0x4c   : > { %608 = vmatmul.bf16.gmra.mxu1 %v864_v50  ;;  %648 = vmatmul.bf16.gmra.mxu3 %v928_v51 }
  0x5b   : > { %524 = vmatmul.bf16.gmra.mxu0 %v868_v60  ;;  %564 = vmatmul.bf16.gmra.mxu2 %v932_v61 }
  0x5c   : > { %613 = vmatmul.bf16.gmra.mxu1 %v872_v62  ;;  %653 = vmatmul.bf16.gmra.mxu3 %v936_v63 }
  0x6b   : > { %529 = vmatmul.bf16.gmra.mxu0 %v876_v8  ;;  %569 = vmatmul.bf16.gmra.mxu2 %v940_v9 }
  0x6c   : > { %618 = vmatmul.bf16.gmra.mxu1 %v880_v10  ;;  %658 = vmatmul.bf16.gmra.mxu3 %v944_v11 }
  0x7b   : > { %534 = vmatmul.bf16.gmra.mxu0 %v884_v20  ;;  %574 = vmatmul.bf16.gmra.mxu2 %v948_v21 }
  0x7c   : > { %623 = vmatmul.bf16.gmra.mxu1 %v888_v22  ;;  %663 = vmatmul.bf16.gmra.mxu3 %v952_v23 }
  0x8b   : > { %539 = vmatmul.bf16.gmra.mxu0 %v892_v32  ;;  %579 = vmatmul.bf16.gmra.mxu2 %v956_v33 }
  0x8c   : > { %628 = vmatmul.bf16.gmra.mxu1 %v896_v34  ;;  %668 = vmatmul.bf16.gmra.mxu3 %v960_v35 }
  0x9b   : > { %544 = vmatmul.bf16.gmra.mxu0 %v900_v44  ;;  %584 = vmatmul.bf16.gmra.mxu2 %v964_v45 }
  0x9c   : > { %633 = vmatmul.bf16.gmra.mxu1 %v904_v46  ;;  %673 = vmatmul.bf16.gmra.mxu3 %v968_v47 }
  0xa8   : > { %v510_v48 = vpop.f32.mrf.mxu0 }
  0xa9   : > { %v599_v50 = vpop.f32.mrf.mxu1  ;;  %v511_v51 = vadd.f32 %v1363_v49, %v510_v48 }
  0xab   : > { %v600_v55 = vadd.f32 %v599_v50, %v511_v51 }
  0xad   : > { %v679_v60 = vmax.f32 %v600_v55, 0.0 }
  0xae   : > { %v550_v52 = vpop.f32.mrf.mxu2 }
  0xaf   : > { %v639_v53 = vpop.f32.mrf.mxu3  ;;  %v551_v58 = vadd.f32 %v1363_v49, %v550_v52 }
  0xb0   : > { %v512_v54 = vpop.f32.mrf.mxu0 }
  0xb1   : > { %v513_v56 = vadd.f32 %v1363_v49, %v512_v54  ;;  %v601_v57 = vpop.f32.mrf.mxu1  ;;  %v640_v63 = vadd.f32 %v639_v53, %v551_v58 }
  0xb3   : > { %v602_v59 = vadd.f32 %v601_v57, %v513_v56  ;;  %v695_v6 = vmax.f32 %v640_v63, 0.0 }
  0xb5   : > { %v680_v61 = vmax.f32 %v602_v59, 0.0 }
  0xb6   : > { %v552_v62 = vpop.f32.mrf.mxu2 }
  0xb7   : > { %v1087_v0 = vpack.c.bf16 %v680_v61, %v679_v60  ;;  %v553_v1 = vadd.f32 %v1363_v49, %v552_v62  ;;  %v641_v2 = vpop.f32.mrf.mxu3 }
  0xb8   : > { %v515_v3 = vpop.f32.mrf.mxu0 }
  0xb9   : > { %1088 = vst [vmem:[%s1372_s4] sm:$0xff] %v1087_v0   ;;  %v642_v4 = vadd.f32 %v641_v2, %v553_v1  ;;  %v604_v5 = vpop.f32.mrf.mxu1  ;;  %v516_v9 = vadd.f32 %v1363_v49, %v515_v3 }
  0xbb   : > { %v696_v7 = vmax.f32 %v642_v4, 0.0  ;;  %v605_v13 = vadd.f32 %v604_v5, %v516_v9 }
  0xbd   : > { %v1127_v8 = vpack.c.bf16 %v696_v7, %v695_v6  ;;  %v681_v18 = vmax.f32 %v605_v13, 0.0 }
  0xbe   : > { %v555_v10 = vpop.f32.mrf.mxu2 }
  0xbf   : > { %1171 = vst [vmem:[%s1372_s4 + $0x40] sm:$0xff] %v1127_v8   ;;  %v644_v11 = vpop.f32.mrf.mxu3  ;;  %v556_v16 = vadd.f32 %v1363_v49, %v555_v10 }
  0xc0   : > { %v517_v12 = vpop.f32.mrf.mxu0 }
  0xc1   : > { %v518_v14 = vadd.f32 %v1363_v49, %v517_v12  ;;  %v606_v15 = vpop.f32.mrf.mxu1  ;;  %v645_v21 = vadd.f32 %v644_v11, %v556_v16 }
  0xc3   : > { %v607_v17 = vadd.f32 %v606_v15, %v518_v14  ;;  %v697_v28 = vmax.f32 %v645_v21, 0.0 }
  0xc5   : > { %v682_v19 = vmax.f32 %v607_v17, 0.0 }
  0xc6   : > { %v557_v20 = vpop.f32.mrf.mxu2 }
  0xc7   : > { %v1092_v22 = vpack.c.bf16 %v682_v19, %v681_v18  ;;  %v558_v23 = vadd.f32 %v1363_v49, %v557_v20  ;;  %v646_v24 = vpop.f32.mrf.mxu3 }
  0xc8   : > { %v520_v25 = vpop.f32.mrf.mxu0 }
  0xc9   : > { %1164 = vst [vmem:[%s1372_s4 + $0x8] sm:$0xff] %v1092_v22   ;;  %v647_v26 = vadd.f32 %v646_v24, %v558_v23  ;;  %v609_v27 = vpop.f32.mrf.mxu1  ;;  %v521_v31 = vadd.f32 %v1363_v49, %v520_v25 }
  0xcb   : > { %v698_v29 = vmax.f32 %v647_v26, 0.0  ;;  %v610_v35 = vadd.f32 %v609_v27, %v521_v31 }
  0xcd   : > { %v1132_v30 = vpack.c.bf16 %v698_v29, %v697_v28  ;;  %v683_v40 = vmax.f32 %v610_v35, 0.0 }
  0xce   : > { %v560_v32 = vpop.f32.mrf.mxu2 }
  0xcf   : > { %1172 = vst [vmem:[%s1372_s4 + $0x48] sm:$0xff] %v1132_v30   ;;  %v649_v33 = vpop.f32.mrf.mxu3  ;;  %v561_v38 = vadd.f32 %v1363_v49, %v560_v32 }
  0xd0   : > { %v522_v34 = vpop.f32.mrf.mxu0 }
  0xd1   : > { %v523_v36 = vadd.f32 %v1363_v49, %v522_v34  ;;  %v611_v37 = vpop.f32.mrf.mxu1  ;;  %v650_v43 = vadd.f32 %v649_v33, %v561_v38 }
  0xd3   : > { %v612_v39 = vadd.f32 %v611_v37, %v523_v36  ;;  %v699_v51 = vmax.f32 %v650_v43, 0.0 }
  0xd5   : > { %v684_v41 = vmax.f32 %v612_v39, 0.0 }
  0xd6   : > { %v562_v42 = vpop.f32.mrf.mxu2 }
  0xd7   : > { %v1097_v44 = vpack.c.bf16 %v684_v41, %v683_v40  ;;  %v563_v45 = vadd.f32 %v1363_v49, %v562_v42  ;;  %v651_v46 = vpop.f32.mrf.mxu3 }
  0xd8   : > { %v525_v47 = vpop.f32.mrf.mxu0 }
  0xd9   : > { %1165 = vst [vmem:[%s1372_s4 + $0x10] sm:$0xff] %v1097_v44   ;;  %v652_v48 = vadd.f32 %v651_v46, %v563_v45  ;;  %v614_v50 = vpop.f32.mrf.mxu1  ;;  %v526_v54 = vadd.f32 %v1363_v49, %v525_v47 }
  0xdb   : > { %v700_v52 = vmax.f32 %v652_v48, 0.0  ;;  %v615_v58 = vadd.f32 %v614_v50, %v526_v54 }
  0xdd   : > { %v1137_v53 = vpack.c.bf16 %v700_v52, %v699_v51  ;;  %v685_v63 = vmax.f32 %v615_v58, 0.0 }
  0xde   : > { %v565_v55 = vpop.f32.mrf.mxu2 }
  0xdf   : > { %1173 = vst [vmem:[%s1372_s4 + $0x50] sm:$0xff] %v1137_v53   ;;  %v654_v56 = vpop.f32.mrf.mxu3  ;;  %v566_v61 = vadd.f32 %v1363_v49, %v565_v55 }
  0xe0   : > { %v527_v57 = vpop.f32.mrf.mxu0 }
  0xe1   : > { %v528_v59 = vadd.f32 %v1363_v49, %v527_v57  ;;  %v616_v60 = vpop.f32.mrf.mxu1  ;;  %v655_v2 = vadd.f32 %v654_v56, %v566_v61 }
  0xe3   : > { %v617_v62 = vadd.f32 %v616_v60, %v528_v59  ;;  %v701_v9 = vmax.f32 %v655_v2, 0.0 }
  0xe5   : > { %v686_v0 = vmax.f32 %v617_v62, 0.0 }
  0xe6   : > { %v567_v1 = vpop.f32.mrf.mxu2 }
  0xe7   : > { %v1102_v3 = vpack.c.bf16 %v686_v0, %v685_v63  ;;  %v568_v4 = vadd.f32 %v1363_v49, %v567_v1  ;;  %v656_v5 = vpop.f32.mrf.mxu3 }
  0xe8   : > { %v530_v6 = vpop.f32.mrf.mxu0 }
  0xe9   : > { %1166 = vst [vmem:[%s1372_s4 + $0x18] sm:$0xff] %v1102_v3   ;;  %v657_v7 = vadd.f32 %v656_v5, %v568_v4  ;;  %v619_v8 = vpop.f32.mrf.mxu1  ;;  %v531_v12 = vadd.f32 %v1363_v49, %v530_v6 }
  0xeb   : > { %v702_v10 = vmax.f32 %v657_v7, 0.0  ;;  %v620_v16 = vadd.f32 %v619_v8, %v531_v12 }
  0xed   : > { %v1142_v11 = vpack.c.bf16 %v702_v10, %v701_v9  ;;  %v687_v21 = vmax.f32 %v620_v16, 0.0 }
  0xee   : > { %v570_v13 = vpop.f32.mrf.mxu2 }
  0xef   : > { %1174 = vst [vmem:[%s1372_s4 + $0x58] sm:$0xff] %v1142_v11   ;;  %v659_v14 = vpop.f32.mrf.mxu3  ;;  %v571_v19 = vadd.f32 %v1363_v49, %v570_v13 }
  0xf0   : > { %v532_v15 = vpop.f32.mrf.mxu0 }
  0xf1   : > { %v533_v17 = vadd.f32 %v1363_v49, %v532_v15  ;;  %v621_v18 = vpop.f32.mrf.mxu1  ;;  %v660_v24 = vadd.f32 %v659_v14, %v571_v19 }
  0xf3   : > { %v622_v20 = vadd.f32 %v621_v18, %v533_v17  ;;  %v703_v31 = vmax.f32 %v660_v24, 0.0 }
  0xf5   : > { %v688_v22 = vmax.f32 %v622_v20, 0.0 }
  0xf6   : > { %v572_v23 = vpop.f32.mrf.mxu2 }
  0xf7   : > { %v1107_v25 = vpack.c.bf16 %v688_v22, %v687_v21  ;;  %v573_v26 = vadd.f32 %v1363_v49, %v572_v23  ;;  %v661_v27 = vpop.f32.mrf.mxu3 }
  0xf8   : > { %v535_v28 = vpop.f32.mrf.mxu0 }
  0xf9   : > { %1167 = vst [vmem:[%s1372_s4 + $0x20] sm:$0xff] %v1107_v25   ;;  %v662_v29 = vadd.f32 %v661_v27, %v573_v26  ;;  %v624_v30 = vpop.f32.mrf.mxu1  ;;  %v536_v34 = vadd.f32 %v1363_v49, %v535_v28 }
  0xfb   : > { %v704_v32 = vmax.f32 %v662_v29, 0.0  ;;  %v625_v38 = vadd.f32 %v624_v30, %v536_v34 }
  0xfd   : > { %v1147_v33 = vpack.c.bf16 %v704_v32, %v703_v31  ;;  %v689_v43 = vmax.f32 %v625_v38, 0.0 }
  0xfe   : > { %v575_v35 = vpop.f32.mrf.mxu2 }
  0xff   : > { %1175 = vst [vmem:[%s1372_s4 + $0x60] sm:$0xff] %v1147_v33   ;;  %v664_v36 = vpop.f32.mrf.mxu3  ;;  %v576_v41 = vadd.f32 %v1363_v49, %v575_v35 }
 0x100   : > { %v537_v37 = vpop.f32.mrf.mxu0 }
 0x101   : > { %v538_v39 = vadd.f32 %v1363_v49, %v537_v37  ;;  %v626_v40 = vpop.f32.mrf.mxu1  ;;  %v665_v46 = vadd.f32 %v664_v36, %v576_v41 }
 0x103   : > { %v627_v42 = vadd.f32 %v626_v40, %v538_v39  ;;  %v705_v54 = vmax.f32 %v665_v46, 0.0 }
 0x105   : > { %v690_v44 = vmax.f32 %v627_v42, 0.0 }
 0x106   : > { %v577_v45 = vpop.f32.mrf.mxu2 }
 0x107   : > { %v1112_v47 = vpack.c.bf16 %v690_v44, %v689_v43  ;;  %v578_v48 = vadd.f32 %v1363_v49, %v577_v45  ;;  %v666_v50 = vpop.f32.mrf.mxu3 }
 0x108   : > { %v540_v51 = vpop.f32.mrf.mxu0 }
 0x109   : > { %1168 = vst [vmem:[%s1372_s4 + $0x28] sm:$0xff] %v1112_v47   ;;  %v667_v52 = vadd.f32 %v666_v50, %v578_v48  ;;  %v629_v53 = vpop.f32.mrf.mxu1  ;;  %v541_v57 = vadd.f32 %v1363_v49, %v540_v51 }
 0x10b   : > { %v706_v55 = vmax.f32 %v667_v52, 0.0  ;;  %v630_v61 = vadd.f32 %v629_v53, %v541_v57 }
 0x10d   : > { %v1152_v56 = vpack.c.bf16 %v706_v55, %v705_v54  ;;  %v691_v2 = vmax.f32 %v630_v61, 0.0 }
 0x10e   : > { %v580_v58 = vpop.f32.mrf.mxu2 }
 0x10f   : > { %1176 = vst [vmem:[%s1372_s4 + $0x68] sm:$0xff] %v1152_v56   ;;  %v669_v59 = vpop.f32.mrf.mxu3  ;;  %v581_v0 = vadd.f32 %v1363_v49, %v580_v58 }
 0x110   : > { %v542_v60 = vpop.f32.mrf.mxu0 }
 0x111   : > { %v543_v62 = vadd.f32 %v1363_v49, %v542_v60  ;;  %v631_v63 = vpop.f32.mrf.mxu1  ;;  %v670_v5 = vadd.f32 %v669_v59, %v581_v0 }
 0x113   : > { %v632_v1 = vadd.f32 %v631_v63, %v543_v62  ;;  %v707_v12 = vmax.f32 %v670_v5, 0.0 }
 0x115   : > { %v692_v3 = vmax.f32 %v632_v1, 0.0 }
 0x116   : > { %v582_v4 = vpop.f32.mrf.mxu2 }
 0x117   : > { %v1117_v6 = vpack.c.bf16 %v692_v3, %v691_v2  ;;  %v583_v7 = vadd.f32 %v1363_v49, %v582_v4  ;;  %v671_v8 = vpop.f32.mrf.mxu3 }
 0x118   : > { %v545_v9 = vpop.f32.mrf.mxu0 }
 0x119   : > { %1169 = vst [vmem:[%s1372_s4 + $0x30] sm:$0xff] %v1117_v6   ;;  %v672_v10 = vadd.f32 %v671_v8, %v583_v7  ;;  %v634_v11 = vpop.f32.mrf.mxu1  ;;  %v546_v15 = vadd.f32 %v1363_v49, %v545_v9 }
 0x11b   : > { %v708_v13 = vmax.f32 %v672_v10, 0.0  ;;  %v635_v19 = vadd.f32 %v634_v11, %v546_v15 }
 0x11d   : > { %v1157_v14 = vpack.c.bf16 %v708_v13, %v707_v12  ;;  %v693_v24 = vmax.f32 %v635_v19, 0.0 }
 0x11e   : > { %v585_v16 = vpop.f32.mrf.mxu2 }
 0x11f   : > { %1177 = vst [vmem:[%s1372_s4 + $0x70] sm:$0xff] %v1157_v14   ;;  %v674_v17 = vpop.f32.mrf.mxu3  ;;  %v586_v22 = vadd.f32 %v1363_v49, %v585_v16 }
 0x120   : > { %v547_v18 = vpop.f32.mrf.mxu0 }
 0x121   : > { %v548_v20 = vadd.f32 %v1363_v49, %v547_v18  ;;  %v636_v21 = vpop.f32.mrf.mxu1  ;;  %v675_v27 = vadd.f32 %v674_v17, %v586_v22 }
 0x123   : > { %v637_v23 = vadd.f32 %v636_v21, %v548_v20  ;;  %v709_v32 = vmax.f32 %v675_v27, 0.0 }
 0x125   : > { %v694_v25 = vmax.f32 %v637_v23, 0.0 }
 0x126   : > { %v587_v26 = vpop.f32.mrf.mxu2 }
 0x127   : > { %v1122_v28 = vpack.c.bf16 %v694_v25, %v693_v24  ;;  %v588_v29 = vadd.f32 %v1363_v49, %v587_v26  ;;  %v676_v30 = vpop.f32.mrf.mxu3 }
 0x129   : > { %1170 = vst [vmem:[%s1372_s4 + $0x38] sm:$0xff] %v1122_v28   ;;  %v677_v31 = vadd.f32 %v676_v30, %v588_v29 }
 0x12b   : > { %v710_v33 = vmax.f32 %v677_v31, 0.0 }
 0x12d   : > { %v1162_v34 = vpack.c.bf16 %v710_v33, %v709_v32 }
 0x12f   : > { %1178 = vst [vmem:[%s1372_s4 + $0x78] sm:$0xff] %v1162_v34  }
 0x130 PF: > { %s13_s12 = sadd.s32 1, %s1210_s12  }
 0x131   : > { %p10_p4 = scmp.ge.s32.totalorder %s13_s12, 4  }
 0x133   :  { %12 = sbr.rel (!%p10_p4) target bundleno = 1 (0x1), region = 62 }

// kernel: _lambda_.5
= control target key start
LH: loop header
LB: loop body
LE: loop exit
PB: predicated region body
PF: predicated region fallthrough
CT: control target
= control target key end

     0   :  { %s889_s6 = smov 0   ;;  %s891_s7 = smov 0   ;;  %s1163_s0 = inlined_call_operand.vmem [shape: bf16[8,9,9,128], index: 0, kind: input, shape index: {}]   ;;  %s1164_s1 = inlined_call_operand.vmem [shape: bf16[2,8,8,128], index: 1, kind: output, shape index: {}]  }
   0x1   :  { %s893_s8 = smov 0  }
   0x2 LB: > { %s23_s9 = sadd.s32 1, %s873_s7  ;;  %p739_p0 = scmp.ge.s32.totalorder %s877_s8, 1  ;;  %s877_s8 = sphi %s893_s8, %s11_s8   ;;  %s873_s7 = sphi %s891_s7, %s1166_s7   ;;  %s869_s6 = sphi %s889_s6, %s1165_s6  }
   0x3   : > { %p25_p1 = scmp.ge.s32.totalorder %s23_s9, 2  ;;  %p91_p2 = scmp.lt.s32.totalorder %s877_s8, 3 }
   0x5   : > { %s1168_s9 = smov (%p25_p1, %s23_s9), 0  ;;  %p92_p3 = pnand %p739_p0, %p91_p2 }
   0x6   : > { %s807_s10 = smul.u32 (!%p92_p3), 72, %s869_s6  ;;  %p111_p4 = scmp.lt.s32.totalorder (!%p92_p3), %s869_s6, 1 }
   0x7   : > { %95 = sbr.rel (%p92_p3) target bundleno = 72 (0x48), region = 24 }
   0x8   : > { %s913_s13 = scalar_lea.vmem (!%p92_p3), %s1163_s0, %s807_s10 }
   0xc   : > { %v126_v0 = vld [vmem:[%s913_s13] sm:$0xf]  ;;  %v127_v1 = vld [vmem:[%s913_s13 + $0x8] sm:$0xf]  ;;  %v128_v2 = vld [vmem:[%s913_s13 + $0x10] sm:$0xf] }
   0xd   : > { %v129_v3 = vld [vmem:[%s913_s13 + $0x18] sm:$0xf]  ;;  %v130_v4 = vld [vmem:[%s913_s13 + $0x20] sm:$0xf]  ;;  %vm219_vm0 = vcmask 1046528   ;;  %v147_v8 = vunpack.c.l.bf16 %v126_v0  ;;  %v148_v9 = vunpack.c.l.bf16 %v127_v1  ;;  %v149_v10 = vunpack.c.l.bf16 %v128_v2  ;;  %s1170_s6 = smov (!%p111_p4, %s869_s6), 1 }
   0xe   : > { %v921_v5 = vld [vmem:[%s913_s13 + $0x28] sm:$0xf]  ;;  %v924_v6 = vld [vmem:[%s913_s13 + $0x30] sm:$0xf]  ;;  %v927_v7 = vld [vmem:[%s913_s13 + $0x38] sm:$0xf]  ;;  %v150_v14 = vunpack.c.l.bf16 %v129_v3  ;;  %v151_v15 = vunpack.c.l.bf16 %v130_v4 }
   0xf   : > { %v744_v11 = vld [vmem:[%s913_s13 + $0x90] sm:$0xf]  ;;  %v745_v12 = vld [vmem:[%s913_s13 + $0x98] sm:$0xf]  ;;  %v746_v13 = vld [vmem:[%s913_s13 + $0xa0] sm:$0xf]  ;;  %v152_v16 = vunpack.c.l.bf16 %v921_v5  ;;  %v153_v17 = vunpack.c.l.bf16 %v924_v6  ;;  %v154_v21 = vunpack.c.l.bf16 %v927_v7 }
  0x10   : > { %v747_v18 = vld [vmem:[%s913_s13 + $0xa8] sm:$0xf]  ;;  %v748_v19 = vld [vmem:[%s913_s13 + $0xb0] sm:$0xf]  ;;  %v749_v20 = vld [vmem:[%s913_s13 + $0xb8] sm:$0xf]  ;;  %v155_v22 = vunpack.c.l.bf16 %v744_v11  ;;  %v156_v23 = vunpack.c.l.bf16 %v745_v12  ;;  %v157_v24 = vunpack.c.l.bf16 %v746_v13 }
  0x11   : > { %v750_v25 = vld [vmem:[%s913_s13 + $0xc0] sm:$0xf]  ;;  %v751_v26 = vld [vmem:[%s913_s13 + $0xc8] sm:$0xf]  ;;  %v158_v27 = vunpack.c.l.bf16 %v747_v18  ;;  %v159_v28 = vunpack.c.l.bf16 %v748_v19  ;;  %v160_v29 = vunpack.c.l.bf16 %v749_v20  ;;  %v179_v30 = vld [vmem:[%s913_s13 + $0x4] sm:$0x1] }
  0x12   : > { %v161_v31 = vunpack.c.l.bf16 %v750_v25  ;;  %v162_v32 = vunpack.c.l.bf16 %v751_v26  ;;  %v941_v33 = vmax.f32 %v147_v8, %v155_v22  ;;  %v943_v34 = vmax.f32 %v148_v9, %v156_v23  ;;  %v180_v35 = vld [vmem:[%s913_s13 + $0xc] sm:$0x1]  ;;  %v181_v36 = vld [vmem:[%s913_s13 + $0x14] sm:$0x1]  ;;  %v182_v37 = vld [vmem:[%s913_s13 + $0x1c] sm:$0x1] }
  0x13   : > { %v948_v38 = vmax.f32 %v149_v10, %v157_v24  ;;  %v950_v39 = vmax.f32 %v150_v14, %v158_v27  ;;  %v952_v40 = vmax.f32 %v151_v15, %v159_v28  ;;  %v954_v41 = vmax.f32 %v152_v16, %v160_v29  ;;  %v183_v42 = vld [vmem:[%s913_s13 + $0x24] sm:$0x1]  ;;  %v184_v43 = vld [vmem:[%s913_s13 + $0x2c] sm:$0x1]  ;;  %v185_v44 = vld [vmem:[%s913_s13 + $0x34] sm:$0x1] }
  0x14   : > { %v959_v45 = vmax.f32 %v153_v17, %v161_v31  ;;  %v961_v46 = vmax.f32 %v154_v21, %v162_v32  ;;  %v186_v47 = vld [vmem:[%s913_s13 + $0x3c] sm:$0x1]  ;;  %v195_v48 = vunpack.c.l.bf16 %v179_v30  ;;  %v196_v49 = vunpack.c.l.bf16 %v180_v35  ;;  %v984_v22 = vld [vmem:[%s913_s13 + $0x138] sm:$0xf]  ;;  %v990_v23 = vld [vmem:[%s913_s13 + $0x148] sm:$0xf] }
  0x15   : > { %v197_v50 = vunpack.c.l.bf16 %v181_v36  ;;  %v198_v51 = vunpack.c.l.bf16 %v182_v37  ;;  %v199_v52 = vunpack.c.l.bf16 %v183_v42  ;;  %v200_v53 = vunpack.c.l.bf16 %v184_v43  ;;  %v997_v28 = vld [vmem:[%s913_s13 + $0x150] sm:$0xf]  ;;  %v1000_v29 = vld [vmem:[%s913_s13 + $0x158] sm:$0xf]  ;;  %s806_s14 = sshll.u32 %s1170_s6, 5 }
  0x16   : > { %v201_v54 = vunpack.c.l.bf16 %v185_v44  ;;  %v202_v55 = vunpack.c.l.bf16 %v186_v47  ;;  %v220_v56 = vrot.slane %v147_v8, 1  ;;  %v221_v57 = vrot.slane %v195_v48, 1  ;;  %v767_v47 = vld [vmem:[%s913_s13 + $0x1d8] sm:$0xf]  ;;  %s118_s17 = scalar_lea.vmem %s1164_s1, %s806_s14 }
  0x17   : > { %v223_v58 = vrot.slane %v148_v9, 1  ;;  %v224_v59 = vrot.slane %v196_v49, 1  ;;  %v226_v60 = vrot.slane %v149_v10, 1  ;;  %v227_v61 = vrot.slane %v197_v50, 1  ;;  %v969_v10 = vld [vmem:[%s913_s13 + $0x120] sm:$0xf] }
  0x18   : > { %v222_v62 = vsel %vm219_vm0, %v220_v56, %v221_v57  ;;  %v229_v63 = vrot.slane %v150_v14, 1  ;;  %v230_v0 = vrot.slane %v198_v51, 1  ;;  %v232_v1 = vrot.slane %v151_v15, 1  ;;  %v974_v15 = vld [vmem:[%s913_s13 + $0x128] sm:$0xf] }
  0x19   : > { %v225_v2 = vsel %vm219_vm0, %v223_v58, %v224_v59  ;;  %v228_v3 = vsel %vm219_vm0, %v226_v60, %v227_v61  ;;  %v233_v4 = vrot.slane %v199_v52, 1  ;;  %v235_v5 = vrot.slane %v152_v16, 1  ;;  %v977_v16 = vld [vmem:[%s913_s13 + $0x130] sm:$0xf]  ;;  %v768_v52 = vld [vmem:[%s913_s13 + $0x1e0] sm:$0xf] }
  0x1a   : > { %v231_v6 = vsel %vm219_vm0, %v229_v63, %v230_v0  ;;  %v236_v7 = vrot.slane %v200_v53, 1  ;;  %v238_v8 = vrot.slane %v153_v17, 1  ;;  %v239_v9 = vrot.slane %v201_v54, 1  ;;  %v769_v53 = vld [vmem:[%s913_s13 + $0x1e8] sm:$0xf] }
  0x1b   : > { %v234_v11 = vsel %vm219_vm0, %v232_v1, %v233_v4  ;;  %v241_v12 = vrot.slane %v154_v21, 1  ;;  %v242_v13 = vrot.slane %v202_v55, 1  ;;  %v252_v14 = vmax.f32 %v941_v33, %v222_v62  ;;  %v987_v21 = vld [vmem:[%s913_s13 + $0x140] sm:$0xf]  ;;  %v770_v62 = vld [vmem:[%s913_s13 + $0x124] sm:$0x1] }
  0x1c   : > { %v237_v18 = vsel %vm219_vm0, %v235_v5, %v236_v7  ;;  %v240_v19 = vsel %vm219_vm0, %v238_v8, %v239_v9  ;;  %v253_v17 = vmax.f32 %v943_v34, %v225_v2  ;;  %v254_v20 = vmax.f32 %v948_v38, %v228_v3  ;;  %v762_v38 = vld [vmem:[%s913_s13 + $0x1b0] sm:$0xf]  ;;  %v771_v63 = vld [vmem:[%s913_s13 + $0x12c] sm:$0x1]  ;;  %v772_v0 = vld [vmem:[%s913_s13 + $0x134] sm:$0x1] }
  0x1d   : > { %v243_v24 = vsel %vm219_vm0, %v241_v12, %v242_v13  ;;  %v255_v25 = vmax.f32 %v950_v39, %v231_v6  ;;  %v256_v26 = vmax.f32 %v952_v40, %v234_v11  ;;  %v257_v27 = vmax.f32 %v954_v41, %v237_v18  ;;  %v763_v39 = vld [vmem:[%s913_s13 + $0x1b8] sm:$0xf]  ;;  %v764_v40 = vld [vmem:[%s913_s13 + $0x1c0] sm:$0xf]  ;;  %v773_v5 = vld [vmem:[%s913_s13 + $0x13c] sm:$0x1] }
  0x1e   : > { %v258_v30 = vmax.f32 %v959_v45, %v240_v19  ;;  %v259_v31 = vmax.f32 %v961_v46, %v243_v24  ;;  %v289_v32 = vunpack.c.l.bf16 %v969_v10  ;;  %v290_v33 = vunpack.c.l.bf16 %v974_v15  ;;  %v765_v45 = vld [vmem:[%s913_s13 + $0x1c8] sm:$0xf]  ;;  %v766_v46 = vld [vmem:[%s913_s13 + $0x1d0] sm:$0xf]  ;;  %v774_v6 = vld [vmem:[%s913_s13 + $0x144] sm:$0x1] }
  0x1f   : > { %v291_v34 = vunpack.c.l.bf16 %v977_v16  ;;  %v292_v35 = vunpack.c.l.bf16 %v984_v22  ;;  %v293_v36 = vunpack.c.l.bf16 %v987_v21  ;;  %v294_v37 = vunpack.c.l.bf16 %v990_v23  ;;  %v775_v7 = vld [vmem:[%s913_s13 + $0x14c] sm:$0x1]  ;;  %v776_v12 = vld [vmem:[%s913_s13 + $0x154] sm:$0x1]  ;;  %v777_v13 = vld [vmem:[%s913_s13 + $0x15c] sm:$0x1] }
  0x20   : > { %v295_v41 = vunpack.c.l.bf16 %v997_v28  ;;  %v296_v42 = vunpack.c.l.bf16 %v1000_v29  ;;  %v297_v43 = vmax.f32 %v252_v14, %v289_v32  ;;  %v298_v44 = vmax.f32 %v253_v17, %v290_v33  ;;  %v1079_v29 = vld [vmem:[%s913_s13 + $0x28] sm:$0xf] }
  0x21   : > { %v299_v48 = vmax.f32 %v254_v20, %v291_v34  ;;  %v300_v49 = vmax.f32 %v255_v25, %v292_v35  ;;  %v301_v50 = vmax.f32 %v256_v26, %v293_v36  ;;  %v302_v51 = vmax.f32 %v257_v27, %v294_v37 }
  0x22   : > { %v303_v54 = vmax.f32 %v258_v30, %v295_v41  ;;  %v304_v55 = vmax.f32 %v259_v31, %v296_v42  ;;  %v334_v56 = vunpack.c.l.bf16 %v762_v38  ;;  %v335_v57 = vunpack.c.l.bf16 %v763_v39 }
  0x23   : > { %v336_v58 = vunpack.c.l.bf16 %v764_v40  ;;  %v337_v59 = vunpack.c.l.bf16 %v765_v45  ;;  %v338_v60 = vunpack.c.l.bf16 %v766_v46  ;;  %v339_v61 = vunpack.c.l.bf16 %v767_v47 }
  0x24   : > { %v340_v1 = vunpack.c.l.bf16 %v768_v52  ;;  %v341_v2 = vunpack.c.l.bf16 %v769_v53  ;;  %v1029_v3 = vmax.f32 %v297_v43, %v334_v56  ;;  %v1031_v4 = vmax.f32 %v298_v44, %v335_v57  ;;  %v1069_v52 = vld [vmem:[%s913_s13 + $0x18] sm:$0xf] }
  0x25   : > { %v1036_v8 = vmax.f32 %v299_v48, %v336_v58  ;;  %v1038_v9 = vmax.f32 %v300_v49, %v337_v59  ;;  %v1040_v10 = vmax.f32 %v301_v50, %v338_v60  ;;  %v1042_v11 = vmax.f32 %v302_v51, %v339_v61  ;;  %v1059_v49 = vld [vmem:[%s913_s13 + $0x8] sm:$0xf]  ;;  %v1066_v51 = vld [vmem:[%s913_s13 + $0x10] sm:$0xf]  ;;  %v1089_v60 = vld [vmem:[%s913_s13 + $0x38] sm:$0xf] }
  0x26   : > { %v1046_v14 = vmax.f32 %v303_v54, %v340_v1  ;;  %v1048_v15 = vmax.f32 %v304_v55, %v341_v2  ;;  %v374_v16 = vunpack.c.l.bf16 %v770_v62  ;;  %v375_v18 = vunpack.c.l.bf16 %v771_v63  ;;  %v1076_v55 = vld [vmem:[%s913_s13 + $0x20] sm:$0xf] }
  0x27   : > { %v376_v19 = vunpack.c.l.bf16 %v772_v0  ;;  %v377_v17 = vunpack.c.l.bf16 %v773_v5  ;;  %v378_v20 = vunpack.c.l.bf16 %v774_v6  ;;  %v379_v22 = vunpack.c.l.bf16 %v775_v7  ;;  %v1092_v61 = vld [vmem:[%s913_s13 + $0x40] sm:$0xf]  ;;  %v788_v6 = vld [vmem:[%s913_s13 + $0x98] sm:$0xf] }
  0x28   : > { %v380_v21 = vunpack.c.l.bf16 %v776_v12  ;;  %v381_v24 = vunpack.c.l.bf16 %v777_v13  ;;  %v398_v25 = vrot.slane %v289_v32, 1  ;;  %v399_v26 = vrot.slane %v374_v16, 1  ;;  %v789_v7 = vld [vmem:[%s913_s13 + $0xa0] sm:$0xf]  ;;  %v791_v13 = vld [vmem:[%s913_s13 + $0xb0] sm:$0xf] }
  0x29   : > { %v401_v27 = vrot.slane %v290_v33, 1  ;;  %v402_v30 = vrot.slane %v375_v18, 1  ;;  %v404_v31 = vrot.slane %v291_v34, 1  ;;  %v405_v38 = vrot.slane %v376_v19, 1 }
  0x2a   : > { %v400_v39 = vsel %vm219_vm0, %v398_v25, %v399_v26  ;;  %v407_v40 = vrot.slane %v292_v35, 1  ;;  %v408_v43 = vrot.slane %v377_v17, 1  ;;  %v410_v44 = vrot.slane %v293_v36, 1 }
  0x2b   : > { %v403_v45 = vsel %vm219_vm0, %v401_v27, %v402_v30  ;;  %v406_v46 = vsel %vm219_vm0, %v404_v31, %v405_v38  ;;  %v411_v47 = vrot.slane %v378_v20, 1  ;;  %v413_v32 = vrot.slane %v294_v37, 1  ;;  %v794_v20 = vld [vmem:[%s913_s13 + $0xc8] sm:$0xf] }
  0x2c   : > { %v409_v33 = vsel %vm219_vm0, %v407_v40, %v408_v43  ;;  %v414_v34 = vrot.slane %v379_v22, 1  ;;  %v416_v35 = vrot.slane %v295_v41, 1  ;;  %v417_v48 = vrot.slane %v380_v21, 1  ;;  %v795_v22 = vld [vmem:[%s913_s13 + $0xd0] sm:$0xf] }
  0x2d   : > { %v412_v36 = vsel %vm219_vm0, %v410_v44, %v411_v47  ;;  %v419_v50 = vrot.slane %v296_v42, 1  ;;  %v420_v23 = vrot.slane %v381_v24, 1  ;;  %v430_v37 = vmax.f32 %v1029_v3, %v400_v39  ;;  %v1082_v42 = vld [vmem:[%s913_s13 + $0x30] sm:$0xf]  ;;  %v796_v39 = vld [vmem:[%s913_s13 + $0xc] sm:$0x1] }
  0x2e   : > { %v415_v28 = vsel %vm219_vm0, %v413_v32, %v414_v34  ;;  %v418_v41 = vsel %vm219_vm0, %v416_v35, %v417_v48  ;;  %v431_v53 = vmax.f32 %v1031_v4, %v403_v45  ;;  %v432_v54 = vmax.f32 %v1036_v8, %v406_v46  ;;  %v790_v8 = vld [vmem:[%s913_s13 + $0xa8] sm:$0xf]  ;;  %v797_v40 = vld [vmem:[%s913_s13 + $0x14] sm:$0x1]  ;;  %v798_v43 = vld [vmem:[%s913_s13 + $0x1c] sm:$0x1] }
  0x2f   : > { %v421_v56 = vsel %vm219_vm0, %v419_v50, %v420_v23  ;;  %v433_v57 = vmax.f32 %v1038_v9, %v409_v33  ;;  %v434_v58 = vmax.f32 %v1040_v10, %v412_v36  ;;  %v435_v59 = vmax.f32 %v1042_v11, %v415_v28  ;;  %v799_v32 = vld [vmem:[%s913_s13 + $0x24] sm:$0x1]  ;;  %v800_v33 = vld [vmem:[%s913_s13 + $0x2c] sm:$0x1]  ;;  %v801_v34 = vld [vmem:[%s913_s13 + $0x34] sm:$0x1] }
  0x30   : > { %v436_v62 = vmax.f32 %v1046_v14, %v418_v41  ;;  %v437_v63 = vmax.f32 %v1048_v15, %v421_v56  ;;  %v467_v0 = vunpack.c.l.bf16 %v1059_v49  ;;  %v468_v1 = vunpack.c.l.bf16 %v1066_v51  ;;  %v792_v14 = vld [vmem:[%s913_s13 + $0xb8] sm:$0xf]  ;;  %v793_v15 = vld [vmem:[%s913_s13 + $0xc0] sm:$0xf]  ;;  %v802_v50 = vld [vmem:[%s913_s13 + $0x3c] sm:$0x1] }
  0x31   : > { %v469_v2 = vunpack.c.l.bf16 %v1069_v52  ;;  %v470_v3 = vunpack.c.l.bf16 %v1076_v55  ;;  %v471_v4 = vunpack.c.l.bf16 %v1079_v29  ;;  %v472_v5 = vunpack.c.l.bf16 %v1082_v42  ;;  %v803_v23 = vld [vmem:[%s913_s13 + $0x44] sm:$0x1] }
  0x32   : > { %v473_v9 = vunpack.c.l.bf16 %v1089_v60  ;;  %v474_v10 = vunpack.c.l.bf16 %v1092_v61  ;;  %v475_v11 = vmax.f32 %v430_v37, %v467_v0  ;;  %v476_v12 = vmax.f32 %v431_v53, %v468_v1 }
  0x33   : > { %v477_v16 = vmax.f32 %v432_v54, %v469_v2  ;;  %v478_v18 = vmax.f32 %v433_v57, %v470_v3  ;;  %v479_v19 = vmax.f32 %v434_v58, %v471_v4  ;;  %v480_v17 = vmax.f32 %v435_v59, %v472_v5 }
  0x34   : > { %v481_v21 = vmax.f32 %v436_v62, %v473_v9  ;;  %v482_v24 = vmax.f32 %v437_v63, %v474_v10  ;;  %v510_v25 = vunpack.c.l.bf16 %v788_v6  ;;  %v511_v26 = vunpack.c.l.bf16 %v789_v7 }
  0x35   : > { %v512_v27 = vunpack.c.l.bf16 %v790_v8  ;;  %v513_v30 = vunpack.c.l.bf16 %v791_v13  ;;  %v514_v31 = vunpack.c.l.bf16 %v792_v14  ;;  %v515_v38 = vunpack.c.l.bf16 %v793_v15 }
  0x36   : > { %v516_v44 = vunpack.c.l.bf16 %v794_v20  ;;  %v517_v45 = vunpack.c.l.bf16 %v795_v22  ;;  %v518_v46 = vmax.f32 %v475_v11, %v510_v25  ;;  %v519_v47 = vmax.f32 %v476_v12, %v511_v26 }
  0x37   : > { %v520_v35 = vmax.f32 %v477_v16, %v512_v27  ;;  %v521_v48 = vmax.f32 %v478_v18, %v513_v30  ;;  %v522_v49 = vmax.f32 %v479_v19, %v514_v31  ;;  %v523_v36 = vmax.f32 %v480_v17, %v515_v38 }
  0x38   : > { %v524_v37 = vmax.f32 %v481_v21, %v516_v44  ;;  %v525_v51 = vmax.f32 %v482_v24, %v517_v45  ;;  %v550_v52 = vunpack.c.l.bf16 %v796_v39  ;;  %v551_v28 = vunpack.c.l.bf16 %v797_v40 }
  0x39   : > { %v552_v41 = vunpack.c.l.bf16 %v798_v43  ;;  %v553_v53 = vunpack.c.l.bf16 %v799_v32  ;;  %v554_v54 = vunpack.c.l.bf16 %v800_v33  ;;  %v555_v29 = vunpack.c.l.bf16 %v801_v34 }
  0x3a   : > { %v556_v56 = vunpack.c.l.bf16 %v802_v50  ;;  %v557_v57 = vunpack.c.l.bf16 %v803_v23  ;;  %v574_v58 = vrot.slane %v467_v0, 1  ;;  %v575_v59 = vrot.slane %v550_v52, 1 }
  0x3b   : > { %v577_v62 = vrot.slane %v468_v1, 1  ;;  %v578_v63 = vrot.slane %v551_v28, 1  ;;  %v580_v6 = vrot.slane %v469_v2, 1  ;;  %v581_v7 = vrot.slane %v552_v41, 1 }
  0x3c   : > { %v576_v8 = vsel %vm219_vm0, %v574_v58, %v575_v59  ;;  %v583_v11 = vrot.slane %v470_v3, 1  ;;  %v584_v12 = vrot.slane %v553_v53, 1  ;;  %v586_v13 = vrot.slane %v471_v4, 1 }
  0x3d   : > { %v579_v14 = vsel %vm219_vm0, %v577_v62, %v578_v63  ;;  %v582_v15 = vsel %vm219_vm0, %v580_v6, %v581_v7  ;;  %v587_v16 = vrot.slane %v554_v54, 1  ;;  %v589_v0 = vrot.slane %v472_v5, 1 }
  0x3e   : > { %v585_v1 = vsel %vm219_vm0, %v583_v11, %v584_v12  ;;  %v590_v2 = vrot.slane %v555_v29, 1  ;;  %v592_v18 = vrot.slane %v473_v9, 1  ;;  %v593_v19 = vrot.slane %v556_v56, 1 }
  0x3f   : > { %v588_v55 = vsel %vm219_vm0, %v586_v13, %v587_v16  ;;  %v595_v3 = vrot.slane %v474_v10, 1  ;;  %v596_v4 = vrot.slane %v557_v57, 1  ;;  %v606_v17 = vmax.f32 %v518_v46, %v576_v8 }
  0x40   : > { %v591_v20 = vsel %vm219_vm0, %v589_v0, %v590_v2  ;;  %v594_v42 = vsel %vm219_vm0, %v592_v18, %v593_v19  ;;  %v607_v5 = vmax.f32 %v519_v47, %v579_v14  ;;  %v608_v22 = vmax.f32 %v520_v35, %v582_v15 }
  0x41   : > { %v597_v60 = vsel %vm219_vm0, %v595_v3, %v596_v4  ;;  %v609_v9 = vmax.f32 %v521_v48, %v585_v1  ;;  %v610_v21 = vmax.f32 %v522_v49, %v588_v55  ;;  %v611_v24 = vmax.f32 %v523_v36, %v591_v20 }
  0x42   : > { %v612_v25 = vmax.f32 %v524_v37, %v594_v42  ;;  %v613_v61 = vmax.f32 %v525_v51, %v597_v60  ;;  %v811_v10 = vpack.c.bf16 %v607_v5, %v606_v17 }
  0x43   : > { %v816_v26 = vpack.c.bf16 %v609_v9, %v608_v22  ;;  %v821_v27 = vpack.c.bf16 %v611_v24, %v610_v21 }
  0x44   : > { %812 = vst [vmem:[%s118_s17] sm:$0xff] %v811_v10   ;;  %v826_v30 = vpack.c.bf16 %v613_v61, %v612_v25 }
  0x45   : > { %828 = vst [vmem:[%s118_s17 + $0x8] sm:$0xff] %v816_v26  }
  0x46   : > { %829 = vst [vmem:[%s118_s17 + $0x10] sm:$0xff] %v821_v27  }
  0x47   : > { %830 = vst [vmem:[%s118_s17 + $0x18] sm:$0xff] %v826_v30  }
  0x48 PF: > { %s11_s8 = sadd.s32 1, %s877_s8   ;;  %s1165_s6 = smov %s873_s7 }
  0x49   : > { %p8_p5 = scmp.ge.s32.totalorder %s11_s8, 4   ;;  %s1166_s7 = smov %s1168_s9 }
  0x4b   :  { %10 = sbr.rel (!%p8_p5) target bundleno = 2 (0x2), region = 57 }

// kernel: _lambda_.7
= control target key start
LH: loop header
LB: loop body
LE: loop exit
PB: predicated region body
PF: predicated region fallthrough
CT: control target
= control target key end

     0   :  { %8 = vsyncpa [#allocation3], 0  ;;  %s727_s0 = inlined_call_operand.vmem [shape: bf16[128,128], index: 0, kind: input, shape index: {}]   ;;  %s728_s1 = inlined_call_operand.vmem [shape: bf16[128,128], index: 1, kind: input, shape index: {}]   ;;  %s729_s2 = inlined_call_operand.vmem [shape: f32[1,128], index: 2, kind: input, shape index: {}]   ;;  %s730_s3 = inlined_call_operand.hbm [shape: f32[128,128], index: 3, kind: output, shape index: {}]  }
   0x1   :  { %10 = vsyncpa [#allocation3 + $0x1], 0  ;;  %s612_s12 = smov 0   ;;  %s614_s13 = smov 0  }
   0x2   :  { %s616_s14 = smov 0   ;;  %s618_s15 = smov 0  }
   0x3 LB: > { %s633_s16 = sadd.s32 4294967295, %s588_s15   ;;  %s387_s17 = sadd.s32 4294967294, %s588_s15   ;;  %s588_s15 = sphi %s618_s15, %s736_s15   ;;  %s584_s14 = sphi %s616_s14, %s735_s14   ;;  %s580_s13 = sphi %s614_s13, %s734_s13   ;;  %s576_s12 = sphi %s612_s12, %s733_s12  }
   0x4   : > { %s637_s18 = sadd.s32 1, %s588_s15   ;;  %s91_s19 = sadd.s32 1, %s584_s14 }
   0x5   : > { %s88_s20 = ssub.s32 %s588_s15, %s637_s18  ;;  %p101_p0 = scmp.ne.s32.totalorder %s584_s14, %s580_s13 }
   0x6   : > { %p89_p1 = scmp.eq.s32.totalorder %s88_s20, 0  ;;  %p102_p2 = scmp.eq.s32.totalorder %s633_s16, 1 }
   0x7   : > { %p107_p3 = scmp.ne.s32.totalorder %s580_s13, %s576_s12  ;;  %p108_p4 = scmp.eq.s32.totalorder %s387_s17, 1 }
   0x8   : > { %s648_s21 = scalar_select %p89_p1, %s584_s14, %s91_s19  }
   0x9   : > { %p650_p5 = por %p102_p2, %p101_p0  ;;  %p654_p6 = por %p108_p4, %p107_p3 }
   0xa   : > { %p390_p7 = scmp.ge.s32.totalorder %s588_s15, 1  ;;  %p141_p8 = scmp.lt.s32.totalorder %s588_s15, 3 }
   0xc   : > { %p142_p9 = pnand %p390_p7, %p141_p8 }
   0xd   : > { %s392_s5 = sshll.u32 (!%p142_p9), %s633_s16, 3  ;;  %s162_s27 = sand.u32 (!%p142_p9), 1, %s580_s13  }
   0xe   : > { %145 = sbr.rel (%p142_p9) target bundleno = 199 (0xc7), region = 32  ;;  %p166_p10 = scmp.lt.s32.totalorder (!%p142_p9), %s392_s5, 15 }
   0xf   : > { %s391_s28 = sshll.u32 (!%p142_p9), %s162_s27, 6  ;;  %s546_s24 = scalar_lea.hbm (!%p142_p9), %s730_s3, 128 }
  0x10   : > { %s164_s4 = scalar_lea.vmem (!%p142_p9), [#allocation2], %s391_s28 }
  0x11   : > { %s322_s9 = sshll.u32 (!%p142_p9), %s164_s4, 4  ;;  %s323_s9 = int_to_ptr.vmem [resolvable:$true] %s322_s9 }
  0x13   : > { %v458_v0 = vld [vmem:[%s728_s1 + $0x38] sm:$0xff]  ;;  %v457_v1 = vld [vmem:[%s728_s1 + $0x30] sm:$0xff]  ;;  %v456_v2 = vld [vmem:[%s728_s1 + $0x28] sm:$0xff]  ;;  %s738_s5 = smov (!%p166_p10, %s392_s5), 15 }
  0x14   : > { %272 = vmatpush.bf16.msra.mxu0 %v458_v0  ;;  %460 = vmatpush.bf16.msra.mxu1 %v458_v0  ;;  %v455_v3 = vld [vmem:[%s728_s1 + $0x20] sm:$0xff]  ;;  %v454_v4 = vld [vmem:[%s728_s1 + $0x18] sm:$0xff]  ;;  %v453_v5 = vld [vmem:[%s728_s1 + $0x10] sm:$0xff]  ;;  %s393_s17 = sshll.u32 %s738_s5, 2  ;;  %s459_s5 = sshll.u32 %s633_s16, 6 }
  0x15   : > { %461 = vmatpush.bf16.msra.mxu2 %v458_v0  ;;  %462 = vmatpush.bf16.msra.mxu3 %v458_v0  ;;  %v452_v6 = vld [vmem:[%s728_s1 + $0x8] sm:$0xff]  ;;  %v451_v7 = vld [vmem:[%s728_s1] sm:$0xff]  ;;  %s169_s26 = scalar_lea.vmem %s727_s0, %s393_s17  ;;  %s321_s8 = scalar_lea.hbm %s730_s3, %s459_s5 }
  0x16   : > { %v447_v8 = vld [vmem:[%s169_s26] sm:$0xff]  ;;  %v448_v9 = vld [vmem:[%s169_s26 + $0x8] sm:$0xff]  ;;  %v449_v10 = vld [vmem:[%s169_s26 + $0x10] sm:$0xff]  ;;  %s324_s10 = sshll.u32 %s321_s8, 4  ;;  %s310_s16 = scalar_lea.sflag [#allocation3], %s162_s27  ;;  %s325_s10 = int_to_ptr.hbm [resolvable:$true] %s324_s10 }
  0x17   : > { %v450_v11 = vld [vmem:[%s169_s26 + $0x18] sm:$0xff]  ;;  %v525_v12 = vld [vmem:[%s729_s2] ss:$0 sm:$0xff]  ;;  %s540_s11 = sshra.s32 %s325_s10, 4  ;;  %s541_s11 = int_to_ptr.hbm [resolvable:$true] %s540_s11 }
  0x18   : > { %273 = vmatpush.bf16.msra.mxu0 %v457_v1  ;;  %463 = vmatpush.bf16.msra.mxu1 %v457_v1  ;;  %s542_s17 = scalar_lea.hbm %s541_s11, 64  ;;  %p547_p0 = scmp.lt.s32.totalorder %s541_s11, %s730_s3 }
  0x19   : > { %464 = vmatpush.bf16.msra.mxu2 %v457_v1  ;;  %465 = vmatpush.bf16.msra.mxu3 %v457_v1  ;;  %p543_p11 = scmp.ne.s32.totalorder %s541_s11, %s542_s17  ;;  %p548_p1 = scmp.lt.s32.totalorder %s546_s24, %s542_s17 }
  0x1b   : > { %p544_p12 = pnand %p543_p11, %p650_p5  ;;  %p549_p2 = por %p548_p1, %p547_p0 }
  0x1c   : > { %274 = vmatpush.bf16.msra.mxu0 %v456_v2  ;;  %466 = vmatpush.bf16.msra.mxu1 %v456_v2 }
  0x1d   : > { %467 = vmatpush.bf16.msra.mxu2 %v456_v2  ;;  %468 = vmatpush.bf16.msra.mxu3 %v456_v2  ;;  %p545_p13 = pneg %p544_p12 }
  0x1f   : > { %p550_p3 = pnand %p549_p2, %p545_p13 }
  0x20   : > { %275 = vmatpush.bf16.msra.mxu0 %v455_v3  ;;  %469 = vmatpush.bf16.msra.mxu1 %v455_v3 }
  0x21   : > { %470 = vmatpush.bf16.msra.mxu2 %v455_v3  ;;  %471 = vmatpush.bf16.msra.mxu3 %v455_v3 }
  0x24   : > { %276 = vmatpush.bf16.msra.mxu0 %v454_v4  ;;  %472 = vmatpush.bf16.msra.mxu1 %v454_v4 }
  0x25   : > { %473 = vmatpush.bf16.msra.mxu2 %v454_v4  ;;  %474 = vmatpush.bf16.msra.mxu3 %v454_v4 }
  0x28   : > { %277 = vmatpush.bf16.msra.mxu0 %v453_v5  ;;  %475 = vmatpush.bf16.msra.mxu1 %v453_v5 }
  0x29   : > { %476 = vmatpush.bf16.msra.mxu2 %v453_v5  ;;  %477 = vmatpush.bf16.msra.mxu3 %v453_v5 }
  0x2c   : > { %278 = vmatpush.bf16.msra.mxu0 %v452_v6  ;;  %478 = vmatpush.bf16.msra.mxu1 %v452_v6 }
  0x2d   : > { %479 = vmatpush.bf16.msra.mxu2 %v452_v6  ;;  %480 = vmatpush.bf16.msra.mxu3 %v452_v6 }
  0x30   : > { %279 = vmatpush.bf16.msra.mxu0 %v451_v7  ;;  %481 = vmatpush.bf16.msra.mxu1 %v451_v7 }
  0x31   : > { %482 = vmatpush.bf16.msra.mxu2 %v451_v7  ;;  %483 = vmatpush.bf16.msra.mxu3 %v451_v7 }
  0x33   : > { %280 = vmatmul.bf16.vlgmr.msra.gmra.mxu0 %v447_v8  ;;  %285 = vmatmul.bf16.vlgmr.msra.gmra.mxu1 %v448_v9 }
  0x34   : > { %290 = vmatmul.bf16.vlgmr.msra.gmra.mxu2 %v449_v10  ;;  %295 = vmatmul.bf16.vlgmr.msra.gmra.mxu3 %v450_v11 }
  0xb0   : > { %v281_v13 = vpop.f32.mrf.mxu0  ;;  %v286_v14 = vpop.f32.mrf.mxu1 }
  0xb1   : > { %v282_v15 = vadd.f32 %v525_v12, %v281_v13  ;;  %v287_v16 = vadd.f32 %v525_v12, %v286_v14 }
  0xb3   : > { %301 = vst [vmem:[%s164_s4] sm:$0xff] %v282_v15 }
  0xb4   : > { %303 = vst [vmem:[%s164_s4 + $0x10] sm:$0xff] %v287_v16 }
  0xb7   : > { %v291_v17 = vpop.f32.mrf.mxu2  ;;  %v296_v18 = vpop.f32.mrf.mxu3 }
  0xb8   : > { %v292_v19 = vadd.f32 %v525_v12, %v291_v17  ;;  %v297_v20 = vadd.f32 %v525_v12, %v296_v18  ;;  %v283_v21 = vpop.f32.mrf.mxu0  ;;  %v288_v22 = vpop.f32.mrf.mxu1 }
  0xb9   : > { %v284_v23 = vadd.f32 %v525_v12, %v283_v21  ;;  %v289_v24 = vadd.f32 %v525_v12, %v288_v22 }
  0xba   : > { %305 = vst [vmem:[%s164_s4 + $0x20] sm:$0xff] %v292_v19 }
  0xbb   : > { %307 = vst [vmem:[%s164_s4 + $0x30] sm:$0xff] %v297_v20 }
  0xbc   : > { %302 = vst [vmem:[%s164_s4 + $0x8] sm:$0xff] %v284_v23 }
  0xbd   : > { %304 = vst [vmem:[%s164_s4 + $0x18] sm:$0xff] %v289_v24 }
  0xbf   : > { %v293_v25 = vpop.f32.mrf.mxu2  ;;  %v298_v26 = vpop.f32.mrf.mxu3 }
  0xc0   : > { %v294_v27 = vadd.f32 %v525_v12, %v293_v25  ;;  %v299_v28 = vadd.f32 %v525_v12, %v298_v26 }
  0xc2   : > { %306 = vst [vmem:[%s164_s4 + $0x28] sm:$0xff] %v294_v27 }
  0xc3   : > { %308 = vst [vmem:[%s164_s4 + $0x38] sm:$0xff] %v299_v28 }
  0xc4   : > { %553 = shalt.err (!%p550_p3)
}
  0xc5   : > { %s590_s27 = smov 128   ;;  %s591_s28 = smov 8  }
  0xc6   : > { %484 = dma.vmem_to_hbm [thread:$0]  (%p650_p5), %s323_s9, 1024, %s325_s10, %s310_s16, %s590_s27, %s590_s27, %s591_s28  }
  0xc7 PF: > { %p490_p4 = scmp.ge.s32.totalorder %s588_s15, 2  ;;  %s339_s29 = sand.u32 1, %s576_s12  }
  0xc8   : > { %s340_s30 = scalar_lea.sflag [#allocation3], %s339_s29 }
  0xc9   : > { %p487_p7 = pnand %p490_p4, %p654_p6 }
  0xcb   : > { %p488_p8 = pneg %p487_p7 }
  0xcd   : > { %571 = dma.done.wait (%p488_p8), %s340_s30, 1024  }
  0xce   : > { %573 = vsyncadd (%p488_p8), %s340_s30, 4294966272  ;;  %p13_p9 = scmp.ge.s32.totalorder %s637_s18, 4   ;;  %s733_s12 = smov %s580_s13 }
  0xcf   : > { %s734_s13 = smov %s584_s14  ;;  %s735_s14 = smov %s648_s21 }
  0xd0   : > { %s736_s15 = smov %s637_s18  ;;  %15 = sbr.rel (!%p13_p9) target bundleno = 3 (0x3), region = 67 }
  0xd5   :  { %346 = vsyncpa [#allocation3], 1 }
  0xd6   :  { %348 = vsyncpa [#allocation3 + $0x1], 1 }

// kernel: _lambda_.6
= control target key start
LH: loop header
LB: loop body
LE: loop exit
PB: predicated region body
PF: predicated region fallthrough
CT: control target
= control target key end

     0   :  { %s4055_s27 = smov 0   ;;  %s4905_s0 = inlined_call_operand.vmem [shape: bf16[2,64,640], index: 0, kind: input, shape index: {}]   ;;  %s4906_s1 = inlined_call_operand.vmem [shape: bf16[2,64,128], index: 1, kind: input, shape index: {}]   ;;  %s4907_s2 = inlined_call_operand.vmem [shape: bf16[640,128], index: 2, kind: input, shape index: {}]   ;;  %s4908_s3 = inlined_call_operand.vmem [shape: f32[1,128], index: 3, kind: input, shape index: {}, may-alias: {3,5,7}]   ;;  %s4909_s4 = inlined_call_operand.vmem [shape: bf16[128,128], index: 4, kind: input, shape index: {}]   ;;  %s4910_s5 = inlined_call_operand.vmem [shape: f32[1,128], index: 5, kind: input, shape index: {}, may-alias: {3,5,7}]   ;;  %s4911_s6 = inlined_call_operand.vmem [shape: bf16[9,128,128], index: 6, kind: input, shape index: {}]   ;;  %s4912_s7 = inlined_call_operand.vmem [shape: f32[1,128], index: 7, kind: input, shape index: {}, may-alias: {3,5,7}]   ;;  %s4913_s8 = inlined_call_operand.vmem [shape: bf16[2,64,128], index: 8, kind: output, shape index: {}]  }
   0x1 LB: > { %s2995_s28 = sadd.s32 4294967295, %s4007_s27   ;;  %p2999_p0 = scmp.ge.s32.totalorder %s4007_s27, 1  ;;  %s4007_s27 = sphi %s4055_s27, %s18_s27  }
   0x2   : > { %p272_p1 = scmp.lt.s32.totalorder %s4007_s27, 3 }
   0x4   : > { %p273_p2 = pnand %p2999_p0, %p272_p1 }
   0x5   : > { %p311_p3 = scmp.lt.s32.totalorder (!%p273_p2), %s2995_s28, 1 }
   0x6   : > { %276 = sbr.rel (%p273_p2) target bundleno = 564 (0x234), region = 52 }
   0xb   : > { %v3796_v0 = vld [vmem:[%s4909_s4 + $0x38] sm:$0xff]  ;;  %v3795_v3 = vld [vmem:[%s4909_s4 + $0x30] sm:$0xff]  ;;  %v3794_v6 = vld [vmem:[%s4909_s4 + $0x28] sm:$0xff]  ;;  %s4923_s28 = smov (!%p311_p3, %s2995_s28), 1  ;;  %vm1170_vm0 = vcmask 1043456   ;;  %vm1176_vm2 = vcmask 1040384  }
   0xc   : > { %v3824_v1 = vld [vmem:[%s4907_s2 + $0x38] sm:$0xff]  ;;  %3964 = vmatpush.bf16.msra.mxu3 %v3796_v0  ;;  %v3823_v4 = vld [vmem:[%s4907_s2 + $0x30] sm:$0xff]  ;;  %427 = vmatpush.bf16.msra.mxu0 %v3796_v0  ;;  %v3822_v7 = vld [vmem:[%s4907_s2 + $0x28] sm:$0xff]  ;;  %s3988_s23 = smul.u32 160, %s4923_s28  ;;  %s3783_s13 = sshll.u32 %s4923_s28, 5  ;;  %vm1642_vm6 = vcmask 1042432  }
   0xd   : > { %v3832_v2 = vld [vmem:[%s4907_s2 + $0x78] sm:$0xff]  ;;  %908 = vmatpush.bf16.msra.mxu1 %v3824_v1  ;;  %v3831_v5 = vld [vmem:[%s4907_s2 + $0x70] sm:$0xff]  ;;  %v3830_v8 = vld [vmem:[%s4907_s2 + $0x68] sm:$0xff]  ;;  %s4153_s22 = scalar_lea.vmem %s4906_s1, %s3783_s13  ;;  %vm1171_vm1 = vsmask.f32 7938  ;;  %vm1643_vm7 = vcmask 1046532   ;;  %s4894_s18 = scalar_lea.vmem %s4913_s8, %s3783_s13 }
   0xe   : > { %937 = vmatpush.bf16.msra.mxu2 %v3832_v2  ;;  %v3793_v9 = vld [vmem:[%s4909_s4 + $0x20] sm:$0xff]  ;;  %v3792_v12 = vld [vmem:[%s4909_s4 + $0x18] sm:$0xff]  ;;  %v3791_v15 = vld [vmem:[%s4909_s4 + $0x10] sm:$0xff]  ;;  %s4136_s12 = scalar_lea.vmem %s4905_s0, %s3988_s23  ;;  %vm1177_vm3 = vsmask.f32 256 }
   0xf   : > { %v3821_v10 = vld [vmem:[%s4907_s2 + $0x20] sm:$0xff]  ;;  %v3820_v13 = vld [vmem:[%s4907_s2 + $0x18] sm:$0xff]  ;;  %v3819_v16 = vld [vmem:[%s4907_s2 + $0x10] sm:$0xff]  ;;  %vm1385_vm9 = vsmask.f32 3328 }
  0x10   : > { %3965 = vmatpush.bf16.msra.mxu3 %v3795_v3  ;;  %428 = vmatpush.bf16.msra.mxu0 %v3795_v3  ;;  %v3829_v11 = vld [vmem:[%s4907_s2 + $0x60] sm:$0xff]  ;;  %v3828_v14 = vld [vmem:[%s4907_s2 + $0x58] sm:$0xff]  ;;  %v3827_v17 = vld [vmem:[%s4907_s2 + $0x50] sm:$0xff]  ;;  %vm1386_vm10 = vsmask.f32 7440 }
  0x11   : > { %909 = vmatpush.bf16.msra.mxu1 %v3823_v4  ;;  %v3790_v18 = vld [vmem:[%s4909_s4 + $0x8] sm:$0xff]  ;;  %v3789_v21 = vld [vmem:[%s4909_s4] sm:$0xff]  ;;  %v3799_v25 = vld [vmem:[%s4136_s12 + $0x10] sm:$0xf0] }
  0x12   : > { %938 = vmatpush.bf16.msra.mxu2 %v3831_v5  ;;  %v3818_v19 = vld [vmem:[%s4907_s2 + $0x8] sm:$0xff]  ;;  %v3817_v22 = vld [vmem:[%s4907_s2] sm:$0xff]  ;;  %v3057_v27 = vld [vmem:[%s4136_s12 + $0x14] sm:$0xf0] }
  0x13   : > { %v3826_v20 = vld [vmem:[%s4907_s2 + $0x48] sm:$0xff]  ;;  %v3825_v23 = vld [vmem:[%s4907_s2 + $0x40] sm:$0xff]  ;;  %v3856_v28 = vld [vmem:[%s4907_s2 + $0x138] sm:$0xff] }
  0x14   : > { %3966 = vmatpush.bf16.msra.mxu3 %v3794_v6  ;;  %429 = vmatpush.bf16.msra.mxu0 %v3794_v6  ;;  %v3055_v24 = vld [vmem:[%s4136_s12] sm:$0xf]  ;;  %v3797_v26 = vld [vmem:[%s4136_s12 + $0x4] sm:$0xf]  ;;  %v3840_v29 = vld [vmem:[%s4907_s2 + $0xb8] sm:$0xff] }
  0x15   : > { %910 = vmatpush.bf16.msra.mxu1 %v3822_v7  ;;  %v3787_v30 = vld [vmem:[%s4153_s22 + $0x10] sm:$0xff]  ;;  %v3056_v31 = vor.u32 %v3799_v25, %v3055_v24  ;;  %v3060_v32 = vor.u32 %v3797_v26, %v3057_v27  ;;  %v3848_v33 = vld [vmem:[%s4907_s2 + $0xf8] sm:$0xff]  ;;  %v3785_v34 = vld [vmem:[%s4153_s22] sm:$0xff] }
  0x16   : > { %939 = vmatpush.bf16.msra.mxu2 %v3830_v8  ;;  %v3855_v35 = vld [vmem:[%s4907_s2 + $0x130] sm:$0xff]  ;;  %v3854_v38 = vld [vmem:[%s4907_s2 + $0x128] sm:$0xff]  ;;  %v3853_v41 = vld [vmem:[%s4907_s2 + $0x120] sm:$0xff] }
  0x17   : > { %v3839_v36 = vld [vmem:[%s4907_s2 + $0xb0] sm:$0xff]  ;;  %v3838_v39 = vld [vmem:[%s4907_s2 + $0xa8] sm:$0xff]  ;;  %v3837_v42 = vld [vmem:[%s4907_s2 + $0xa0] sm:$0xff] }
  0x18   : > { %3967 = vmatpush.bf16.msra.mxu3 %v3793_v9  ;;  %430 = vmatpush.bf16.msra.mxu0 %v3793_v9  ;;  %v3847_v37 = vld [vmem:[%s4907_s2 + $0xf0] sm:$0xff]  ;;  %v3846_v40 = vld [vmem:[%s4907_s2 + $0xe8] sm:$0xff]  ;;  %v3804_v44 = vld [vmem:[%s4136_s12 + $0x38] sm:$0xf0] }
  0x19   : > { %911 = vmatpush.bf16.msra.mxu1 %v3821_v10  ;;  %v3075_v43 = vld [vmem:[%s4136_s12 + $0x28] sm:$0xf]  ;;  %v3845_v45 = vld [vmem:[%s4907_s2 + $0xe0] sm:$0xff]  ;;  %v3802_v46 = vld [vmem:[%s4136_s12 + $0x2c] sm:$0xf] }
  0x1a   : > { %940 = vmatpush.bf16.msra.mxu2 %v3829_v11  ;;  %v3077_v47 = vld [vmem:[%s4136_s12 + $0x3c] sm:$0xf0]  ;;  %v3852_v48 = vld [vmem:[%s4907_s2 + $0x118] sm:$0xff]  ;;  %v3076_v51 = vor.u32 %v3804_v44, %v3075_v43  ;;  %v3786_v54 = vld [vmem:[%s4153_s22 + $0x8] sm:$0xff] }
  0x1b   : > { %v3836_v49 = vld [vmem:[%s4907_s2 + $0x98] sm:$0xff]  ;;  %v3080_v52 = vor.u32 %v3802_v46, %v3077_v47  ;;  %v3851_v55 = vld [vmem:[%s4907_s2 + $0x110] sm:$0xff]  ;;  %v3850_v58 = vld [vmem:[%s4907_s2 + $0x108] sm:$0xff] }
  0x1c   : > { %3968 = vmatpush.bf16.msra.mxu3 %v3792_v12  ;;  %431 = vmatpush.bf16.msra.mxu0 %v3792_v12  ;;  %v3788_v50 = vld [vmem:[%s4153_s22 + $0x18] sm:$0xff]  ;;  %v3835_v56 = vld [vmem:[%s4907_s2 + $0x90] sm:$0xff]  ;;  %v3834_v59 = vld [vmem:[%s4907_s2 + $0x88] sm:$0xff] }
  0x1d   : > { %912 = vmatpush.bf16.msra.mxu1 %v3820_v13  ;;  %v3844_v53 = vld [vmem:[%s4907_s2 + $0xd8] sm:$0xff]  ;;  %v3843_v57 = vld [vmem:[%s4907_s2 + $0xd0] sm:$0xff]  ;;  %v3842_v60 = vld [vmem:[%s4907_s2 + $0xc8] sm:$0xff] }
  0x1e   : > { %941 = vmatpush.bf16.msra.mxu2 %v3828_v14  ;;  %v3849_v61 = vld [vmem:[%s4907_s2 + $0x100] sm:$0xff]  ;;  %v3095_v63 = vld [vmem:[%s4136_s12 + $0x50] sm:$0xf]  ;;  %v3063_v1 = vld [vmem:[%s4136_s12 + $0x8] sm:$0xf] }
  0x1f   : > { %v3833_v62 = vld [vmem:[%s4907_s2 + $0x80] sm:$0xff]  ;;  %v3800_v2 = vld [vmem:[%s4136_s12 + $0x18] sm:$0xf0]  ;;  %v3807_v4 = vld [vmem:[%s4136_s12 + $0x54] sm:$0xf] }
  0x20   : > { %3969 = vmatpush.bf16.msra.mxu3 %v3791_v15  ;;  %432 = vmatpush.bf16.msra.mxu0 %v3791_v15  ;;  %v3809_v0 = vld [vmem:[%s4136_s12 + $0x60] sm:$0xf0]  ;;  %v3097_v5 = vld [vmem:[%s4136_s12 + $0x64] sm:$0xf0]  ;;  %v3798_v6 = vld [vmem:[%s4136_s12 + $0xc] sm:$0xf]  ;;  %v3064_v9 = vor.u32 %v3800_v2, %v3063_v1 }
  0x21   : > { %913 = vmatpush.bf16.msra.mxu1 %v3819_v16  ;;  %v3841_v3 = vld [vmem:[%s4907_s2 + $0xc0] sm:$0xff]  ;;  %v3096_v8 = vor.u32 %v3809_v0, %v3095_v63  ;;  %v3100_v10 = vor.u32 %v3807_v4, %v3097_v5  ;;  %v3115_v12 = vld [vmem:[%s4136_s12 + $0x78] sm:$0xf]  ;;  %v3814_v13 = vld [vmem:[%s4136_s12 + $0x88] sm:$0xf0] }
  0x22   : > { %942 = vmatpush.bf16.msra.mxu2 %v3827_v17  ;;  %v3065_v7 = vld [vmem:[%s4136_s12 + $0x1c] sm:$0xf0]  ;;  %v3083_v14 = vld [vmem:[%s4136_s12 + $0x30] sm:$0xf]  ;;  %v3805_v15 = vld [vmem:[%s4136_s12 + $0x40] sm:$0xf0] }
  0x23   : > { %v3068_v11 = vor.u32 %v3798_v6, %v3065_v7  ;;  %v3812_v16 = vld [vmem:[%s4136_s12 + $0x7c] sm:$0xf]  ;;  %v3117_v17 = vld [vmem:[%s4136_s12 + $0x8c] sm:$0xf0]  ;;  %v3103_v24 = vld [vmem:[%s4136_s12 + $0x58] sm:$0xf] }
  0x24   : > { %3970 = vmatpush.bf16.msra.mxu3 %v3790_v18  ;;  %433 = vmatpush.bf16.msra.mxu0 %v3790_v18  ;;  %v3803_v18 = vld [vmem:[%s4136_s12 + $0x34] sm:$0xf]  ;;  %v3810_v25 = vld [vmem:[%s4136_s12 + $0x68] sm:$0xf0]  ;;  %v3071_v26 = vld [vmem:[%s4136_s12 + $0x10] sm:$0xf] }
  0x25   : > { %914 = vmatpush.bf16.msra.mxu1 %v3818_v19  ;;  %v3085_v19 = vld [vmem:[%s4136_s12 + $0x44] sm:$0xf0]  ;;  %v3801_v27 = vld [vmem:[%s4136_s12 + $0x20] sm:$0xf0]  ;;  %v3811_v43 = vld [vmem:[%s4136_s12 + $0x70] sm:$0xf0] }
  0x26   : > { %943 = vmatpush.bf16.msra.mxu2 %v3826_v20  ;;  %v3116_v20 = vor.u32 %v3814_v13, %v3115_v12  ;;  %v3816_v46 = vld [vmem:[%s4136_s12 + $0x98] sm:$0xf0]  ;;  %v3883_v4 = vld [vmem:[%s4911_s6 + $0xb0] sm:$0xff]  ;;  %v4009_v6 = vmov 0   ;;  %v3894_v12 = vld [vmem:[%s4911_s6 + $0xe8] sm:$0xff] }
  0x27   : > { %v3884_v63 = vld [vmem:[%s4911_s6 + $0xb8] sm:$0xff]  ;;  %1063 = vst [vmem:[#allocation2 + $0x8] sm:$0xf] %v4009_v6  ;;  %v3895_v7 = vld [vmem:[%s4911_s6 + $0xf0] sm:$0xff]  ;;  %vm4433_vm4 = vmand %vm1170_vm0, %vm1171_vm1 }
  0x28   : > { %3971 = vmatpush.bf16.msra.mxu3 %v3789_v21  ;;  %434 = vmatpush.bf16.msra.mxu0 %v3789_v21  ;;  %v3084_v21 = vor.u32 %v3805_v15, %v3083_v14  ;;  %1064 = vst [vmem:[#allocation2 + $0xc] sm:$0x1] %v4009_v6  ;;  %v3881_v14 = vld [vmem:[%s4911_s6 + $0xa0] sm:$0xff]  ;;  %v3874_v15 = vld [vmem:[%s4911_s6 + $0x68] sm:$0xff]  ;;  %vm4437_vm5 = vmand %vm1176_vm2, %vm1177_vm3 }
  0x29   : > { %915 = vmatpush.bf16.msra.mxu1 %v3817_v22  ;;  %v3120_v22 = vor.u32 %v3812_v16, %v3117_v17  ;;  %1061 = vst [vmem:[#allocation2] sm:$0xf] %v4009_v6  ;;  %v3863_v16 = vld [vmem:[%s4911_s6 + $0x10] sm:$0xff]  ;;  %v3893_v17 = vld [vmem:[%s4911_s6 + $0xe0] sm:$0xff]  ;;  %vm4452_vm8 = vmor %vm1642_vm6, %vm1643_vm7 }
  0x2a   : > { %944 = vmatpush.bf16.msra.mxu2 %v3825_v23  ;;  %v3088_v23 = vor.u32 %v3803_v18, %v3085_v19  ;;  %1062 = vst [vmem:[#allocation2 + $0x4] sm:$0x1] %v4009_v6  ;;  %v3880_v19 = vld [vmem:[%s4911_s6 + $0x98] sm:$0xff]  ;;  %vm4471_vm11 = vmor %vm1385_vm9, %vm1386_vm10 }
  0x2b   : > { %445 = vmatmul.bf16.vlgmr.msra.gmra.mxu3 %v3787_v30  ;;  %435 = vmatmul.bf16.vlgmr.msra.gmra.mxu0 %v3785_v34  ;;  %v3104_v30 = vor.u32 %v3810_v25, %v3103_v24  ;;  %v3815_v34 = vld [vmem:[%s4136_s12 + $0x90] sm:$0xf0]  ;;  %1065 = vst [vmem:[#allocation2 + $0x10] sm:$0xf] %v4009_v6 }
  0x2c   : > { %966 = vmatpush.bf16.msrb.mxu3 %v3840_v29  ;;  %916 = vmatmul.bf16.vlgmr.msra.gmra.mxu1 %v3056_v31  ;;  %v3105_v29 = vld [vmem:[%s4136_s12 + $0x6c] sm:$0xf0]  ;;  %v3072_v31 = vor.u32 %v3801_v27, %v3071_v26  ;;  %1066 = vst [vmem:[#allocation2 + $0x14] sm:$0x1] %v4009_v6  ;;  %v4384_v26 = vld [vmem:[%s4908_s3] ss:$0 sm:$0xff] }
  0x2d   : > { %1024 = vmatpush.bf16.msrb.mxu1 %v3856_v28  ;;  %945 = vmatmul.bf16.vlgmr.msra.gmra.mxu2 %v3060_v32  ;;  %v3808_v28 = vld [vmem:[%s4136_s12 + $0x5c] sm:$0xf]  ;;  %1067 = vst [vmem:[#allocation2 + $0x18] sm:$0xf] %v4009_v6  ;;  %v3879_v25 = vld [vmem:[%s4911_s6 + $0x90] sm:$0xff] }
  0x2e   : > { %995 = vmatpush.bf16.msrb.mxu0 %v3848_v33  ;;  %v3108_v32 = vor.u32 %v3808_v28, %v3105_v29  ;;  %v3123_v33 = vld [vmem:[%s4136_s12 + $0x80] sm:$0xf]  ;;  %1068 = vst [vmem:[#allocation2 + $0x1c] sm:$0x1] %v4009_v6  ;;  %v3872_v28 = vld [vmem:[%s4911_s6 + $0x58] sm:$0xff] }
  0x2f   : > { %1069 = vst [vmem:[#allocation2 + $0x20] sm:$0xf] %v4009_v6  ;;  %v3861_v29 = vld [vmem:[%s4911_s6] sm:$0xff] }
  0x30   : > { %967 = vmatpush.bf16.msrb.mxu3 %v3839_v36  ;;  %v3806_v36 = vld [vmem:[%s4136_s12 + $0x48] sm:$0xf0]  ;;  %1070 = vst [vmem:[#allocation2 + $0x24] sm:$0x1] %v4009_v6 }
  0x31   : > { %1025 = vmatpush.bf16.msrb.mxu1 %v3855_v35  ;;  %v3091_v35 = vld [vmem:[%s4136_s12 + $0x38] sm:$0xf]  ;;  %1071 = vst [vmem:[#allocation2 + $0x28] sm:$0xf] %v4009_v6 }
  0x32   : > { %996 = vmatpush.bf16.msrb.mxu0 %v3847_v37  ;;  %v3813_v37 = vld [vmem:[%s4136_s12 + $0x84] sm:$0xf]  ;;  %1072 = vst [vmem:[#allocation2 + $0x2c] sm:$0x1] %v4009_v6 }
  0x33   : > { %1073 = vst [vmem:[#allocation2 + $0x30] sm:$0xf] %v4009_v6 }
  0x34   : > { %968 = vmatpush.bf16.msrb.mxu3 %v3838_v39  ;;  %v3124_v39 = vor.u32 %v3815_v34, %v3123_v33  ;;  %1074 = vst [vmem:[#allocation2 + $0x34] sm:$0x1] %v4009_v6  ;;  %v3871_v33 = vld [vmem:[%s4911_s6 + $0x50] sm:$0xff] }
  0x35   : > { %1026 = vmatpush.bf16.msrb.mxu1 %v3854_v38  ;;  %v3125_v38 = vld [vmem:[%s4136_s12 + $0x94] sm:$0xf0]  ;;  %1075 = vst [vmem:[#allocation2 + $0x38] sm:$0xf] %v4009_v6 }
  0x36   : > { %997 = vmatpush.bf16.msrb.mxu0 %v3846_v40  ;;  %v3092_v40 = vor.u32 %v3806_v36, %v3091_v35  ;;  %1076 = vst [vmem:[#allocation2 + $0x3c] sm:$0x1] %v4009_v6  ;;  %v3890_v36 = vld [vmem:[%s4911_s6 + $0xc8] sm:$0xff] }
  0x37   : > { %1077 = vst [vmem:[#allocation2 + $0x40] sm:$0xf] %v4009_v6 }
  0x38   : > { %969 = vmatpush.bf16.msrb.mxu3 %v3837_v42  ;;  %v3111_v42 = vld [vmem:[%s4136_s12 + $0x60] sm:$0xf]  ;;  %1078 = vst [vmem:[#allocation2 + $0x44] sm:$0x1] %v4009_v6 }
  0x39   : > { %1027 = vmatpush.bf16.msrb.mxu1 %v3853_v41  ;;  %v3128_v41 = vor.u32 %v3813_v37, %v3125_v38  ;;  %v3112_v44 = vor.u32 %v3811_v43, %v3111_v42  ;;  %1079 = vst [vmem:[#allocation2 + $0x48] sm:$0xf] %v4009_v6  ;;  %v3877_v38 = vld [vmem:[%s4911_s6 + $0x80] sm:$0xff] }
  0x3a   : > { %998 = vmatpush.bf16.msrb.mxu0 %v3845_v45  ;;  %v3131_v45 = vld [vmem:[%s4136_s12 + $0x88] sm:$0xf]  ;;  %1080 = vst [vmem:[#allocation2 + $0x4c] sm:$0x1] %v4009_v6  ;;  %v3889_v42 = vld [vmem:[%s4911_s6 + $0xc0] sm:$0xff]  ;;  %v3904_v6 = vld [vmem:[%s4911_s6 + $0x138] sm:$0xff] }
  0x3b   : > { %450 = vmatmul.bf16.gmra.mxu3 %v3788_v50  ;;  %440 = vmatmul.bf16.gmra.mxu0 %v3786_v54  ;;  %v3132_v47 = vor.u32 %v3816_v46, %v3131_v45  ;;  %v3867_v50 = vld [vmem:[%s4911_s6 + $0x30] sm:$0xff]  ;;  %v3866_v54 = vld [vmem:[%s4911_s6 + $0x28] sm:$0xff]  ;;  %v3869_v46 = vld [vmem:[%s4911_s6 + $0x40] sm:$0xff] }
  0x3c   : > { %970 = vmatpush.bf16.msrb.mxu3 %v3836_v49  ;;  %921 = vmatmul.bf16.gmra.mxu1 %v3076_v51 }
  0x3d   : > { %1028 = vmatpush.bf16.msrb.mxu1 %v3852_v48  ;;  %950 = vmatmul.bf16.gmra.mxu2 %v3080_v52  ;;  %v3868_v48 = vld [vmem:[%s4911_s6 + $0x38] sm:$0xff] }
  0x3e   : > { %999 = vmatpush.bf16.msrb.mxu0 %v3844_v53  ;;  %1332 = vmatpush.bf16.msrb.mxu2 %v3868_v48 }
  0x40   : > { %971 = vmatpush.bf16.msrb.mxu3 %v3835_v56 }
  0x41   : > { %1029 = vmatpush.bf16.msrb.mxu1 %v3851_v55 }
  0x42   : > { %1000 = vmatpush.bf16.msrb.mxu0 %v3843_v57  ;;  %1333 = vmatpush.bf16.msrb.mxu2 %v3867_v50 }
  0x44   : > { %972 = vmatpush.bf16.msrb.mxu3 %v3834_v59 }
  0x45   : > { %1030 = vmatpush.bf16.msrb.mxu1 %v3850_v58  ;;  %v3865_v58 = vld [vmem:[%s4911_s6 + $0x20] sm:$0xff] }
  0x46   : > { %1001 = vmatpush.bf16.msrb.mxu0 %v3842_v60  ;;  %1334 = vmatpush.bf16.msrb.mxu2 %v3866_v54 }
  0x48   : > { %973 = vmatpush.bf16.msrb.mxu3 %v3833_v62  ;;  %v3876_v62 = vld [vmem:[%s4911_s6 + $0x78] sm:$0xff] }
  0x49   : > { %1031 = vmatpush.bf16.msrb.mxu1 %v3849_v61  ;;  %v3864_v61 = vld [vmem:[%s4911_s6 + $0x18] sm:$0xff] }
  0x4a   : > { %1002 = vmatpush.bf16.msrb.mxu0 %v3841_v3  ;;  %1335 = vmatpush.bf16.msrb.mxu2 %v3865_v58  ;;  %v3896_v3 = vld [vmem:[%s4911_s6 + $0xf8] sm:$0xff] }
  0x4b   : > { %974 = vmatmul.bf16.vlgmr.msrb.gmra.mxu3 %v3064_v9 }
  0x4c   : > { %926 = vmatmul.bf16.gmra.mxu1 %v3096_v8  ;;  %1581 = vmatpush.bf16.msra.mxu3 %v3876_v62  ;;  %v3882_v8 = vld [vmem:[%s4911_s6 + $0xa8] sm:$0xff] }
  0x4d   : > { %955 = vmatmul.bf16.gmra.mxu2 %v3100_v10  ;;  %1003 = vmatmul.bf16.vlgmr.msrb.gmra.mxu0 %v3068_v11  ;;  %v3875_v10 = vld [vmem:[%s4911_s6 + $0x70] sm:$0xff] }
  0x4e   : > { %1336 = vmatpush.bf16.msrb.mxu2 %v3864_v61  ;;  %1758 = vmatpush.bf16.msra.mxu0 %v3884_v63 }
  0x4f   : > { %1892 = vmatpush.bf16.msra.mxu1 %v3896_v3 }
  0x50   : > { %1582 = vmatpush.bf16.msra.mxu3 %v3875_v10 }
  0x52   : > { %1759 = vmatpush.bf16.msra.mxu0 %v3883_v4  ;;  %1337 = vmatpush.bf16.msrb.mxu2 %v3863_v16 }
  0x53   : > { %1893 = vmatpush.bf16.msra.mxu1 %v3895_v7 }
  0x54   : > { %1583 = vmatpush.bf16.msra.mxu3 %v3874_v15  ;;  %v1179_v15 = vld [vmem:[#allocation2 + $0xc] sm:$0x1] }
  0x56   : > { %1760 = vmatpush.bf16.msra.mxu0 %v3882_v8 }
  0x57   : > { %1894 = vmatpush.bf16.msra.mxu1 %v3894_v12 }
  0x5a   : > { %1761 = vmatpush.bf16.msra.mxu0 %v3881_v14 }
  0x5b   : > { %979 = vmatmul.bf16.gmra.mxu3 %v3084_v21  ;;  %1895 = vmatpush.bf16.msra.mxu1 %v3893_v17 }
  0x5c   : > { %931 = vmatmul.bf16.gmra.mxu1 %v3116_v20  ;;  %v3873_v20 = vld [vmem:[%s4911_s6 + $0x60] sm:$0xff] }
  0x5d   : > { %960 = vmatmul.bf16.gmra.mxu2 %v3120_v22  ;;  %1008 = vmatmul.bf16.gmra.mxu0 %v3088_v23  ;;  %v3862_v22 = vld [vmem:[%s4911_s6 + $0x8] sm:$0xff]  ;;  %v3892_v23 = vld [vmem:[%s4911_s6 + $0xd8] sm:$0xff] }
  0x5e   : > { %1762 = vmatpush.bf16.msra.mxu0 %v3880_v19  ;;  %1584 = vmatpush.bf16.msra.mxu3 %v3873_v20  ;;  %v1369_v20 = vld [vmem:[#allocation2] sm:$0xf] }
  0x5f   : > { %1338 = vmatpush.bf16.msrb.mxu2 %v3862_v22  ;;  %1896 = vmatpush.bf16.msra.mxu1 %v3892_v23 }
  0x62   : > { %1763 = vmatpush.bf16.msra.mxu0 %v3879_v25  ;;  %1585 = vmatpush.bf16.msra.mxu3 %v3872_v28  ;;  %v1618_v28 = vld [vmem:[#allocation2] sm:$0xe] }
  0x63   : > { %1339 = vmatpush.bf16.msrb.mxu2 %v3861_v29  ;;  %v1389_v29 = vshrl.u32 %v1369_v20, 16 }
  0x66   : > { %1586 = vmatpush.bf16.msra.mxu3 %v3871_v33 }
  0x67   : > { %2138 = vmatpush.bf16.msra.mxu2 %v3904_v6 }
  0x6b   : > { %984 = vmatmul.bf16.gmra.mxu3 %v3104_v30  ;;  %v3891_v30 = vld [vmem:[%s4911_s6 + $0xd0] sm:$0xff] }
  0x6c   : > { %1032 = vmatmul.bf16.vlgmr.msrb.gmra.mxu1 %v3072_v31  ;;  %v3878_v31 = vld [vmem:[%s4911_s6 + $0x88] sm:$0xff] }
  0x6d   : > { %1013 = vmatmul.bf16.gmra.mxu0 %v3108_v32  ;;  %1897 = vmatpush.bf16.msra.mxu1 %v3891_v30  ;;  %v1392_v30 = vshll.u32 %v1369_v20, 16 }
  0x6e   : > { %1764 = vmatpush.bf16.msra.mxu0 %v3878_v31 }
  0x71   : > { %1898 = vmatpush.bf16.msra.mxu1 %v3890_v36  ;;  %v3903_v36 = vld [vmem:[%s4911_s6 + $0x130] sm:$0xff] }
  0x72   : > { %1765 = vmatpush.bf16.msra.mxu0 %v3877_v38  ;;  %v3389_v38 = vrot.slane %v1618_v28, 9  ;;  %2139 = vmatpush.bf16.msra.mxu2 %v3903_v36 }
  0x75   : > { %1899 = vmatpush.bf16.msra.mxu1 %v3889_v42 }
  0x7b   : > { %989 = vmatmul.bf16.gmra.mxu3 %v3124_v39 }
  0x7c   : > { %1037 = vmatmul.bf16.gmra.mxu1 %v3092_v40 }
  0x7d   : > { %1018 = vmatmul.bf16.gmra.mxu0 %v3128_v41  ;;  %v3870_v41 = vld [vmem:[%s4911_s6 + $0x48] sm:$0xff] }
  0x7e   : > { %1587 = vmatpush.bf16.msra.mxu3 %v3870_v41 }
  0x82   : > { %1588 = vmatpush.bf16.msra.mxu3 %v3869_v46  ;;  %v1185_v46 = vld [vmem:[#allocation2 + $0x14] sm:$0x1] }
  0x8c   : > { %1042 = vmatmul.bf16.gmra.mxu1 %v3112_v44 }
  0x9c   : > { %1047 = vmatmul.bf16.gmra.mxu1 %v3132_v47 }
  0xa8   : > { %v4281_v52 = vpop.f32.mrf.mxu0 }
  0xa9   : > { %v4274_v49 = vpop.f32.mrf.mxu1 }
  0xaa   : > { %v918_v32 = vadd.f32 %v4384_v26, %v4274_v49 }
  0xae   : > { %v4279_v51 = vpop.f32.mrf.mxu3 }
  0xb0   : > { %v4290_v56 = vpop.f32.mrf.mxu0  ;;  %v946_v9 = vpop.f32.mrf.mxu2 }
  0xb1   : > { %v4283_v53 = vpop.f32.mrf.mxu1  ;;  %v947_v37 = vadd.f32 %v946_v9, %v918_v32 }
  0xb2   : > { %v920_v44 = vadd.f32 %v4384_v26, %v4283_v53 }
  0xb6   : > { %v4288_v55 = vpop.f32.mrf.mxu3 }
  0xb8   : > { %v4310_v0 = vpop.f32.mrf.mxu0  ;;  %v948_v24 = vpop.f32.mrf.mxu2 }
  0xb9   : > { %v4292_v57 = vpop.f32.mrf.mxu1  ;;  %v949_v48 = vadd.f32 %v948_v24, %v920_v44 }
  0xba   : > { %v923_v63 = vadd.f32 %v4384_v26, %v4292_v57 }
  0xbe   : > { %v4297_v59 = vpop.f32.mrf.mxu3 }
  0xc0   : > { %v4322_v5 = vpop.f32.mrf.mxu0  ;;  %v951_v39 = vpop.f32.mrf.mxu2 }
  0xc1   : > { %v4299_v60 = vpop.f32.mrf.mxu1  ;;  %v952_v8 = vadd.f32 %v951_v39, %v923_v63 }
  0xc2   : > { %v925_v31 = vadd.f32 %v4384_v26, %v4299_v60 }
  0xc6   : > { %v4312_v1 = vpop.f32.mrf.mxu3 }
  0xc8   : > { %v953_v61 = vpop.f32.mrf.mxu2 }
  0xc9   : > { %v4314_v2 = vpop.f32.mrf.mxu1 }
  0xca   : > { %v1004_v18 = vpop.f32.mrf.mxu0 }
  0xce   : > { %v975_v13 = vpop.f32.mrf.mxu3 }
  0xcf   : > { %v976_v40 = vadd.f32 %v975_v13, %v947_v37  ;;  %v1173_v13 = vld [vmem:[#allocation2 + $0x8] sm:$0xf] }
  0xd0   : > { %v956_v32 = vpop.f32.mrf.mxu2 }
  0xd1   : > { %v4337_v11 = vpop.f32.mrf.mxu1  ;;  %v1005_v45 = vadd.f32 %v1004_v18, %v976_v40  ;;  %v954_v40 = vadd.f32 %v953_v61, %v925_v31  ;;  %v3295_v61 = vld [vmem:[#allocation2] sm:$0xf] }
  0xd2   : > { %v1006_v34 = vpop.f32.mrf.mxu0 }
  0xd6   : > { %v977_v27 = vpop.f32.mrf.mxu3 }
  0xd7   : > { %v978_v54 = vadd.f32 %v977_v27, %v949_v48  ;;  %v1370_v27 = vld [vmem:[#allocation2 + $0x4] sm:$0x1]  ;;  %v1394_v48 = vrot.slane %v1392_v30, 5  ;;  %v1188_v30 = vld [vmem:[#allocation2 + $0x18] sm:$0xf] }
  0xd8   : > { %v1647_v39 = vrot.slane %v1370_v27, 5  ;;  %v1398_v63 = vshll.u32 %v1370_v27, 16  ;;  %v958_v27 = vpop.f32.mrf.mxu2 }
  0xd9   : > { %v4367_v21 = vpop.f32.mrf.mxu1  ;;  %v1007_v53 = vadd.f32 %v1006_v34, %v978_v54 }
  0xda   : > { %v1009_v50 = vpop.f32.mrf.mxu0 }
  0xde   : > { %v980_v43 = vpop.f32.mrf.mxu3 }
  0xdf   : > { %v981_v16 = vadd.f32 %v980_v43, %v952_v8 }
  0xe1   : > { %v4408_v35 = vpop.f32.mrf.mxu1  ;;  %v1010_v33 = vadd.f32 %v1009_v50, %v981_v16 }
  0xe2   : > { %v1011_v22 = vpop.f32.mrf.mxu0 }
  0xe6   : > { %v982_v3 = vpop.f32.mrf.mxu3 }
  0xe9   : > { %v1033_v47 = vpop.f32.mrf.mxu1 }
  0xea   : > { %v1034_v49 = vadd.f32 %v1033_v47, %v1005_v45  ;;  %v1182_v45 = vld [vmem:[#allocation2 + $0x10] sm:$0xf]  ;;  %v1391_v47 = vrot.slane %v1389_v29, 4 }
  0xec   : > { %v1053_v58 = vmax.f32 %v1034_v49, 0.0  ;;  %v983_v49 = vadd.f32 %v982_v3, %v954_v40  ;;  %v928_v3 = vadd.f32 %v4384_v26, %v4314_v2  ;;  %v1400_v2 = vrot.slane %v1398_v63, 5 }
  0xee   : > { %v1081_v62 = vpack.c.bf16 %v1053_v58, %v1053_v58  ;;  %v985_v41 = vpop.f32.mrf.mxu3  ;;  %v1012_v16 = vadd.f32 %v1011_v22, %v983_v49  ;;  %v957_v20 = vadd.f32 %v956_v32, %v928_v3  ;;  %v930_v49 = vadd.f32 %v4384_v26, %v4337_v11  ;;  %v3901_v3 = vld [vmem:[%s4911_s6 + $0x120] sm:$0xff] }
  0xf0   : > { %v1090_v4 = vshrl.u32 %v1081_v62, 16  ;;  %v1093_v10 = vshll.u32 %v1081_v62, 16  ;;  %v1648_v62 = vsel %vm4452_vm8, %v3389_v38, %v1647_v39  ;;  %v986_v38 = vadd.f32 %v985_v41, %v957_v20 }
  0xf1   : > { %v1035_v7 = vpop.f32.mrf.mxu1  ;;  %v959_v11 = vadd.f32 %v958_v27, %v930_v49  ;;  %v1197_v27 = vld [vmem:[#allocation2 + $0x24] sm:$0x1] }
  0xf2   : > { %v1092_v9 = vrot.slane %v1090_v4, 7  ;;  %v1036_v57 = vadd.f32 %v1035_v7, %v1007_v53 }
  0xf4   : > { %v1095_v17 = vor.u32 %v1093_v10, %v1092_v9  ;;  %v1096_v18 = vrot.slane %v1092_v9, 4  ;;  %v1054_v19 = vmax.f32 %v1036_v57, 0.0  ;;  %v1014_v9 = vpop.f32.mrf.mxu0 }
  0xf6   : > { %v1174_v23 = vsel %vm4433_vm4, %v1095_v17, %v1173_v13  ;;  %v1180_v24 = vsel %vm4437_vm5, %v1096_v18, %v1179_v15  ;;  %v1082_v25 = vpack.c.bf16 %v1054_v19, %v1054_v19  ;;  %v1395_v15 = vor.u32 %v1394_v48, %v1391_v47  ;;  %v3902_v19 = vld [vmem:[%s4911_s6 + $0x128] sm:$0xff]  ;;  %v987_v39 = vpop.f32.mrf.mxu3 }
  0xf7   : > { %1175 = vst [vmem:[#allocation2 + $0x8] sm:$0xf] %v1174_v23  ;;  %2140 = vmatpush.bf16.msra.mxu2 %v3902_v19 }
  0xf8   : > { %1181 = vst [vmem:[#allocation2 + $0xc] sm:$0x1] %v1180_v24  ;;  %v1098_v34 = vshrl.u32 %v1082_v25, 16  ;;  %v1101_v43 = vshll.u32 %v1082_v25, 16  ;;  %v1694_v24 = vunpack.c.l.b16 %v1648_v62  ;;  %v1396_v36 = vrot.slane %v1395_v15, 4 }
  0xf9   : > { %v1038_v37 = vpop.f32.mrf.mxu1 }
  0xfa   : > { %v1100_v42 = vrot.slane %v1098_v34, 7  ;;  %v1039_v44 = vadd.f32 %v1038_v37, %v1010_v33  ;;  %v1191_v33 = vld [vmem:[#allocation2 + $0x1c] sm:$0x1] }
  0xfb   : > { %2141 = vmatpush.bf16.msra.mxu2 %v3901_v3 }
  0xfc   : > { %v1103_v50 = vor.u32 %v1101_v43, %v1100_v42  ;;  %v1104_v54 = vrot.slane %v1100_v42, 4  ;;  %v1055_v58 = vmax.f32 %v1039_v44, 0.0 }
  0xfe   : > { %v1183_v53 = vsel %vm4433_vm4, %v1103_v50, %v1182_v45  ;;  %v1186_v4 = vsel %vm4437_vm5, %v1104_v54, %v1185_v46  ;;  %v1083_v6 = vpack.c.bf16 %v1055_v58, %v1055_v58  ;;  %v3857_v7 = vld [vmem:[#allocation2 + $0x4] sm:$0xf0] }
  0xff   : > { %v1619_v8 = vld [vmem:[#allocation2 + $0x8] sm:$0xe]  ;;  %1184 = vst [vmem:[#allocation2 + $0x10] sm:$0xf] %v1183_v53  ;;  %v3296_v10 = vor.u32 %v3857_v7, %v3295_v61  ;;  %v1372_v57 = vld [vmem:[#allocation2 + $0xc] sm:$0x1]  ;;  %v1401_v53 = vsel %vm4471_vm11, %v1396_v36, %v1400_v2  ;;  %v1015_v7 = vadd.f32 %v1014_v9, %v986_v38 }
 0x100   : > { %v3390_v13 = vrot.slane %v1619_v8, 9  ;;  %1187 = vst [vmem:[#allocation2 + $0x14] sm:$0x1] %v1186_v4  ;;  %v1106_v17 = vshrl.u32 %v1083_v6, 16  ;;  %v1651_v18 = vrot.slane %v1372_v57, 5  ;;  %v1109_v29 = vshll.u32 %v1083_v6, 16 }
 0x101   : > { %v1040_v23 = vpop.f32.mrf.mxu1  ;;  %1340 = vmatmul.bf16.vlgmr.msrb.gmra.mxu2 %v3296_v10  ;;  %v1371_v25 = vld [vmem:[#allocation2 + $0x8] sm:$0xf]  ;;  %v1412_v48 = vshll.u32 %v1372_v57, 16  ;;  %v1016_v10 = vpop.f32.mrf.mxu0  ;;  %v3924_v9 = vld [vmem:[%s4911_s6 + $0x1b8] sm:$0xff]  ;;  %v1194_v2 = vld [vmem:[#allocation2 + $0x20] sm:$0xf] }
 0x102   : > { %v1108_v28 = vrot.slane %v1106_v17, 7  ;;  %v1041_v31 = vadd.f32 %v1040_v23, %v1012_v16  ;;  %v1652_v22 = vsel %vm4452_vm8, %v3390_v13, %v1651_v18  ;;  %v1403_v37 = vshrl.u32 %v1371_v25, 16  ;;  %v3463_v58 = vld [vmem:[#allocation2 + $0x8] sm:$0xf]  ;;  %2447 = vmatpush.bf16.msrb.mxu0 %v3924_v9 }
 0x103   : > { %v1695_v34 = vunpack.c.l.b16 %v1652_v22  ;;  %v1406_v32 = vshll.u32 %v1371_v25, 16  ;;  %v1414_v15 = vrot.slane %v1412_v48, 5  ;;  %v988_v25 = vadd.f32 %v987_v39, %v959_v11 }
 0x104   : > { %v1111_v40 = vor.u32 %v1109_v29, %v1108_v28  ;;  %v1112_v42 = vrot.slane %v1108_v28, 4  ;;  %v1056_v43 = vmax.f32 %v1041_v31, 0.0  ;;  %v1405_v46 = vrot.slane %v1403_v37, 4  ;;  %v961_v31 = vpop.f32.mrf.mxu2 }
 0x105   : > { %v1702_v45 = vpack.c.b16 %v1695_v34, %v1694_v24  ;;  %v1408_v47 = vrot.slane %v1406_v32, 5  ;;  %v1517_v24 = vunpack.c.l.b16 %v1401_v53  ;;  %v933_v37 = vadd.f32 %v4384_v26, %v4367_v21 }
 0x106   : > { %v1189_v41 = vsel %vm4433_vm4, %v1111_v40, %v1188_v30  ;;  %v1192_v50 = vsel %vm4437_vm5, %v1112_v42, %v1191_v33  ;;  %v1084_v54 = vpack.c.bf16 %v1056_v43, %v1056_v43  ;;  %v3885_v61 = vld [vmem:[#allocation2 + $0xc] sm:$0xf0]  ;;  %v4501_v40 = vld [vmem:[%s4911_s6 + $0x1f8] sm:$0xff]  ;;  %v990_v42 = vpop.f32.mrf.mxu3 }
 0x107   : > { %v1620_v62 = vld [vmem:[#allocation2 + $0x10] sm:$0xe]  ;;  %1190 = vst [vmem:[#allocation2 + $0x18] sm:$0xf] %v1189_v41  ;;  %1766 = vmatmul.bf16.vlgmr.msra.gmra.mxu0 %v1702_v45  ;;  %v3464_v63 = vor.u32 %v3885_v61, %v3463_v58  ;;  %v1409_v4 = vor.u32 %v1408_v47, %v1405_v46  ;;  %v4483_v6 = vld [vmem:[#allocation2 + $0x14] sm:$0x1]  ;;  %v962_v41 = vadd.f32 %v961_v31, %v933_v37 }
 0x108   : > { %1193 = vst [vmem:[#allocation2 + $0x1c] sm:$0x1] %v1192_v50  ;;  %v1114_v8 = vshrl.u32 %v1084_v54, 16  ;;  %v3391_v16 = vrot.slane %v1620_v62, 9  ;;  %v1655_v17 = vrot.slane %v4483_v6, 5  ;;  %v1117_v20 = vshll.u32 %v1084_v54, 16  ;;  %3972 = vmatpush.bf16.msrb.mxu1 %v4501_v40 }
 0x109   : > { %v1043_v57 = vpop.f32.mrf.mxu1  ;;  %1900 = vmatmul.bf16.vlgmr.msra.gmra.mxu1 %v3464_v63  ;;  %v1410_v13 = vrot.slane %v1409_v4, 4  ;;  %v1373_v18 = vld [vmem:[#allocation2 + $0x10] sm:$0xf]  ;;  %v1017_v63 = vadd.f32 %v1016_v10, %v988_v25  ;;  %v991_v11 = vadd.f32 %v990_v42, %v962_v41  ;;  %v4546_v42 = vld [vmem:[#allocation2 + $0x8] sm:$0xf] }
 0x10a   : > { %v1116_v19 = vrot.slane %v1114_v8, 7  ;;  %v1044_v23 = vadd.f32 %v1043_v57, %v1015_v7  ;;  %v1417_v29 = vshrl.u32 %v1373_v18, 16  ;;  %v1420_v30 = vshll.u32 %v1373_v18, 16  ;;  %v3299_v21 = vld [vmem:[#allocation2 + $0x10] sm:$0xf] }
 0x10b   : > { %v1415_v28 = vsel %vm4471_vm11, %v1410_v13, %v1414_v15  ;;  %v1656_v32 = vsel %vm4452_vm8, %v3391_v16, %v1655_v17  ;;  %v3923_v62 = vld [vmem:[%s4911_s6 + $0x1b0] sm:$0xff]  ;;  %v1200_v8 = vld [vmem:[#allocation2 + $0x28] sm:$0xf]  ;;  %v1426_v15 = vshll.u32 %v4483_v6, 16  ;;  %v3900_v16 = vld [vmem:[%s4911_s6 + $0x118] sm:$0xff] }
 0x10c   : > { %v1119_v22 = vor.u32 %v1117_v20, %v1116_v19  ;;  %v1120_v33 = vrot.slane %v1116_v19, 4  ;;  %v1057_v34 = vmax.f32 %v1044_v23, 0.0  ;;  %v1518_v36 = vunpack.c.l.b16 %v1415_v28  ;;  %2448 = vmatpush.bf16.msrb.mxu0 %v3923_v62  ;;  %v1203_v17 = vld [vmem:[#allocation2 + $0x2c] sm:$0x1]  ;;  %v3912_v23 = vld [vmem:[%s4911_s6 + $0x178] sm:$0xff]  ;;  %2142 = vmatpush.bf16.msra.mxu2 %v3900_v16  ;;  %v4532_v28 = vld [vmem:[%s4911_s6 + $0x1f0] sm:$0xff] }
 0x10d   : > { %v1419_v38 = vrot.slane %v1417_v29, 4  ;;  %v1422_v39 = vrot.slane %v1420_v30, 5  ;;  %v1696_v57 = vunpack.c.l.b16 %v1656_v32  ;;  %v3922_v29 = vld [vmem:[%s4911_s6 + $0x1a8] sm:$0xff]  ;;  %2312 = vmatpush.bf16.msrb.mxu3 %v3912_v23  ;;  %3973 = vmatpush.bf16.msrb.mxu1 %v4532_v28  ;;  %v3920_v16 = vld [vmem:[%s4911_s6 + $0x198] sm:$0xff] }
 0x10e   : > { %v1195_v43 = vsel %vm4433_vm4, %v1119_v22, %v1194_v2  ;;  %v1198_v45 = vsel %vm4437_vm5, %v1120_v33, %v1197_v27  ;;  %v1085_v46 = vpack.c.bf16 %v1057_v34, %v1057_v34  ;;  %v1525_v47 = vpack.c.b16 %v1518_v36, %v1517_v24  ;;  %v3858_v48 = vld [vmem:[#allocation2 + $0x14] sm:$0xf0]  ;;  %v1019_v24 = vpop.f32.mrf.mxu0  ;;  %v3899_v27 = vld [vmem:[%s4911_s6 + $0x110] sm:$0xff] }
 0x10f   : > { %v1621_v49 = vld [vmem:[#allocation2 + $0x18] sm:$0xe]  ;;  %1196 = vst [vmem:[#allocation2 + $0x20] sm:$0xf] %v1195_v43  ;;  %v3300_v50 = vor.u32 %v3858_v48, %v3299_v21  ;;  %v4507_v54 = vld [vmem:[#allocation2 + $0x1c] sm:$0x1]  ;;  %v1423_v61 = vor.u32 %v1422_v39, %v1419_v38  ;;  %v935_v36 = vadd.f32 %v4384_v26, %v4408_v35  ;;  %v963_v43 = vpop.f32.mrf.mxu2 }
 0x110   : > { %v3392_v58 = vrot.slane %v1621_v49, 9  ;;  %1199 = vst [vmem:[#allocation2 + $0x24] sm:$0x1] %v1198_v45  ;;  %v1122_v53 = vshrl.u32 %v1085_v46, 16  ;;  %1589 = vmatmul.bf16.vlgmr.msra.gmra.mxu3 %v1525_v47  ;;  %v1659_v4 = vrot.slane %v4507_v54, 5  ;;  %v1125_v7 = vshll.u32 %v1085_v46, 16  ;;  %2449 = vmatpush.bf16.msrb.mxu0 %v3922_v29 }
 0x111   : > { %v1045_v3 = vpop.f32.mrf.mxu1  ;;  %1345 = vmatmul.bf16.gmra.mxu2 %v3300_v50  ;;  %v1375_v13 = vld [vmem:[#allocation2 + $0x18] sm:$0xf]  ;;  %v4523_v25 = vrot.slane %v1423_v61, 4  ;;  %v1440_v2 = vshll.u32 %v4507_v54, 16  ;;  %v3911_v34 = vld [vmem:[%s4911_s6 + $0x170] sm:$0xff]  ;;  %v3921_v39 = vld [vmem:[%s4911_s6 + $0x1a0] sm:$0xff]  ;;  %v1020_v49 = vadd.f32 %v1019_v24, %v991_v11  ;;  %v992_v61 = vpop.f32.mrf.mxu3 }
 0x112   : > { %v1124_v10 = vrot.slane %v1122_v53, 7  ;;  %v1046_v18 = vadd.f32 %v1045_v3, %v1017_v63  ;;  %v1660_v19 = vsel %vm4452_vm8, %v3392_v58, %v1659_v4  ;;  %v1431_v20 = vshrl.u32 %v1375_v13, 16  ;;  %v3467_v32 = vld [vmem:[#allocation2 + $0x18] sm:$0xf]  ;;  %v4555_v48 = vld [vmem:[%s4911_s6 + $0x1e8] sm:$0xff]  ;;  %2143 = vmatpush.bf16.msra.mxu2 %v3899_v27  ;;  %2313 = vmatpush.bf16.msrb.mxu3 %v3911_v34  ;;  %v3897_v27 = vld [vmem:[%s4911_s6 + $0x100] sm:$0xff] }
 0x113   : > { %v1697_v9 = vunpack.c.l.b16 %v1660_v19  ;;  %v1434_v6 = vshll.u32 %v1375_v13, 16  ;;  %v1428_v47 = vrot.slane %v1426_v15, 5  ;;  %v3898_v58 = vld [vmem:[%s4911_s6 + $0x108] sm:$0xff]  ;;  %v1442_v53 = vrot.slane %v1440_v2, 5  ;;  %3974 = vmatpush.bf16.msrb.mxu1 %v4555_v48  ;;  %v1206_v24 = vld [vmem:[#allocation2 + $0x30] sm:$0xf] }
 0x114   : > { %v1127_v30 = vor.u32 %v1125_v7, %v1124_v10  ;;  %v1128_v31 = vrot.slane %v1124_v10, 4  ;;  %v1058_v22 = vmax.f32 %v1046_v18, 0.0  ;;  %v1433_v33 = vrot.slane %v1431_v20, 4  ;;  %v3910_v4 = vld [vmem:[%s4911_s6 + $0x168] sm:$0xff]  ;;  %2450 = vmatpush.bf16.msrb.mxu0 %v3921_v39  ;;  %v4577_v20 = vld [vmem:[%s4911_s6 + $0x1e0] sm:$0xff]  ;;  %v4592_v39 = vld [vmem:[%s4911_s6 + $0x1d8] sm:$0xff] }
 0x115   : > { %v1703_v37 = vpack.c.b16 %v1697_v9, %v1696_v57  ;;  %v1436_v38 = vrot.slane %v1434_v6, 5  ;;  %v1429_v63 = vsel %vm4471_vm11, %v4523_v25, %v1428_v47  ;;  %v1946_v11 = vshrl.u32 %v4546_v42, 16  ;;  %v1209_v9 = vld [vmem:[#allocation2 + $0x34] sm:$0x1] }
 0x116   : > { %v1201_v45 = vsel %vm4433_vm4, %v1127_v30, %v1200_v8  ;;  %v1204_v46 = vsel %vm4437_vm5, %v1128_v31, %v1203_v17  ;;  %v1086_v26 = vpack.c.bf16 %v1058_v22, %v1058_v22  ;;  %v3886_v35 = vld [vmem:[#allocation2 + $0x1c] sm:$0xf0]  ;;  %v964_v7 = vadd.f32 %v963_v43, %v935_v36  ;;  %2144 = vmatpush.bf16.msra.mxu2 %v3898_v58 }
 0x117   : > { %v1622_v21 = vld [vmem:[#allocation2 + $0x20] sm:$0xe]  ;;  %1202 = vst [vmem:[#allocation2 + $0x28] sm:$0xf] %v1201_v45  ;;  %1771 = vmatmul.bf16.gmra.mxu0 %v1703_v37  ;;  %v3468_v41 = vor.u32 %v3886_v35, %v3467_v32  ;;  %v1437_v50 = vor.u32 %v1436_v38, %v1433_v33  ;;  %v4557_v54 = vld [vmem:[#allocation2 + $0x24] sm:$0x1]  ;;  %v1519_v6 = vunpack.c.l.b16 %v1429_v63  ;;  %2314 = vmatpush.bf16.msrb.mxu3 %v3910_v4  ;;  %v1021_v33 = vpop.f32.mrf.mxu0 }
 0x118   : > { %1205 = vst [vmem:[#allocation2 + $0x2c] sm:$0x1] %v1204_v46  ;;  %v1130_v62 = vshrl.u32 %v1086_v26, 16  ;;  %v3393_v57 = vrot.slane %v1622_v21, 9  ;;  %v1663_v13 = vrot.slane %v4557_v54, 5  ;;  %v1133_v17 = vshll.u32 %v1086_v26, 16  ;;  %2451 = vmatpush.bf16.msrb.mxu0 %v3920_v16  ;;  %3975 = vmatpush.bf16.msrb.mxu1 %v4577_v20 }
 0x119   : > { %v1048_v8 = vpop.f32.mrf.mxu1  ;;  %1905 = vmatmul.bf16.gmra.mxu1 %v3468_v41  ;;  %v1438_v3 = vrot.slane %v1437_v50, 4  ;;  %v1377_v15 = vld [vmem:[#allocation2 + $0x20] sm:$0xf]  ;;  %v993_v23 = vadd.f32 %v992_v61, %v964_v7  ;;  %v3919_v21 = vld [vmem:[%s4911_s6 + $0x190] sm:$0xff]  ;;  %v1212_v7 = vld [vmem:[#allocation2 + $0x38] sm:$0xf] }
 0x11a   : > { %v1132_v10 = vrot.slane %v1130_v62, 7  ;;  %v1049_v18 = vadd.f32 %v1048_v8, %v1020_v49  ;;  %v1445_v19 = vshrl.u32 %v1377_v15, 16  ;;  %v1448_v2 = vshll.u32 %v1377_v15, 16  ;;  %v3303_v34 = vld [vmem:[#allocation2 + $0x20] sm:$0xf]  ;;  %2145 = vmatpush.bf16.msra.mxu2 %v3897_v27  ;;  %v3908_v15 = vld [vmem:[%s4911_s6 + $0x158] sm:$0xff] }
 0x11b   : > { %v1443_v25 = vsel %vm4471_vm11, %v1438_v3, %v1442_v53  ;;  %v1664_v36 = vsel %vm4452_vm8, %v3393_v57, %v1663_v13  ;;  %v3909_v38 = vld [vmem:[%s4911_s6 + $0x160] sm:$0xff]  ;;  %v1022_v61 = vadd.f32 %v1021_v33, %v993_v23  ;;  %v1949_v53 = vshll.u32 %v4546_v42, 16  ;;  %v3918_v42 = vld [vmem:[%s4911_s6 + $0x188] sm:$0xff]  ;;  %v1215_v23 = vld [vmem:[#allocation2 + $0x3c] sm:$0x1] }
 0x11c   : > { %v1135_v29 = vor.u32 %v1133_v17, %v1132_v10  ;;  %v1136_v30 = vrot.slane %v1132_v10, 4  ;;  %v1059_v31 = vmax.f32 %v1049_v18, 0.0  ;;  %v1520_v22 = vunpack.c.l.b16 %v1443_v25  ;;  %2315 = vmatpush.bf16.msrb.mxu3 %v3909_v38  ;;  %3976 = vmatpush.bf16.msrb.mxu1 %v4592_v39 }
 0x11d   : > { %v1447_v37 = vrot.slane %v1445_v19, 4  ;;  %v1450_v32 = vrot.slane %v1448_v2, 5  ;;  %v1698_v3 = vunpack.c.l.b16 %v1664_v36  ;;  %v1454_v13 = vshll.u32 %v4557_v54, 16  ;;  %2452 = vmatpush.bf16.msrb.mxu0 %v3919_v21  ;;  %v4620_v54 = vld [vmem:[%s4911_s6 + $0x1d0] sm:$0xff] }
 0x11e   : > { %v1207_v43 = vsel %vm4433_vm4, %v1135_v29, %v1206_v24  ;;  %v1210_v45 = vsel %vm4437_vm5, %v1136_v30, %v1209_v9  ;;  %v1087_v46 = vpack.c.bf16 %v1059_v31, %v1059_v31  ;;  %v1526_v26 = vpack.c.b16 %v1520_v22, %v1519_v6  ;;  %v3859_v35 = vld [vmem:[#allocation2 + $0x24] sm:$0xf0]  ;;  %v1931_v31 = vld [vmem:[#allocation2 + $0x10] sm:$0xf] }
 0x11f   : > { %v1623_v47 = vld [vmem:[#allocation2 + $0x28] sm:$0xe]  ;;  %1208 = vst [vmem:[#allocation2 + $0x30] sm:$0xf] %v1207_v43  ;;  %v3304_v49 = vor.u32 %v3859_v35, %v3303_v34  ;;  %v4602_v41 = vld [vmem:[#allocation2 + $0x2c] sm:$0x1]  ;;  %v1451_v58 = vor.u32 %v1450_v32, %v1447_v37 }
 0x120   : > { %v3394_v50 = vrot.slane %v1623_v47, 9  ;;  %1211 = vst [vmem:[#allocation2 + $0x34] sm:$0x1] %v1210_v45  ;;  %v1138_v62 = vshrl.u32 %v1087_v46, 16  ;;  %1594 = vmatmul.bf16.gmra.mxu3 %v1526_v26  ;;  %v1667_v63 = vrot.slane %v4602_v41, 5  ;;  %v1141_v4 = vshll.u32 %v1087_v46, 16  ;;  %3977 = vmatpush.bf16.msrb.mxu1 %v4620_v54 }
 0x121   : > { %v1050_v8 = vpop.f32.mrf.mxu1  ;;  %1350 = vmatmul.bf16.gmra.mxu2 %v3304_v49  ;;  %v1379_v57 = vld [vmem:[#allocation2 + $0x28] sm:$0xf]  ;;  %v4612_v16 = vrot.slane %v1946_v11, 4  ;;  %v4628_v11 = vld [vmem:[%s4911_s6 + $0x238] sm:$0xff]  ;;  %v1452_v9 = vrot.slane %v1451_v58, 4  ;;  %v1468_v6 = vshll.u32 %v4602_v41, 16  ;;  %2316 = vmatpush.bf16.msrb.mxu3 %v3908_v15 }
 0x122   : > { %v1140_v10 = vrot.slane %v1138_v62, 7  ;;  %v1051_v17 = vadd.f32 %v1050_v8, %v1022_v61  ;;  %v1668_v18 = vsel %vm4452_vm8, %v3394_v50, %v1667_v63  ;;  %v1459_v19 = vshrl.u32 %v1379_v57, 16  ;;  %2867 = vmatpush.bf16.msrb.mxu2 %v4628_v11  ;;  %v3471_v33 = vld [vmem:[#allocation2 + $0x28] sm:$0xf]  ;;  %v3907_v37 = vld [vmem:[%s4911_s6 + $0x150] sm:$0xff]  ;;  %2453 = vmatpush.bf16.msrb.mxu0 %v3918_v42  ;;  %v3917_v47 = vld [vmem:[%s4911_s6 + $0x180] sm:$0xff] }
 0x123   : > { %v1699_v24 = vunpack.c.l.b16 %v1668_v18  ;;  %v1462_v25 = vshll.u32 %v1379_v57, 16  ;;  %v1951_v36 = vrot.slane %v1949_v53, 5  ;;  %v4638_v32 = vld [vmem:[%s4911_s6 + $0x1c8] sm:$0xff]  ;;  %v1456_v26 = vrot.slane %v1454_v13, 5  ;;  %v4661_v18 = vld [vmem:[%s4911_s6 + $0x1c0] sm:$0xff] }
 0x124   : > { %v1143_v2 = vor.u32 %v1141_v4, %v1140_v10  ;;  %v1144_v27 = vrot.slane %v1140_v10, 4  ;;  %v1060_v29 = vmax.f32 %v1051_v17, 0.0  ;;  %v1461_v30 = vrot.slane %v1459_v19, 4  ;;  %v3906_v57 = vld [vmem:[%s4911_s6 + $0x148] sm:$0xff]  ;;  %3978 = vmatpush.bf16.msrb.mxu1 %v4638_v32  ;;  %v1218_v19 = vld [vmem:[#allocation2 + $0x40] sm:$0xf] }
 0x125   : > { %v1704_v22 = vpack.c.b16 %v1699_v24, %v1698_v3  ;;  %v1464_v34 = vrot.slane %v1462_v25, 5  ;;  %v1960_v50 = vshrl.u32 %v1931_v31, 16  ;;  %v1963_v58 = vshll.u32 %v1931_v31, 16  ;;  %2317 = vmatpush.bf16.msrb.mxu3 %v3907_v37  ;;  %v1221_v42 = vld [vmem:[#allocation2 + $0x44] sm:$0x1] }
 0x126   : > { %v1213_v38 = vsel %vm4433_vm4, %v1143_v2, %v1212_v7  ;;  %v1216_v43 = vsel %vm4437_vm5, %v1144_v27, %v1215_v23  ;;  %v1088_v45 = vpack.c.bf16 %v1060_v29, %v1060_v29  ;;  %v3887_v46 = vld [vmem:[#allocation2 + $0x2c] sm:$0xf0]  ;;  %v1457_v62 = vsel %vm4471_vm11, %v1452_v9, %v1456_v26  ;;  %2454 = vmatpush.bf16.msrb.mxu0 %v3917_v47  ;;  %v4673_v31 = vld [vmem:[#allocation2 + $0x14] sm:$0x1] }
 0x127   : > { %v1624_v35 = vld [vmem:[#allocation2 + $0x30] sm:$0xe]  ;;  %1214 = vst [vmem:[#allocation2 + $0x38] sm:$0xf] %v1213_v38  ;;  %1776 = vmatmul.bf16.gmra.mxu0 %v1704_v22  ;;  %v3472_v21 = vor.u32 %v3887_v46, %v3471_v33  ;;  %v1465_v49 = vor.u32 %v1464_v34, %v1461_v30  ;;  %v4648_v41 = vld [vmem:[#allocation2 + $0x34] sm:$0x1]  ;;  %v1952_v3 = vor.u32 %v1951_v36, %v4612_v16  ;;  %v1521_v24 = vunpack.c.l.b16 %v1457_v62 }
 0x128   : > { %1217 = vst [vmem:[#allocation2 + $0x3c] sm:$0x1] %v1216_v43  ;;  %v1146_v61 = vshrl.u32 %v1088_v45, 16  ;;  %v1470_v63 = vrot.slane %v1468_v6, 5  ;;  %v1149_v53 = vshll.u32 %v1088_v45, 16  ;;  %v3395_v7 = vrot.slane %v1624_v35, 9  ;;  %3979 = vmatpush.bf16.msrb.mxu1 %v4661_v18 }
 0x129   : > { %1910 = vmatmul.bf16.gmra.mxu1 %v3472_v21  ;;  %v1466_v4 = vrot.slane %v1465_v49, 4  ;;  %v1381_v8 = vld [vmem:[#allocation2 + $0x30] sm:$0xf]  ;;  %v1671_v15 = vrot.slane %v4648_v41, 5  ;;  %v1962_v9 = vrot.slane %v1960_v50, 4  ;;  %v1965_v25 = vrot.slane %v1963_v58, 5  ;;  %2318 = vmatpush.bf16.msrb.mxu3 %v3906_v57 }
 0x12a   : > { %v1148_v13 = vrot.slane %v1146_v61, 7  ;;  %v1473_v10 = vshrl.u32 %v1381_v8, 16  ;;  %v1476_v17 = vshll.u32 %v1381_v8, 16  ;;  %v4666_v16 = vld [vmem:[%s4911_s6 + $0x230] sm:$0xff]  ;;  %2693 = vmatpush.bf16.msra.mxu0 %v4501_v40  ;;  %v4671_v30 = vld [vmem:[#allocation2 + $0xc] sm:$0x1] }
 0x12b   : > { %v1471_v23 = vsel %vm4471_vm11, %v1466_v4, %v1470_v63  ;;  %2868 = vmatpush.bf16.msrb.mxu2 %v4666_v16  ;;  %v4676_v33 = vrot.slane %v1952_v3, 4  ;;  %v3905_v34 = vld [vmem:[%s4911_s6 + $0x140] sm:$0xff]  ;;  %v3307_v43 = vld [vmem:[#allocation2 + $0x30] sm:$0xf]  ;;  %v1672_v26 = vsel %vm4452_vm8, %v3395_v7, %v1671_v15  ;;  %v1955_v12 = vshll.u32 %v4671_v30, 16 }
 0x12c   : > { %v1151_v6 = vor.u32 %v1149_v53, %v1148_v13  ;;  %v1152_v2 = vrot.slane %v1148_v13, 4  ;;  %v1522_v27 = vunpack.c.l.b16 %v1471_v23  ;;  %v1475_v29 = vrot.slane %v1473_v10, 4  ;;  %v2488_v36 = vld [vmem:[#allocation2 + $0x20] sm:$0xf]  ;;  %v2490_v7 = vld [vmem:[#allocation2 + $0x28] sm:$0xf] }
 0x12d   : > { %v1478_v22 = vrot.slane %v1476_v17, 5  ;;  %v1482_v58 = vshll.u32 %v4648_v41, 16  ;;  %v1966_v61 = vor.u32 %v1965_v25, %v1962_v9  ;;  %v1700_v62 = vunpack.c.l.b16 %v1672_v26  ;;  %2319 = vmatpush.bf16.msrb.mxu3 %v3905_v34  ;;  %v3938_v13 = vld [vmem:[%s4911_s6 + $0x228] sm:$0xff] }
 0x12e   : > { %v1219_v40 = vsel %vm4433_vm4, %v1151_v6, %v1218_v19  ;;  %v1222_v37 = vsel %vm4437_vm5, %v1152_v2, %v1221_v42  ;;  %v1527_v38 = vpack.c.b16 %v1522_v27, %v1521_v24  ;;  %v3860_v45 = vld [vmem:[#allocation2 + $0x34] sm:$0xf0]  ;;  %2694 = vmatpush.bf16.msra.mxu0 %v4532_v28  ;;  %v1969_v4 = vshll.u32 %v4673_v31, 16 }
 0x12f   : > { %v1625_v46 = vld [vmem:[#allocation2 + $0x38] sm:$0xe]  ;;  %1220 = vst [vmem:[#allocation2 + $0x40] sm:$0xf] %v1219_v40  ;;  %v3308_v35 = vor.u32 %v3860_v45, %v3307_v43  ;;  %v1384_v47 = vld [vmem:[#allocation2 + $0x3c] sm:$0x1]  ;;  %v1479_v49 = vor.u32 %v1478_v22, %v1475_v29  ;;  %2869 = vmatpush.bf16.msrb.mxu2 %v3938_v13 }
 0x130   : > { %v3396_v21 = vrot.slane %v1625_v46, 9  ;;  %1223 = vst [vmem:[#allocation2 + $0x44] sm:$0x1] %v1222_v37  ;;  %1599 = vmatmul.bf16.gmra.mxu3 %v1527_v38  ;;  %v1675_v14 = vrot.slane %v1384_v47, 5  ;;  %v1383_v50 = vld [vmem:[#allocation2 + $0x38] sm:$0xf] }
 0x131   : > { %1355 = vmatmul.bf16.gmra.mxu2 %v3308_v35  ;;  %v1487_v63 = vshrl.u32 %v1383_v50, 16  ;;  %v1490_v53 = vshll.u32 %v1383_v50, 16  ;;  %v1480_v3 = vrot.slane %v1479_v49, 4  ;;  %v2529_v28 = vshrl.u32 %v2488_v36, 16  ;;  %3980 = vmatpush.bf16.msra.mxu3 %v4628_v11  ;;  %v3475_v25 = vld [vmem:[#allocation2 + $0x38] sm:$0xf] }
 0x132   : > { %v1676_v8 = vsel %vm4452_vm8, %v3396_v21, %v1675_v14  ;;  %v2532_v57 = vshll.u32 %v2488_v36, 16  ;;  %v1496_v17 = vshll.u32 %v1384_v47, 16  ;;  %2695 = vmatpush.bf16.msra.mxu0 %v4555_v48  ;;  %v1484_v19 = vrot.slane %v1482_v58, 5  ;;  %v1933_v29 = vld [vmem:[#allocation2 + $0x18] sm:$0xf]  ;;  %v3937_v14 = vld [vmem:[%s4911_s6 + $0x220] sm:$0xff] }
 0x133   : > { %v1701_v41 = vunpack.c.l.b16 %v1676_v8  ;;  %v1489_v15 = vrot.slane %v1487_v63, 4  ;;  %v1492_v10 = vrot.slane %v1490_v53, 5  ;;  %v1957_v42 = vrot.slane %v1955_v12, 5  ;;  %v4702_v43 = vld [vmem:[#allocation2 + $0x2c] sm:$0x1]  ;;  %2870 = vmatpush.bf16.msrb.mxu2 %v3937_v14 }
 0x134   : > { %v1967_v23 = vrot.slane %v1966_v61, 4  ;;  %v2543_v24 = vshrl.u32 %v2490_v7, 16  ;;  %v1971_v2 = vrot.slane %v1969_v4, 5  ;;  %v2546_v27 = vshll.u32 %v2490_v7, 16  ;;  %v4709_v35 = vld [vmem:[#allocation2 + $0x24] sm:$0x1] }
 0x135   : > { %v1705_v9 = vpack.c.b16 %v1701_v41, %v1700_v62  ;;  %v1493_v6 = vor.u32 %v1492_v10, %v1489_v15  ;;  %v1485_v11 = vsel %vm4471_vm11, %v1480_v3, %v1484_v19  ;;  %v2531_v34 = vrot.slane %v2529_v28, 4  ;;  %3981 = vmatpush.bf16.msra.mxu3 %v4666_v16  ;;  %v1935_v49 = vld [vmem:[#allocation2 + $0x20] sm:$0xf]  ;;  %v2175_v10 = vld [vmem:[#allocation2 + $0x8] sm:$0xe] }
 0x136   : > { %v3888_v22 = vld [vmem:[#allocation2 + $0x3c] sm:$0xf0]  ;;  %v2534_v36 = vrot.slane %v2532_v57, 5  ;;  %v2545_v40 = vrot.slane %v2543_v24, 4  ;;  %v1498_v38 = vrot.slane %v1496_v17, 5  ;;  %v2548_v45 = vrot.slane %v2546_v27, 5  ;;  %2696 = vmatpush.bf16.msra.mxu0 %v4577_v20 }
 0x137   : > { %1781 = vmatmul.bf16.gmra.mxu0 %v1705_v9  ;;  %v3476_v48 = vor.u32 %v3888_v22, %v3475_v25  ;;  %v1494_v37 = vrot.slane %v1493_v6, 4  ;;  %v1958_v46 = vsel %vm4471_vm11, %v4676_v33, %v1957_v42  ;;  %v1972_v26 = vsel %vm4471_vm11, %v1967_v23, %v1971_v2  ;;  %v2492_v57 = vld [vmem:[#allocation2 + $0x30] sm:$0xf]  ;;  %v2494_v19 = vld [vmem:[#allocation2 + $0x38] sm:$0xf] }
 0x138   : > { %v1523_v47 = vunpack.c.l.b16 %v1485_v11  ;;  %v2549_v21 = vor.u32 %v2548_v45, %v2545_v40  ;;  %v1974_v12 = vshrl.u32 %v1933_v29, 16  ;;  %v2535_v50 = vor.u32 %v2534_v36, %v2531_v34  ;;  %v2176_v42 = vld [vmem:[#allocation2 + $0x10] sm:$0xe]  ;;  %v4720_v23 = vld [vmem:[#allocation2 + $0x24] sm:$0x1]  ;;  %v3936_v36 = vld [vmem:[%s4911_s6 + $0x218] sm:$0xff] }
 0x139   : > { %1915 = vmatmul.bf16.gmra.mxu1 %v3476_v48  ;;  %v1499_v16 = vsel %vm4471_vm11, %v1494_v37, %v1498_v38  ;;  %v2552_v58 = vshll.u32 %v4702_v43, 16  ;;  %v1977_v61 = vshll.u32 %v1933_v29, 16  ;;  %3982 = vmatpush.bf16.msra.mxu3 %v3938_v13  ;;  %v2075_v62 = vunpack.c.l.b16 %v1972_v26  ;;  %v3913_v9 = vld [vmem:[#allocation2 + $0x14] sm:$0xf0]  ;;  %v4724_v6 = vld [vmem:[#allocation2 + $0x1c] sm:$0x1] }
 0x13a   : > { %v1524_v33 = vunpack.c.l.b16 %v1499_v16  ;;  %v2538_v20 = vshll.u32 %v4709_v35, 16  ;;  %v2550_v63 = vrot.slane %v2549_v21, 4  ;;  %v1976_v4 = vrot.slane %v1974_v12, 4  ;;  %2697 = vmatpush.bf16.msra.mxu0 %v4592_v39  ;;  %v3631_v40 = vld [vmem:[#allocation2 + $0x10] sm:$0xf]  ;;  %2871 = vmatpush.bf16.msrb.mxu2 %v3936_v36 }
 0x13b   : > { %v1979_v7 = vrot.slane %v1977_v61, 5  ;;  %v1988_v8 = vshrl.u32 %v1935_v49, 16  ;;  %v2074_v3 = vunpack.c.l.b16 %v1958_v46  ;;  %v1991_v28 = vshll.u32 %v1935_v49, 16 }
 0x13c   : > { %v1528_v53 = vpack.c.b16 %v1524_v33, %v1523_v47  ;;  %v2536_v41 = vrot.slane %v2535_v50, 4  ;;  %v2554_v15 = vrot.slane %v2552_v58, 5  ;;  %v2540_v25 = vrot.slane %v2538_v20, 5 }
 0x13d   : > { %v1990_v17 = vrot.slane %v1988_v8, 4  ;;  %3983 = vmatpush.bf16.msra.mxu3 %v3937_v14  ;;  %v2082_v13 = vpack.c.b16 %v2075_v62, %v2074_v3  ;;  %v1993_v24 = vrot.slane %v1991_v28, 5  ;;  %v1980_v2 = vor.u32 %v1979_v7, %v1976_v4  ;;  %v4739_v62 = vld [vmem:[#allocation2 + $0x3c] sm:$0x1]  ;;  %v4745_v7 = vld [vmem:[#allocation2 + $0x34] sm:$0x1] }
 0x13e   : > { %v2555_v39 = vsel %vm4471_vm11, %v2550_v63, %v2554_v15  ;;  %v2557_v27 = vshrl.u32 %v2492_v57, 16  ;;  %2698 = vmatpush.bf16.msra.mxu0 %v4620_v54  ;;  %v2560_v22 = vshll.u32 %v2492_v57, 16  ;;  %v2571_v11 = vshrl.u32 %v2494_v19, 16  ;;  %v3935_v15 = vld [vmem:[%s4911_s6 + $0x210] sm:$0xff] }
 0x13f   : > { %v1994_v29 = vor.u32 %v1993_v24, %v1990_v17  ;;  %v2574_v34 = vshll.u32 %v2494_v19, 16  ;;  %v2541_v48 = vsel %vm4471_vm11, %v2536_v41, %v2540_v25  ;;  %v3558_v37 = vrot.slane %v2176_v42, 9  ;;  %2872 = vmatpush.bf16.msrb.mxu2 %v3935_v15 }
 0x140   : > { %1604 = vmatmul.bf16.gmra.mxu3 %v1528_v53  ;;  %v2205_v38 = vrot.slane %v4673_v31, 5  ;;  %v1997_v45 = vshll.u32 %v4720_v23, 16  ;;  %v3632_v46 = vor.u32 %v3913_v9, %v3631_v40  ;;  %v2632_v54 = vunpack.c.l.b16 %v2555_v39  ;;  %v1937_v53 = vld [vmem:[#allocation2 + $0x28] sm:$0xf]  ;;  %v2178_v40 = vld [vmem:[#allocation2 + $0x20] sm:$0xe] }
 0x141   : > { %2146 = vmatmul.bf16.vlgmr.msra.gmra.mxu2 %v2082_v13  ;;  %v3557_v26 = vrot.slane %v2175_v10, 9  ;;  %v1983_v16 = vshll.u32 %v4724_v6, 16  ;;  %3984 = vmatpush.bf16.msra.mxu3 %v3936_v36  ;;  %v2201_v47 = vrot.slane %v4671_v30, 5  ;;  %v1995_v21 = vrot.slane %v1994_v29, 4  ;;  %v1939_v30 = vld [vmem:[#allocation2 + $0x30] sm:$0xf] }
 0x142   : > { %v2573_v49 = vrot.slane %v2571_v11, 4  ;;  %v2576_v12 = vrot.slane %v2574_v34, 5  ;;  %2699 = vmatpush.bf16.msra.mxu0 %v4638_v32  ;;  %v2631_v14 = vunpack.c.l.b16 %v2541_v48  ;;  %v1981_v33 = vrot.slane %v1980_v2, 4  ;;  %v2496_v2 = vld [vmem:[#allocation2 + $0x40] sm:$0xf] }
 0x143   : > { %v2559_v50 = vrot.slane %v2557_v27, 4  ;;  %v2562_v31 = vrot.slane %v2560_v22, 5  ;;  %v2206_v58 = vsel %vm4452_vm8, %v3558_v37, %v2205_v38  ;;  %v1999_v61 = vrot.slane %v1997_v45, 5  ;;  %v2177_v22 = vld [vmem:[#allocation2 + $0x18] sm:$0xe] }
 0x144   : > { %v2638_v20 = vpack.c.b16 %v2632_v54, %v2631_v14  ;;  %v1985_v63 = vrot.slane %v1983_v16, 5  ;;  %v2202_v4 = vsel %vm4452_vm8, %v3557_v26, %v2201_v47  ;;  %v2577_v8 = vor.u32 %v2576_v12, %v2573_v49  ;;  %v2498_v11 = vld [vmem:[#allocation2 + $0x48] sm:$0xf]  ;;  %v4759_v47 = vld [vmem:[#allocation2 + $0x2c] sm:$0x1] }
 0x145   : > { %v2000_v32 = vsel %vm4471_vm11, %v1995_v21, %v1999_v61  ;;  %v2249_v3 = vunpack.c.l.b16 %v2206_v58  ;;  %v2563_v57 = vor.u32 %v2562_v31, %v2559_v50  ;;  %v2580_v41 = vshll.u32 %v4739_v62, 16  ;;  %3985 = vmatpush.bf16.msra.mxu3 %v3935_v15  ;;  %v3934_v31 = vld [vmem:[%s4911_s6 + $0x208] sm:$0xff] }
 0x146   : > { %2700 = vmatpush.bf16.msra.mxu0 %v4661_v18  ;;  %v1986_v28 = vsel %vm4471_vm11, %v1981_v33, %v1985_v63  ;;  %v2002_v10 = vshrl.u32 %v1937_v53, 16  ;;  %v2005_v17 = vshll.u32 %v1937_v53, 16  ;;  %v2016_v19 = vshrl.u32 %v1939_v30, 16  ;;  %v3914_v58 = vld [vmem:[#allocation2 + $0x24] sm:$0xf0]  ;;  %2873 = vmatpush.bf16.msrb.mxu2 %v3934_v31 }
 0x147   : > { %2455 = vmatmul.bf16.vlgmr.msrb.gmra.mxu0 %v3632_v46  ;;  %v2019_v13 = vshll.u32 %v1939_v30, 16  ;;  %v2248_v42 = vunpack.c.l.b16 %v2202_v4  ;;  %v2077_v24 = vunpack.c.l.b16 %v2000_v32  ;;  %v2566_v18 = vshll.u32 %v4745_v7, 16  ;;  %v4755_v46 = vld [vmem:[#allocation2 + $0x34] sm:$0x1] }
 0x148   : > { %v2578_v9 = vrot.slane %v2577_v8, 4  ;;  %v2018_v25 = vrot.slane %v2016_v19, 4  ;;  %v2076_v29 = vunpack.c.l.b16 %v1986_v28  ;;  %v2564_v34 = vrot.slane %v2563_v57, 4 }
 0x149   : > { %2706 = vmatmul.bf16.vlgmr.msrb.gmra.mxu1 %v2638_v20  ;;  %v2021_v39 = vrot.slane %v2019_v13, 5  ;;  %v2256_v27 = vpack.c.b16 %v2249_v3, %v2248_v42  ;;  %v2582_v36 = vrot.slane %v2580_v41, 5  ;;  %v2004_v48 = vrot.slane %v2002_v10, 4  ;;  %3986 = vmatpush.bf16.msra.mxu3 %v3934_v31  ;;  %v1943_v10 = vld [vmem:[#allocation2 + $0x40] sm:$0xf] }
 0x14a   : > { %v2007_v37 = vrot.slane %v2005_v17, 5  ;;  %v2083_v38 = vpack.c.b16 %v2077_v24, %v2076_v29  ;;  %v2568_v45 = vrot.slane %v2566_v18, 5  ;;  %v2585_v54 = vshrl.u32 %v2496_v2, 16  ;;  %v4774_v42 = vld [vmem:[#allocation2 + $0x44] sm:$0x1] }
 0x14b   : > { %v2588_v26 = vshll.u32 %v2496_v2, 16  ;;  %v2583_v16 = vsel %vm4471_vm11, %v2578_v9, %v2582_v36  ;;  %v2022_v21 = vor.u32 %v2021_v39, %v2018_v25  ;;  %v2599_v49 = vshrl.u32 %v2498_v11, 16  ;;  %v4776_v24 = vld [vmem:[#allocation2 + $0x4c] sm:$0x1]  ;;  %v1941_v2 = vld [vmem:[#allocation2 + $0x38] sm:$0xf] }
 0x14c   : > { %v2602_v12 = vshll.u32 %v2498_v11, 16  ;;  %v3559_v14 = vrot.slane %v2177_v22, 9  ;;  %v2209_v33 = vrot.slane %v4724_v6, 5  ;;  %v3560_v50 = vrot.slane %v2178_v40, 9  ;;  %v3635_v6 = vld [vmem:[#allocation2 + $0x20] sm:$0xf] }
 0x14d   : > { %v2569_v61 = vsel %vm4471_vm11, %v2564_v34, %v2568_v45  ;;  %v2213_v20 = vrot.slane %v4720_v23, 5  ;;  %v2008_v63 = vor.u32 %v2007_v37, %v2004_v48  ;;  %v2025_v53 = vshll.u32 %v4755_v46, 16 }
 0x14e   : > { %v2634_v30 = vunpack.c.l.b16 %v2583_v16  ;;  %v2011_v4 = vshll.u32 %v4759_v47, 16  ;;  %v2587_v32 = vrot.slane %v2585_v54, 4  ;;  %v2590_v8 = vrot.slane %v2588_v26, 5 }
 0x14f   : > { %v2023_v3 = vrot.slane %v2022_v21, 4  ;;  %v2601_v28 = vrot.slane %v2599_v49, 4  ;;  %v2604_v57 = vrot.slane %v2602_v12, 5  ;;  %v3636_v41 = vor.u32 %v3914_v58, %v3635_v6 }
 0x150   : > { %2320 = vmatmul.bf16.vlgmr.msrb.gmra.mxu3 %v2256_v27  ;;  %v2633_v15 = vunpack.c.l.b16 %v2569_v61  ;;  %v2210_v23 = vsel %vm4452_vm8, %v3559_v14, %v2209_v33  ;;  %v2214_v17 = vsel %vm4452_vm8, %v3560_v50, %v2213_v20  ;;  %v2009_v19 = vrot.slane %v2008_v63, 4  ;;  %v3933_v27 = vld [vmem:[%s4911_s6 + $0x200] sm:$0xff]  ;;  %v3915_v50 = vld [vmem:[#allocation2 + $0x34] sm:$0xf0]  ;;  %v2180_v63 = vld [vmem:[#allocation2 + $0x30] sm:$0xe] }
 0x151   : > { %2151 = vmatmul.bf16.gmra.mxu2 %v2083_v38  ;;  %v2027_v13 = vrot.slane %v2025_v53, 5  ;;  %v2013_v9 = vrot.slane %v2011_v4, 5  ;;  %v2591_v25 = vor.u32 %v2590_v8, %v2587_v32  ;;  %v2608_v39 = vshll.u32 %v4776_v24, 16  ;;  %3987 = vmatpush.bf16.msra.mxu3 %v3933_v27  ;;  %v4787_v53 = vld [vmem:[#allocation2 + $0x44] sm:$0x1] }
 0x152   : > { %v2639_v18 = vpack.c.b16 %v2634_v30, %v2633_v15  ;;  %v2605_v22 = vor.u32 %v2604_v57, %v2601_v28  ;;  %v2044_v11 = vshrl.u32 %v1943_v10, 16  ;;  %v2047_v34 = vshll.u32 %v1943_v10, 16  ;;  %2874 = vmatpush.bf16.msrb.mxu2 %v3933_v27  ;;  %v3639_v30 = vld [vmem:[#allocation2 + $0x30] sm:$0xf]  ;;  %v4793_v8 = vld [vmem:[#allocation2 + $0x3c] sm:$0x1] }
 0x153   : > { %v2028_v29 = vsel %vm4471_vm11, %v2023_v3, %v2027_v13  ;;  %v2251_v36 = vunpack.c.l.b16 %v2214_v17  ;;  %v2014_v40 = vsel %vm4471_vm11, %v2009_v19, %v2013_v9  ;;  %v2594_v48 = vshll.u32 %v4774_v42, 16  ;;  %v2732_v3 = vld [vmem:[#allocation2 + $0x20] sm:$0xe]  ;;  %v2179_v57 = vld [vmem:[#allocation2 + $0x28] sm:$0xe] }
 0x154   : > { %v2030_v37 = vshrl.u32 %v1941_v2, 16  ;;  %v2033_v38 = vshll.u32 %v1941_v2, 16  ;;  %v2250_v45 = vunpack.c.l.b16 %v2210_v23  ;;  %v2079_v54 = vunpack.c.l.b16 %v2028_v29  ;;  %v2734_v19 = vld [vmem:[#allocation2 + $0x30] sm:$0xe] }
 0x155   : > { %v2610_v26 = vrot.slane %v2608_v39, 5  ;;  %v2592_v16 = vrot.slane %v2591_v25, 4  ;;  %v2606_v21 = vrot.slane %v2605_v22, 4  ;;  %v2046_v49 = vrot.slane %v2044_v11, 4 }
 0x156   : > { %v2049_v12 = vrot.slane %v2047_v34, 5  ;;  %v2078_v14 = vunpack.c.l.b16 %v2014_v40  ;;  %v2257_v33 = vpack.c.b16 %v2251_v36, %v2250_v45  ;;  %v2596_v31 = vrot.slane %v2594_v48, 5 }
 0x157   : > { %2460 = vmatmul.bf16.gmra.mxu0 %v3636_v41  ;;  %v2032_v58 = vrot.slane %v2030_v37, 4  ;;  %v2035_v61 = vrot.slane %v2033_v38, 5  ;;  %v2611_v32 = vsel %vm4471_vm11, %v2606_v21, %v2610_v26  ;;  %v3640_v28 = vor.u32 %v3915_v50, %v3639_v30  ;;  %v2733_v41 = vld [vmem:[#allocation2 + $0x28] sm:$0xe] }
 0x158   : > { %v2084_v20 = vpack.c.b16 %v2079_v54, %v2078_v14  ;;  %v2597_v4 = vsel %vm4471_vm11, %v2592_v16, %v2596_v31  ;;  %v2050_v6 = vor.u32 %v2049_v12, %v2046_v49  ;;  %v3562_v15 = vrot.slane %v2180_v63, 9  ;;  %v2486_v31 = vld [vmem:[#allocation2 + $0x18] sm:$0xf] }
 0x159   : > { %2711 = vmatmul.bf16.gmra.mxu1 %v2639_v18  ;;  %v2221_v10 = vrot.slane %v4755_v46, 5  ;;  %v2036_v23 = vor.u32 %v2035_v61, %v2032_v58  ;;  %v2053_v17 = vshll.u32 %v4787_v53, 16  ;;  %v2635_v13 = vunpack.c.l.b16 %v2597_v4  ;;  %v2484_v4 = vld [vmem:[#allocation2 + $0x10] sm:$0xf] }
 0x15a   : > { %v2636_v18 = vunpack.c.l.b16 %v2611_v32  ;;  %v2039_v9 = vshll.u32 %v4793_v8, 16  ;;  %v3727_v25 = vrot.slane %v2732_v3, 9  ;;  %v3561_v39 = vrot.slane %v2179_v57, 9  ;;  %v2182_v57 = vld [vmem:[#allocation2 + $0x40] sm:$0xe] }
 0x15b   : > { %v2051_v2 = vrot.slane %v2050_v6, 4  ;;  %v2764_v27 = vrot.slane %v4709_v35, 5  ;;  %v3728_v29 = vrot.slane %v2733_v41, 9  ;;  %v2217_v22 = vrot.slane %v4759_v47, 5  ;;  %v2735_v47 = vld [vmem:[#allocation2 + $0x38] sm:$0xe] }
 0x15c   : > { %v2768_v11 = vrot.slane %v4702_v43, 5  ;;  %v3729_v34 = vrot.slane %v2734_v19, 9  ;;  %v2772_v46 = vrot.slane %v4745_v7, 5  ;;  %v2037_v36 = vrot.slane %v2036_v23, 4  ;;  %v2487_v23 = vld [vmem:[#allocation2 + $0x1c] sm:$0x1] }
 0x15d   : > { %v2055_v40 = vrot.slane %v2053_v17, 5  ;;  %v2765_v48 = vsel %vm4452_vm8, %v3727_v25, %v2764_v27  ;;  %v2640_v37 = vpack.c.b16 %v2636_v18, %v2635_v13  ;;  %v2222_v38 = vsel %vm4452_vm8, %v3562_v15, %v2221_v10  ;;  %v2181_v10 = vld [vmem:[#allocation2 + $0x38] sm:$0xe]  ;;  %v3643_v19 = vld [vmem:[#allocation2 + $0x40] sm:$0xf] }
 0x15e   : > { %v2041_v45 = vrot.slane %v2039_v9, 5  ;;  %v2769_v35 = vsel %vm4452_vm8, %v3728_v29, %v2768_v11  ;;  %v2805_v54 = vunpack.c.l.b16 %v2765_v48  ;;  %v3730_v26 = vrot.slane %v2735_v47, 9  ;;  %v2731_v17 = vld [vmem:[#allocation2 + $0x18] sm:$0xe]  ;;  %v3916_v13 = vld [vmem:[#allocation2 + $0x44] sm:$0xf0] }
 0x15f   : > { %v2056_v43 = vsel %vm4471_vm11, %v2051_v2, %v2055_v40  ;;  %v2806_v7 = vunpack.c.l.b16 %v2769_v35  ;;  %v2218_v16 = vsel %vm4452_vm8, %v3561_v39, %v2217_v22  ;;  %v2773_v21 = vsel %vm4452_vm8, %v3729_v34, %v2772_v46  ;;  %v2485_v2 = vld [vmem:[#allocation2 + $0x14] sm:$0x1]  ;;  %v2730_v27 = vld [vmem:[#allocation2 + $0x10] sm:$0xe] }
 0x160   : > { %2325 = vmatmul.bf16.gmra.mxu3 %v2257_v33  ;;  %v2776_v49 = vrot.slane %v4739_v62, 5  ;;  %v2253_v12 = vunpack.c.l.b16 %v2222_v38  ;;  %v2042_v14 = vsel %vm4471_vm11, %v2037_v36, %v2041_v45  ;;  %v2081_v50 = vunpack.c.l.b16 %v2056_v43 }
 0x161   : > { %2156 = vmatmul.bf16.gmra.mxu2 %v2084_v20  ;;  %v4817_v33 = vpack.c.b16 %v2806_v7, %v2805_v54  ;;  %v2252_v61 = vunpack.c.l.b16 %v2218_v16  ;;  %v2807_v20 = vunpack.c.l.b16 %v2773_v21  ;;  %v2080_v30 = vunpack.c.l.b16 %v2042_v14  ;;  %v4836_v21 = vld [vmem:[%s4910_s5] ss:$0 sm:$0xff] }
 0x162   : > { %v2777_v58 = vsel %vm4452_vm8, %v3730_v26, %v2776_v49  ;;  %v2515_v6 = vshrl.u32 %v2486_v31, 16  ;;  %v2518_v3 = vshll.u32 %v2486_v31, 16  ;;  %v2501_v41 = vshrl.u32 %v2484_v4, 16 }
 0x163   : > { %v2808_v63 = vunpack.c.l.b16 %v2777_v58  ;;  %v2258_v32 = vpack.c.b16 %v2253_v12, %v2252_v61  ;;  %v2504_v15 = vshll.u32 %v2484_v4, 16  ;;  %v3564_v25 = vrot.slane %v2182_v57, 9 }
 0x164   : > { %v2517_v18 = vrot.slane %v2515_v6, 4  ;;  %v2520_v9 = vrot.slane %v2518_v3, 5  ;;  %v2229_v39 = vrot.slane %v4787_v53, 5  ;;  %v3726_v29 = vrot.slane %v2731_v17, 9  ;;  %v2737_v6 = vld [vmem:[#allocation2 + $0x48] sm:$0xe] }
 0x165   : > { %v4821_v62 = vpack.c.b16 %v2808_v63, %v2807_v20  ;;  %v2760_v22 = vrot.slane %v2487_v23, 5  ;;  %v2503_v11 = vrot.slane %v2501_v41, 4  ;;  %v2506_v34 = vrot.slane %v2504_v15, 5 }
 0x166   : > { %v3644_v46 = vor.u32 %v3916_v13, %v3643_v19  ;;  %v3563_v36 = vrot.slane %v2181_v10, 9  ;;  %v2225_v40 = vrot.slane %v4793_v8, 5  ;;  %v3725_v48 = vrot.slane %v2730_v27, 9 }
 0x167   : > { %2465 = vmatmul.bf16.gmra.mxu0 %v3640_v28  ;;  %v2085_v28 = vpack.c.b16 %v2081_v50, %v2080_v30  ;;  %v2521_v38 = vor.u32 %v2520_v9, %v2517_v18  ;;  %v2230_v45 = vsel %vm4452_vm8, %v3564_v25, %v2229_v39  ;;  %v2761_v53 = vsel %vm4452_vm8, %v3726_v29, %v2760_v22  ;;  %v4845_v30 = vld [vmem:[%s4912_s7] ss:$0 sm:$0xff] }
 0x168   : > { %v2507_v35 = vor.u32 %v2506_v34, %v2503_v11  ;;  %v2524_v47 = vshll.u32 %v2487_v23, 16  ;;  %v2226_v43 = vsel %vm4452_vm8, %v3563_v36, %v2225_v40  ;;  %v2255_v54 = vunpack.c.l.b16 %v2230_v45 }
 0x169   : > { %2716 = vmatmul.bf16.gmra.mxu1 %v2640_v37  ;;  %v2756_v37 = vrot.slane %v2485_v2, 5  ;;  %v2510_v8 = vshll.u32 %v2485_v2, 16  ;;  %v2522_v26 = vrot.slane %v2521_v38, 4  ;;  %v2804_v16 = vunpack.c.l.b16 %v2761_v53 }
 0x16a   : > { %v2254_v49 = vunpack.c.l.b16 %v2226_v43  ;;  %v2508_v12 = vrot.slane %v2507_v35, 4  ;;  %v2526_v14 = vrot.slane %v2524_v47, 5  ;;  %v437_v31 = vadd.f32 %v4836_v21, %v4281_v52 }
 0x16b   : > { %v2757_v7 = vsel %vm4452_vm8, %v3725_v48, %v2756_v37  ;;  %v2512_v61 = vrot.slane %v2510_v8, 5  ;;  %v2780_v52 = vrot.slane %v4774_v42, 5  ;;  %v2784_v57 = vrot.slane %v4776_v24, 5 }
 0x16c   : > { %v2803_v50 = vunpack.c.l.b16 %v2757_v7  ;;  %v2259_v58 = vpack.c.b16 %v2255_v54, %v2254_v49  ;;  %v2527_v20 = vsel %vm4471_vm11, %v2522_v26, %v2526_v14  ;;  %v3732_v10 = vrot.slane %v2737_v6, 9 }
 0x16d   : > { %v2513_v4 = vsel %vm4471_vm11, %v2508_v12, %v2512_v61  ;;  %v2630_v3 = vunpack.c.l.b16 %v2527_v20  ;;  %v442_v24 = vadd.f32 %v4836_v21, %v4310_v0  ;;  %v439_v22 = vadd.f32 %v4836_v21, %v4290_v56 }
 0x16e   : > { %v2811_v63 = vpack.c.b16 %v2804_v16, %v2803_v50  ;;  %v2629_v41 = vunpack.c.l.b16 %v2513_v4  ;;  %v2785_v18 = vsel %vm4452_vm8, %v3732_v10, %v2784_v57  ;;  %v447_v35 = vadd.f32 %v4836_v21, %v4279_v51 }
 0x16f   : > { %v2810_v42 = vunpack.c.l.b16 %v2785_v18  ;;  %v1230_v29 = vadd.f32 %v4845_v30, %v442_v24  ;;  %v1229_v48 = vadd.f32 %v4845_v30, %v439_v22  ;;  %v444_v54 = vadd.f32 %v4836_v21, %v4322_v5 }
 0x170   : > { %2330 = vmatmul.bf16.gmra.mxu3 %v2258_v32  ;;  %v2736_v32 = vld [vmem:[#allocation2 + $0x40] sm:$0xe]  ;;  %v2637_v13 = vpack.c.b16 %v2630_v3, %v2629_v41  ;;  %v1232_v43 = vadd.f32 %v4845_v30, %v447_v35  ;;  %v452_v5 = vadd.f32 %v4836_v21, %v4297_v59  ;;  %v449_v6 = vadd.f32 %v4836_v21, %v4288_v55 }
 0x171   : > { %2161 = vmatmul.bf16.gmra.mxu2 %v2085_v28  ;;  %v1228_v28 = vadd.f32 %v4845_v30, %v437_v31  ;;  %v3731_v15 = vrot.slane %v2736_v32, 9  ;;  %v1231_v14 = vadd.f32 %v4845_v30, %v444_v54  ;;  %v454_v55 = vadd.f32 %v4836_v21, %v4312_v1 }
 0x172   : > { %v1234_v32 = vadd.f32 %v4845_v30, %v452_v5 }
 0x173   : > { %v2781_v44 = vsel %vm4452_vm8, %v3731_v15, %v2780_v52 }
 0x174   : > { %v2809_v9 = vunpack.c.l.b16 %v2781_v44 }
 0x176   : > { %v2814_v2 = vpack.c.b16 %v2810_v42, %v2809_v9 }
 0x177   : > { %2470 = vmatmul.bf16.gmra.mxu0 %v3644_v46 }
 0x180   : > { %2335 = vmatmul.bf16.gmra.mxu3 %v2259_v58 }
 0x181   : > { %2875 = vmatmul.bf16.vlgmr.msrb.gmra.mxu2 %v2811_v63 }
 0x184   : > { %v1767_v23 = vpop.f32.mrf.mxu0  ;;  %v1341_v17 = vpop.f32.mrf.mxu2 }
 0x185   : > { %v1361_v19 = vadd.f32 %v1341_v17, %v1228_v28 }
 0x186   : > { %v1901_v40 = vpop.f32.mrf.mxu1 }
 0x187   : > { %2701 = vmatmul.bf16.vlgmr.msra.gmra.mxu0 %v2637_v13 }
 0x18c   : > { %v1769_v25 = vpop.f32.mrf.mxu0  ;;  %v1343_v39 = vpop.f32.mrf.mxu2 }
 0x18d   : > { %v1362_v37 = vadd.f32 %v1343_v39, %v1229_v48 }
 0x18e   : > { %v1903_v47 = vpop.f32.mrf.mxu1 }
 0x190   : > { %2890 = vmatmul.bf16.vlgmr.msra.gmra.mxu3 %v2814_v2 }
 0x191   : > { %2880 = vmatmul.bf16.gmra.mxu2 %v4817_v33 }
 0x193   : > { %v1590_v27 = vpop.f32.mrf.mxu3 }
 0x194   : > { %v1610_v11 = vadd.f32 %v1590_v27, %v1361_v19  ;;  %v1772_v60 = vpop.f32.mrf.mxu0  ;;  %v1346_v34 = vpop.f32.mrf.mxu2 }
 0x195   : > { %v1363_v46 = vadd.f32 %v1346_v34, %v1230_v29 }
 0x196   : > { %v1787_v36 = vadd.f32 %v1767_v23, %v1610_v11  ;;  %v1906_v31 = vpop.f32.mrf.mxu1  ;;  %v1233_v23 = vadd.f32 %v4845_v30, %v449_v6  ;;  %v1235_v11 = vadd.f32 %v4845_v30, %v454_v55 }
 0x198   : > { %v1921_v12 = vadd.f32 %v1901_v40, %v1787_v36 }
 0x19b   : > { %v1592_v38 = vpop.f32.mrf.mxu3 }
 0x19c   : > { %v1611_v0 = vadd.f32 %v1592_v38, %v1362_v37  ;;  %v1774_v45 = vpop.f32.mrf.mxu0  ;;  %v1348_v53 = vpop.f32.mrf.mxu2 }
 0x19d   : > { %v1364_v50 = vadd.f32 %v1348_v53, %v1231_v14 }
 0x19e   : > { %v1788_v33 = vadd.f32 %v1769_v25, %v1611_v0  ;;  %v1908_v41 = vpop.f32.mrf.mxu1 }
 0x1a0   : > { %v4870_v63 = vadd.f32 %v1903_v47, %v1788_v33 }
 0x1a1   : > { %2885 = vmatmul.bf16.gmra.mxu2 %v4821_v62 }
 0x1a3   : > { %v1595_v56 = vpop.f32.mrf.mxu3 }
 0x1a4   : > { %v1612_v7 = vadd.f32 %v1595_v56, %v1363_v46  ;;  %v1777_v8 = vpop.f32.mrf.mxu0  ;;  %v1351_v26 = vpop.f32.mrf.mxu2 }
 0x1a5   : > { %v1365_v16 = vadd.f32 %v1351_v26, %v1232_v43 }
 0x1a6   : > { %v1789_v49 = vadd.f32 %v1772_v60, %v1612_v7  ;;  %v1911_v42 = vpop.f32.mrf.mxu1 }
 0x1a8   : > { %v1923_v57 = vadd.f32 %v1906_v31, %v1789_v49 }
 0x1ab   : > { %v1597_v51 = vpop.f32.mrf.mxu3 }
 0x1ac   : > { %v1613_v58 = vadd.f32 %v1597_v51, %v1364_v50  ;;  %v1779_v61 = vpop.f32.mrf.mxu0  ;;  %v1353_v62 = vpop.f32.mrf.mxu2 }
 0x1ad   : > { %v1366_v17 = vadd.f32 %v1353_v62, %v1233_v23 }
 0x1ae   : > { %v1790_v20 = vadd.f32 %v1774_v45, %v1613_v58  ;;  %v1913_v60 = vpop.f32.mrf.mxu1 }
 0x1b0   : > { %v4878_v18 = vadd.f32 %v1908_v41, %v1790_v20 }
 0x1b3   : > { %v1600_v4 = vpop.f32.mrf.mxu3 }
 0x1b4   : > { %v1614_v3 = vadd.f32 %v1600_v4, %v1365_v16  ;;  %v1782_v52 = vpop.f32.mrf.mxu0  ;;  %v1356_v28 = vpop.f32.mrf.mxu2 }
 0x1b5   : > { %v1367_v15 = vadd.f32 %v1356_v28, %v1234_v32 }
 0x1b6   : > { %v1791_v10 = vadd.f32 %v1777_v8, %v1614_v3  ;;  %v1916_v0 = vpop.f32.mrf.mxu1 }
 0x1b8   : > { %v1925_v22 = vadd.f32 %v1911_v42, %v1791_v10 }
 0x1bb   : > { %v1602_v19 = vpop.f32.mrf.mxu3 }
 0x1bc   : > { %v1615_v13 = vadd.f32 %v1602_v19, %v1366_v17  ;;  %v1784_v44 = vpop.f32.mrf.mxu0  ;;  %v1358_v59 = vpop.f32.mrf.mxu2 }
 0x1bd   : > { %v1368_v34 = vadd.f32 %v1358_v59, %v1235_v11 }
 0x1be   : > { %v1792_v9 = vadd.f32 %v1779_v61, %v1615_v13  ;;  %v1918_v56 = vpop.f32.mrf.mxu1 }
 0x1c0   : > { %v4883_v38 = vadd.f32 %v1913_v60, %v1792_v9 }
 0x1c3   : > { %v1605_v25 = vpop.f32.mrf.mxu3 }
 0x1c4   : > { %v1616_v39 = vadd.f32 %v1605_v25, %v1367_v15  ;;  %v2456_v2 = vpop.f32.mrf.mxu0  ;;  %v2147_v24 = vpop.f32.mrf.mxu2 }
 0x1c5   : > { %v2167_v27 = vadd.f32 %v2147_v24, %v1921_v12 }
 0x1c6   : > { %v1793_v29 = vadd.f32 %v1782_v52, %v1616_v39  ;;  %v2707_v12 = vpop.f32.mrf.mxu1 }
 0x1c8   : > { %v1927_v13 = vadd.f32 %v1916_v0, %v1793_v29 }
 0x1cb   : > { %v1607_v46 = vpop.f32.mrf.mxu3 }
 0x1cc   : > { %v1617_v36 = vadd.f32 %v1607_v46, %v1368_v34  ;;  %v2458_v40 = vpop.f32.mrf.mxu0  ;;  %v2149_v48 = vpop.f32.mrf.mxu2 }
 0x1cd   : > { %v2168_v41 = vadd.f32 %v2149_v48, %v4870_v63 }
 0x1ce   : > { %v1794_v37 = vadd.f32 %v1784_v44, %v1617_v36  ;;  %v2709_v51 = vpop.f32.mrf.mxu1 }
 0x1d0   : > { %v1928_v55 = vadd.f32 %v1918_v56, %v1794_v37 }
 0x1d3   : > { %v2321_v45 = vpop.f32.mrf.mxu3 }
 0x1d4   : > { %v2461_v1 = vpop.f32.mrf.mxu0  ;;  %v2152_v21 = vpop.f32.mrf.mxu2  ;;  %v2341_v43 = vadd.f32 %v2321_v45, %v2167_v27 }
 0x1d5   : > { %v2169_v53 = vadd.f32 %v2152_v21, %v1923_v57 }
 0x1d6   : > { %v2476_v49 = vadd.f32 %v2456_v2, %v2341_v43  ;;  %v2712_v4 = vpop.f32.mrf.mxu1 }
 0x1db   : > { %v2323_v33 = vpop.f32.mrf.mxu3 }
 0x1dc   : > { %v2463_v35 = vpop.f32.mrf.mxu0  ;;  %v2154_v47 = vpop.f32.mrf.mxu2  ;;  %v2342_v10 = vadd.f32 %v2323_v33, %v2168_v41 }
 0x1de   : > { %v2714_v15 = vpop.f32.mrf.mxu1  ;;  %v2477_v19 = vadd.f32 %v2458_v40, %v2342_v10 }
 0x1e3   : > { %v2326_v30 = vpop.f32.mrf.mxu3 }
 0x1e4   : > { %v2343_v54 = vadd.f32 %v2326_v30, %v2169_v53  ;;  %v2466_v7 = vpop.f32.mrf.mxu0  ;;  %v2157_v8 = vpop.f32.mrf.mxu2 }
 0x1e5   : > { %v2171_v26 = vadd.f32 %v2157_v8, %v1925_v22  ;;  %v2170_v22 = vadd.f32 %v2154_v47, %v4878_v18 }
 0x1e6   : > { %v2478_v16 = vadd.f32 %v2461_v1, %v2343_v54  ;;  %v2717_v39 = vpop.f32.mrf.mxu1 }
 0x1e8   : > { %v2724_v45 = vadd.f32 %v2707_v12, %v2478_v16 }
 0x1eb   : > { %v2328_v14 = vpop.f32.mrf.mxu3 }
 0x1ec   : > { %v4885_v50 = vpop.f32.mrf.mxu0  ;;  %v2159_v31 = vpop.f32.mrf.mxu2  ;;  %v2344_v29 = vadd.f32 %v2328_v14, %v2170_v22 }
 0x1ee   : > { %v2479_v37 = vadd.f32 %v2463_v35, %v2344_v29  ;;  %v2719_v18 = vpop.f32.mrf.mxu1  ;;  %v2172_v35 = vadd.f32 %v2159_v31, %v4883_v38 }
 0x1f0   : > { %v2725_v47 = vadd.f32 %v2709_v51, %v2479_v37 }
 0x1f3   : > { %v2331_v58 = vpop.f32.mrf.mxu3 }
 0x1f4   : > { %v2345_v61 = vadd.f32 %v2331_v58, %v2171_v26  ;;  %v2471_v62 = vpop.f32.mrf.mxu0  ;;  %v2162_v20 = vpop.f32.mrf.mxu2 }
 0x1f5   : > { %v2173_v25 = vadd.f32 %v2162_v20, %v1927_v13 }
 0x1f6   : > { %v2480_v5 = vadd.f32 %v2466_v7, %v2345_v61 }
 0x1f8   : > { %v2726_v61 = vadd.f32 %v2712_v4, %v2480_v5 }
 0x1fb   : > { %v2333_v32 = vpop.f32.mrf.mxu3 }
 0x1fc   : > { %v2473_v6 = vpop.f32.mrf.mxu0  ;;  %v2164_v3 = vpop.f32.mrf.mxu2  ;;  %v2346_v16 = vadd.f32 %v2333_v32, %v2172_v35 }
 0x1fd   : > { %v2174_v24 = vadd.f32 %v2164_v3, %v1928_v55 }
 0x1fe   : > { %v2481_v58 = vadd.f32 %v4885_v50, %v2346_v16 }
 0x203   : > { %v2336_v52 = vpop.f32.mrf.mxu3 }
 0x204   : > { %v2702_v28 = vpop.f32.mrf.mxu0  ;;  %v2876_v57 = vpop.f32.mrf.mxu2  ;;  %v2347_v27 = vadd.f32 %v2336_v52, %v2173_v25 }
 0x205   : > { %v2722_v23 = vadd.f32 %v2702_v28, %v2476_v49 }
 0x206   : > { %v2482_v36 = vadd.f32 %v2471_v62, %v2347_v27  ;;  %v2727_v62 = vadd.f32 %v2714_v15, %v2481_v58 }
 0x207   : > { %v2896_v9 = vadd.f32 %v2876_v57, %v2722_v23 }
 0x208   : > { %v2728_v0 = vadd.f32 %v2717_v39, %v2482_v36 }
 0x209   : > { %v2904_v63 = vmax.f32 %v2896_v9, 0.0 }
 0x20b   : > { %v2338_v17 = vpop.f32.mrf.mxu3 }
 0x20c   : > { %v2704_v44 = vpop.f32.mrf.mxu0  ;;  %v2878_v59 = vpop.f32.mrf.mxu2  ;;  %v2348_v60 = vadd.f32 %v2338_v17, %v2174_v24 }
 0x20d   : > { %v2723_v42 = vadd.f32 %v2704_v44, %v2477_v19 }
 0x20e   : > { %v2483_v48 = vadd.f32 %v2473_v6, %v2348_v60 }
 0x20f   : > { %v2897_v2 = vadd.f32 %v2878_v59, %v2723_v42 }
 0x210   : > { %v2729_v21 = vadd.f32 %v2719_v18, %v2483_v48 }
 0x211   : > { %v2905_v11 = vmax.f32 %v2897_v2, 0.0 }
 0x213   : > { %v3944_v34 = vpack.c.bf16 %v2905_v11, %v2904_v63  ;;  %v2891_v46 = vpop.f32.mrf.mxu3 }
 0x214   : > { %v2881_v40 = vpop.f32.mrf.mxu2  ;;  %v2902_v1 = vadd.f32 %v2891_v46, %v2728_v0 }
 0x215   : > { %3945 = vst [vmem:[%s4894_s18] sm:$0xff] %v3944_v34   ;;  %v2898_v53 = vadd.f32 %v2881_v40, %v2724_v45 }
 0x216   : > { %v2910_v54 = vmax.f32 %v2902_v1, 0.0 }
 0x217   : > { %v2906_v8 = vmax.f32 %v2898_v53, 0.0 }
 0x21b   : > { %v2893_v33 = vpop.f32.mrf.mxu3 }
 0x21c   : > { %v2903_v56 = vadd.f32 %v2893_v33, %v2729_v21  ;;  %v2883_v43 = vpop.f32.mrf.mxu2 }
 0x21d   : > { %v2899_v30 = vadd.f32 %v2883_v43, %v2725_v47 }
 0x21e   : > { %v2911_v7 = vmax.f32 %v2903_v56, 0.0 }
 0x21f   : > { %v2907_v26 = vmax.f32 %v2899_v30, 0.0 }
 0x220   : > { %v3959_v49 = vpack.c.bf16 %v2911_v7, %v2910_v54 }
 0x221   : > { %v3949_v14 = vpack.c.bf16 %v2907_v26, %v2906_v8 }
 0x222   : > { %3963 = vst [vmem:[%s4894_s18 + $0x18] sm:$0xff] %v3959_v49  }
 0x223   : > { %3961 = vst [vmem:[%s4894_s18 + $0x8] sm:$0xff] %v3949_v14  }
 0x224   : > { %v2886_v12 = vpop.f32.mrf.mxu2 }
 0x225   : > { %v2900_v51 = vadd.f32 %v2886_v12, %v2726_v61 }
 0x227   : > { %v2908_v3 = vmax.f32 %v2900_v51, 0.0 }
 0x22c   : > { %v2888_v20 = vpop.f32.mrf.mxu2 }
 0x22d   : > { %v2901_v6 = vadd.f32 %v2888_v20, %v2727_v62 }
 0x22f   : > { %v2909_v52 = vmax.f32 %v2901_v6, 0.0 }
 0x231   : > { %v3954_v28 = vpack.c.bf16 %v2909_v52, %v2908_v3 }
 0x233   : > { %3962 = vst [vmem:[%s4894_s18 + $0x10] sm:$0xff] %v3954_v28  }
 0x234 PF: > { %s18_s27 = sadd.s32 1, %s4007_s27  }
 0x235   : > { %p15_p4 = scmp.ge.s32.totalorder %s18_s27, 4  }
 0x237   :  { %17 = sbr.rel (!%p15_p4) target bundleno = 1 (0x1), region = 95 }

</bundles_post_ra>
